<compile_context>
chip_gen: v5e
topology: v5e:2x2
jax: 0.10.0
libtpu: 0.0.40
codegen_flags: <defaults>
</compile_context>

<pallas_src>
import functools

import jax
import jax.numpy as jnp
from jax.experimental import pallas as pl
from jax.experimental.pallas import tpu as pltpu

_MASK_NEG = -1e30


def _round_up(a: int, b: int) -> int:
    return ((a + b - 1) // b) * b


def _default_vmem_limit() -> int:
    """~75% of physical VMEM (v7x: 48 MiB, v5e/v6e: 96 MiB), capped at 100 MiB."""
    try:
        cap = getattr(pltpu.get_tpu_info(), "vmem_capacity_bytes", None)
        if cap:
            return min(int(cap) * 3 // 4, 100 * 1024 * 1024)
    except Exception:
        pass
    return 48 * 1024 * 1024   # safe on every generation


def _gat_kernel(a_dst_ref, a_srcT_ref, feat_ref, mask_ref, bias_ref, o_ref,
                m_sc, l_sc, acc_sc, *, heads, out_channels, negative_slope):
    """One (dst-row-tile, src-tile) step of masked dense GAT attention.

    Online softmax over the source axis; all H heads handled per step so the
    int8 mask tile is fetched exactly once per row tile and the output store is
    one lane-dense (TM, H*C) block.
    """
    s = pl.program_id(1)
    H, C = heads, out_channels

    @pl.when(s == 0)
    def _init():
        m_sc[...] = jnp.full_like(m_sc, -jnp.inf)
        l_sc[...] = jnp.zeros_like(l_sc)
        acc_sc[...] = jnp.zeros_like(acc_sc)

    a_dst = a_dst_ref[...]                       # (TM, H)   f32, hoisted logits
    a_srcT = a_srcT_ref[...]                     # (H, TS)   f32, hoisted logits
    feat = feat_ref[...]                         # (TS, H*C) matmul dtype
    edge = mask_ref[...] != 0                    # (TM, TS)  int8 mask, read once

    for h in range(H):                           # unrolled; H is small
        raw = a_dst[:, h:h + 1] + a_srcT[h:h + 1, :]            # (TM, TS)
        e = jnp.maximum(raw, raw * negative_slope)              # leaky_relu
        e = jnp.where(edge, e, _MASK_NEG)

        m_prev = m_sc[:, h:h + 1]
        m_new = jnp.maximum(m_prev, jnp.max(e, axis=-1, keepdims=True))
        scale = jnp.exp(m_prev - m_new)                         # (TM, 1)
        p = jnp.exp(e - m_new)                                  # (TM, TS) f32
        l_sc[:, h:h + 1] = scale * l_sc[:, h:h + 1] + jnp.sum(p, -1, keepdims=True)
        m_sc[:, h:h + 1] = m_new

        f_h = feat[:, h * C:(h + 1) * C]                        # (TS, C)
        contrib = jnp.dot(p.astype(f_h.dtype), f_h,
                          preferred_element_type=jnp.float32)   # MXU
        acc_sc[:, h * C:(h + 1) * C] = scale * acc_sc[:, h * C:(h + 1) * C] + contrib

    @pl.when(s == pl.num_programs(1) - 1)
    def _finalize():
        inv = pl.reciprocal(l_sc[...], approx=True)             # (TM, H), EUP slot
        acc = acc_sc[...]
        cols = [acc[:, h * C:(h + 1) * C] * inv[:, h:h + 1] for h in range(H)]
        out = jnp.concatenate(cols, axis=-1) + bias_ref[...]    # (TM, H*C)
        o_ref[...] = out.astype(o_ref.dtype)                    # single lane-dense store


def gat_forward(x, edge_index, params, *, heads, out_channels,
                negative_slope=0.2, block_rows=256, src_block=512,
                matmul_dtype=jnp.bfloat16):
    """GATConv forward (concat=True, bias=True, dropout=0, add_self_loops=True).

    x:          (N, in_channels) float32
    edge_index: (2, E) int32, row 0 = source, row 1 = target (PyG convention)
    params:     W (F_in, H*C), att_src (H, C), att_dst (H, C), bias (H*C,)
    returns:    (N, H*C)
    """
    N, F_in = x.shape
    H, C = heads, out_channels
    W, att_src, att_dst, bias = (params["W"], params["att_src"],
                                 params["att_dst"], params["bias"])
    assert W.shape == (F_in, H * C)
    assert block_rows % 32 == 0 and src_block % 128 == 0

    # --- hoisted projection + attention logits (one tiny matmul, done once) ---
    feat = (x @ W).astype(jnp.float32)                          # (N, H*C)
    feat_hc = feat.reshape(N, H, C)
    a_src = jnp.einsum("nhc,hc->nh", feat_hc, att_src.astype(jnp.float32))  # (N, H)
    a_dst = jnp.einsum("nhc,hc->nh", feat_hc, att_dst.astype(jnp.float32))  # (N, H)

    # --- tiling (cdiv + pad; TM multiple of 32 for the int8 mask layout) -------
    TM = min(block_rows, _round_up(N, 32))       # destination rows per step
    TS = min(src_block, _round_up(N, 128))       # source columns per step
    N_dst = _round_up(N, TM)
    N_src = _round_up(N, TS)

    a_dst_p = jnp.pad(a_dst, ((0, N_dst - N), (0, 0)))              # (N_dst, H)
    a_srcT_p = jnp.pad(a_src, ((0, N_src - N), (0, 0))).T           # (H, N_src)
    feat_p = jnp.pad(feat, ((0, N_src - N), (0, 0))).astype(matmul_dtype)
    bias2d = bias.reshape(1, H * C).astype(jnp.float32)

    # --- int8 dense adjacency (edge j -> i  =>  adj[i, j] = 1; self-loops) -----
    adj = jnp.zeros((N_dst, N_src), jnp.int8)
    adj = adj.at[edge_index[1], edge_index[0]].set(1)
    adj = adj.at[jnp.arange(N), jnp.arange(N)].set(1)

    grid = (N_dst // TM, N_src // TS)

    out = pl.pallas_call(
        functools.partial(_gat_kernel, heads=H, out_channels=C,
                          negative_slope=negative_slope),
        out_shape=jax.ShapeDtypeStruct((N_dst, H * C), x.dtype),
        grid_spec=pltpu.PrefetchScalarGridSpec(
            num_scalar_prefetch=0,
            grid=grid,
            in_specs=[
                pl.BlockSpec((TM, H), lambda i, s: (i, 0)),        # a_dst tile
                pl.BlockSpec((H, TS), lambda i, s: (0, s)),        # a_src^T tile
                pl.BlockSpec((TS, H * C), lambda i, s: (s, 0)),    # feat tile
                pl.BlockSpec((TM, TS), lambda i, s: (i, s)),       # int8 mask tile
                pl.BlockSpec((1, H * C), lambda i, s: (0, 0)),     # bias
            ],
            out_specs=pl.BlockSpec((TM, H * C), lambda i, s: (i, 0)),
            scratch_shapes=[
                pltpu.VMEM((TM, H), jnp.float32),       # running max  m
                pltpu.VMEM((TM, H), jnp.float32),       # running denom l
                pltpu.VMEM((TM, H * C), jnp.float32),   # running numerator
            ]),
        compiler_params=pltpu.CompilerParams(
            dimension_semantics=("parallel", "arbitrary"),
            vmem_limit_bytes=_default_vmem_limit(),
        ),
    )(a_dst_p, a_srcT_p, feat_p, adj, bias2d)

    return out[:N]


def init_gat_params(key, in_channels, out_channels, heads, dtype=jnp.float32):
    """Glorot-style init; bias made nonzero so the bias path is exercised."""
    k1, k2, k3, k4 = jax.random.split(key, 4)
    HC = heads * out_channels
    s_lin = (6.0 / (in_channels + HC)) ** 0.5
    s_att = (6.0 / (out_channels + 1)) ** 0.5
    return {
        "W": jax.random.uniform(k1, (in_channels, HC), dtype, -s_lin, s_lin),
        "att_src": jax.random.uniform(k2, (heads, out_channels), dtype, -s_att, s_att),
        "att_dst": jax.random.uniform(k3, (heads, out_channels), dtype, -s_att, s_att),
        "bias": 0.1 * jax.random.normal(k4, (HC,), dtype),
    }


def gat_reference(x, edge_index, params, *, heads, out_channels, negative_slope=0.2):
    """Pure-JAX dense reference with identical GATConv semantics."""
    N = x.shape[0]
    H, C = heads, out_channels
    W, att_src, att_dst, bias = (params["W"], params["att_src"],
                                 params["att_dst"], params["bias"])
    feat = (x @ W).reshape(N, H, C)
    a_src = jnp.einsum("nhc,hc->nh", feat, att_src)
    a_dst = jnp.einsum("nhc,hc->nh", feat, att_dst)
    adj = jnp.zeros((N, N), jnp.float32)
    adj = adj.at[edge_index[1], edge_index[0]].set(1.0)
    adj = adj.at[jnp.arange(N), jnp.arange(N)].set(1.0)
    raw = a_dst[:, None, :] + a_src[None, :, :]            # (N_dst, N_src, H)
    e = jnp.where(raw > 0, raw, raw * negative_slope)
    e = jnp.where(adj[:, :, None] > 0, e, -1e30)
    e = e - e.max(axis=1, keepdims=True)
    p = jnp.exp(e)
    alpha = p / p.sum(axis=1, keepdims=True)
    out = jnp.einsum("ijh,jhc->ihc", alpha, feat).reshape(N, H * C)
    return out + bias


if __name__ == "__main__":
    # Small shapes consistent with the module: in_channels=16, out_channels=8,
    # heads=4, concat=True; a 200-node graph with 512 random directed edges.
    N, in_channels, out_channels, heads = 200, 16, 8, 4
    E = 512

    key = jax.random.PRNGKey(0)
    kx, kp, ks, kd = jax.random.split(key, 4)
    x = jax.random.normal(kx, (N, in_channels), dtype=jnp.float32)
    params = init_gat_params(kp, in_channels, out_channels, heads)
    src = jax.random.randint(ks, (E,), 0, N, dtype=jnp.int32)
    dst = jax.random.randint(kd, (E,), 0, N, dtype=jnp.int32)
    edge_index = jnp.stack([src, dst])                     # (2, E)

    ref = gat_reference(x, edge_index, params, heads=heads, out_channels=out_channels)

    # Run 1: f32 matmul path with small tiles -> multi-tile grid in BOTH axes,
    # exercising padding and the online-softmax accumulator across source tiles.
    out_a = gat_forward(x, edge_index, params, heads=heads, out_channels=out_channels,
                        block_rows=128, src_block=128, matmul_dtype=jnp.float32)
    out_a = jax.block_until_ready(out_a)
    assert out_a.shape == (N, heads * out_channels)
    assert jnp.allclose(out_a, ref, atol=5e-3, rtol=5e-3), "f32 path mismatch vs reference"

    # Run 2: default (larger) tiles, bf16 MXU operands, single source tile.
    out_b = gat_forward(x, edge_index, params, heads=heads, out_channels=out_channels)
    out_b = jax.block_until_ready(out_b)
    assert out_b.shape == (N, heads * out_channels)
    assert jnp.allclose(out_b, ref, atol=5e-2, rtol=5e-2), "bf16 path mismatch vs reference"

    print("KERNEL_OK")
</pallas_src>

<mosaic_0001>
module attributes {stable_mosaic.version = 11 : i64} {
  func.func @_gat_kernel(%arg0: i32, %arg1: i32, %arg2: memref<128x4xf32, #tpu.memory_space<vmem>>, %arg3: memref<4x128xf32, #tpu.memory_space<vmem>>, %arg4: memref<128x32xf32, #tpu.memory_space<vmem>>, %arg5: memref<128x128xi8, #tpu.memory_space<vmem>>, %arg6: memref<1x32xf32, #tpu.memory_space<vmem>>, %arg7: memref<128x32xf32, #tpu.memory_space<vmem>>, %arg8: memref<128x4xf32, #tpu.memory_space<vmem>>, %arg9: memref<128x4xf32, #tpu.memory_space<vmem>>, %arg10: memref<128x32xf32, #tpu.memory_space<vmem>>) attributes {dimension_semantics = [#tpu.dimension_semantics<parallel>, #tpu.dimension_semantics<arbitrary>], iteration_bounds = array<i64: 2, 2>, scalar_prefetch = 0 : i64, scratch_operands = 3 : i64, tpu.core_type = #tpu.core_type<tc>, window_params = [{transform_indices = @transform_0, window_bounds = array<i64: 128, 4>}, {transform_indices = @transform_1, window_bounds = array<i64: 4, 128>}, {transform_indices = @transform_2, window_bounds = array<i64: 128, 32>}, {transform_indices = @transform_3, window_bounds = array<i64: 128, 128>}, {pipeline_mode = #tpu.pipeline_mode<synchronous>, transform_indices = @transform_4, window_bounds = array<i64: 1, 32>}, {transform_indices = @transform_5, window_bounds = array<i64: 128, 32>}]} {
    %c0_i32 = arith.constant 0 : i32
    %0 = arith.cmpi eq, %arg1, %c0_i32 : i32
    %1 = arith.extui %0 : i1 to i32
    %c0_i32_0 = arith.constant 0 : i32
    %2 = arith.cmpi ne, %1, %c0_i32_0 : i32
    scf.if %2 {
      %cst_70 = arith.constant 0xFF800000 : f32
      %144 = vector.broadcast %cst_70 : f32 to vector<128x4xf32>
      %c0_71 = arith.constant 0 : index
      %c0_72 = arith.constant 0 : index
      %145 = vector.load %arg8[%c0_71, %c0_72] : memref<128x4xf32, #tpu.memory_space<vmem>>, vector<128x4xf32>
      tpu.vector_store %arg8[%c0_71, %c0_72], %144 {strides = array<i32>} : memref<128x4xf32, #tpu.memory_space<vmem>>, vector<128x4xf32>,
      %cst_73 = arith.constant 0.000000e+00 : f32
      %146 = vector.broadcast %cst_73 : f32 to vector<128x4xf32>
      %c0_74 = arith.constant 0 : index
      %c0_75 = arith.constant 0 : index
      %147 = vector.load %arg9[%c0_74, %c0_75] : memref<128x4xf32, #tpu.memory_space<vmem>>, vector<128x4xf32>
      tpu.vector_store %arg9[%c0_74, %c0_75], %146 {strides = array<i32>} : memref<128x4xf32, #tpu.memory_space<vmem>>, vector<128x4xf32>,
      %cst_76 = arith.constant 0.000000e+00 : f32
      %148 = vector.broadcast %cst_76 : f32 to vector<128x32xf32>
      %c0_77 = arith.constant 0 : index
      %c0_78 = arith.constant 0 : index
      %149 = vector.load %arg10[%c0_77, %c0_78] : memref<128x32xf32, #tpu.memory_space<vmem>>, vector<128x32xf32>
      tpu.vector_store %arg10[%c0_77, %c0_78], %148 {strides = array<i32>} : memref<128x32xf32, #tpu.memory_space<vmem>>, vector<128x32xf32>,
    } else {
    }
    %c0 = arith.constant 0 : index
    %c0_1 = arith.constant 0 : index
    %3 = vector.load %arg2[%c0, %c0_1] : memref<128x4xf32, #tpu.memory_space<vmem>>, vector<128x4xf32>
    %c0_2 = arith.constant 0 : index
    %c0_3 = arith.constant 0 : index
    %4 = vector.load %arg3[%c0_2, %c0_3] : memref<4x128xf32, #tpu.memory_space<vmem>>, vector<4x128xf32>
    %c0_4 = arith.constant 0 : index
    %c0_5 = arith.constant 0 : index
    %5 = vector.load %arg4[%c0_4, %c0_5] : memref<128x32xf32, #tpu.memory_space<vmem>>, vector<128x32xf32>
    %c0_6 = arith.constant 0 : index
    %c0_7 = arith.constant 0 : index
    %6 = vector.load %arg5[%c0_6, %c0_7] : memref<128x128xi8, #tpu.memory_space<vmem>>, vector<128x128xi8>
    %c0_i8 = arith.constant 0 : i8
    %7 = vector.broadcast %c0_i8 : i8 to vector<128x128xi8>
    %8 = arith.cmpi ne, %6, %7 : vector<128x128xi8>
    %9 = vector.extract_strided_slice %3 {offsets = [0, 0], sizes = [128, 1], strides = [1, 1]} : vector<128x4xf32> to vector<128x1xf32>
    %10 = vector.extract_strided_slice %4 {offsets = [0, 0], sizes = [1, 128], strides = [1, 1]} : vector<4x128xf32> to vector<1x128xf32>
    %11 = vector.broadcast %9 : vector<128x1xf32> to vector<128x128xf32>
    %12 = vector.broadcast %10 : vector<1x128xf32> to vector<128x128xf32>
    %13 = arith.addf %11, %12 : vector<128x128xf32>
    %cst = arith.constant 2.000000e-01 : f32
    %14 = vector.broadcast %cst : f32 to vector<128x128xf32>
    %15 = arith.mulf %13, %14 : vector<128x128xf32>
    %16 = arith.maximumf %13, %15 : vector<128x128xf32>
    %cst_8 = arith.constant -1.000000e+30 : f32
    %17 = vector.broadcast %cst_8 : f32 to vector<128x128xf32>
    %18 = arith.select %8, %16, %17 : vector<128x128xi1>, vector<128x128xf32>
    %c0_9 = arith.constant 0 : index
    %c0_10 = arith.constant 0 : index
    %19 = vector.load %arg8[%c0_9, %c0_10] : memref<128x4xf32, #tpu.memory_space<vmem>>, vector<128x1xf32>
    %cst_11 = arith.constant dense<0xFF800000> : vector<128xf32>
    %20 = vector.multi_reduction <maximumf>, %18, %cst_11 [1] : vector<128x128xf32> to vector<128xf32>
    %21 = vector.shape_cast %20 : vector<128xf32> to vector<128x1xf32>
    %22 = arith.maximumf %19, %21 : vector<128x1xf32>
    %23 = arith.subf %19, %22 : vector<128x1xf32>
    %24 = math.exp %23 : vector<128x1xf32>
    %25 = vector.broadcast %22 : vector<128x1xf32> to vector<128x128xf32>
    %26 = arith.subf %18, %25 : vector<128x128xf32>
    %27 = math.exp %26 : vector<128x128xf32>
    %c0_12 = arith.constant 0 : index
    %c0_13 = arith.constant 0 : index
    %28 = vector.load %arg9[%c0_12, %c0_13] : memref<128x4xf32, #tpu.memory_space<vmem>>, vector<128x1xf32>
    %29 = arith.mulf %24, %28 : vector<128x1xf32>
    %cst_14 = arith.constant dense<0.000000e+00> : vector<128xf32>
    %30 = vector.multi_reduction <add>, %27, %cst_14 [1] : vector<128x128xf32> to vector<128xf32>
    %31 = vector.shape_cast %30 : vector<128xf32> to vector<128x1xf32>
    %32 = arith.addf %29, %31 : vector<128x1xf32>
    %c0_15 = arith.constant 0 : index
    %c0_16 = arith.constant 0 : index
    %33 = vector.load %arg9[%c0_15, %c0_16] : memref<128x4xf32, #tpu.memory_space<vmem>>, vector<128x1xf32>
    tpu.vector_store %arg9[%c0_15, %c0_16], %32 {strides = array<i32>} : memref<128x4xf32, #tpu.memory_space<vmem>>, vector<128x1xf32>,
    %c0_17 = arith.constant 0 : index
    %c0_18 = arith.constant 0 : index
    %34 = vector.load %arg8[%c0_17, %c0_18] : memref<128x4xf32, #tpu.memory_space<vmem>>, vector<128x1xf32>
    tpu.vector_store %arg8[%c0_17, %c0_18], %22 {strides = array<i32>} : memref<128x4xf32, #tpu.memory_space<vmem>>, vector<128x1xf32>,
    %35 = vector.extract_strided_slice %5 {offsets = [0, 0], sizes = [128, 8], strides = [1, 1]} : vector<128x32xf32> to vector<128x8xf32>
    %cst_19 = arith.constant dense<0.000000e+00> : vector<128x8xf32>
    %36 = tpu.matmul %27, %35, %cst_19 {dimension_numbers = #tpu.dot_dimension_numbers<[1], [0], [0], [1], [0, 0, 1, 1], [], []>} : vector<128x128xf32>, vector<128x8xf32>, vector<128x8xf32> -> vector<128x8xf32>
    %c0_20 = arith.constant 0 : index
    %c0_21 = arith.constant 0 : index
    %37 = vector.load %arg10[%c0_20, %c0_21] : memref<128x32xf32, #tpu.memory_space<vmem>>, vector<128x8xf32>
    %38 = vector.broadcast %24 : vector<128x1xf32> to vector<128x8xf32>
    %39 = arith.mulf %38, %37 : vector<128x8xf32>
    %40 = arith.addf %39, %36 : vector<128x8xf32>
    %c0_22 = arith.constant 0 : index
    %c0_23 = arith.constant 0 : index
    %41 = vector.load %arg10[%c0_22, %c0_23] : memref<128x32xf32, #tpu.memory_space<vmem>>, vector<128x8xf32>
    tpu.vector_store %arg10[%c0_22, %c0_23], %40 {strides = array<i32>} : memref<128x32xf32, #tpu.memory_space<vmem>>, vector<128x8xf32>,
    %42 = vector.extract_strided_slice %3 {offsets = [0, 1], sizes = [128, 1], strides = [1, 1]} : vector<128x4xf32> to vector<128x1xf32>
    %43 = vector.extract_strided_slice %4 {offsets = [1, 0], sizes = [1, 128], strides = [1, 1]} : vector<4x128xf32> to vector<1x128xf32>
    %44 = vector.broadcast %42 : vector<128x1xf32> to vector<128x128xf32>
    %45 = vector.broadcast %43 : vector<1x128xf32> to vector<128x128xf32>
    %46 = arith.addf %44, %45 : vector<128x128xf32>
    %cst_24 = arith.constant 2.000000e-01 : f32
    %47 = vector.broadcast %cst_24 : f32 to vector<128x128xf32>
    %48 = arith.mulf %46, %47 : vector<128x128xf32>
    %49 = arith.maximumf %46, %48 : vector<128x128xf32>
    %cst_25 = arith.constant -1.000000e+30 : f32
    %50 = vector.broadcast %cst_25 : f32 to vector<128x128xf32>
    %51 = arith.select %8, %49, %50 : vector<128x128xi1>, vector<128x128xf32>
    %c0_26 = arith.constant 0 : index
    %c1 = arith.constant 1 : index
    %52 = vector.load %arg8[%c0_26, %c1] : memref<128x4xf32, #tpu.memory_space<vmem>>, vector<128x1xf32>
    %cst_27 = arith.constant dense<0xFF800000> : vector<128xf32>
    %53 = vector.multi_reduction <maximumf>, %51, %cst_27 [1] : vector<128x128xf32> to vector<128xf32>
    %54 = vector.shape_cast %53 : vector<128xf32> to vector<128x1xf32>
    %55 = arith.maximumf %52, %54 : vector<128x1xf32>
    %56 = arith.subf %52, %55 : vector<128x1xf32>
    %57 = math.exp %56 : vector<128x1xf32>
    %58 = vector.broadcast %55 : vector<128x1xf32> to vector<128x128xf32>
    %59 = arith.subf %51, %58 : vector<128x128xf32>
    %60 = math.exp %59 : vector<128x128xf32>
    %c0_28 = arith.constant 0 : index
    %c1_29 = arith.constant 1 : index
    %61 = vector.load %arg9[%c0_28, %c1_29] : memref<128x4xf32, #tpu.memory_space<vmem>>, vector<128x1xf32>
    %62 = arith.mulf %57, %61 : vector<128x1xf32>
    %cst_30 = arith.constant dense<0.000000e+00> : vector<128xf32>
    %63 = vector.multi_reduction <add>, %60, %cst_30 [1] : vector<128x128xf32> to vector<128xf32>
    %64 = vector.shape_cast %63 : vector<128xf32> to vector<128x1xf32>
    %65 = arith.addf %62, %64 : vector<128x1xf32>
    %c0_31 = arith.constant 0 : index
    %c1_32 = arith.constant 1 : index
    %66 = vector.load %arg9[%c0_31, %c1_32] : memref<128x4xf32, #tpu.memory_space<vmem>>, vector<128x1xf32>
    tpu.vector_store %arg9[%c0_31, %c1_32], %65 {strides = array<i32>} : memref<128x4xf32, #tpu.memory_space<vmem>>, vector<128x1xf32>,
    %c0_33 = arith.constant 0 : index
    %c1_34 = arith.constant 1 : index
    %67 = vector.load %arg8[%c0_33, %c1_34] : memref<128x4xf32, #tpu.memory_space<vmem>>, vector<128x1xf32>
    tpu.vector_store %arg8[%c0_33, %c1_34], %55 {strides = array<i32>} : memref<128x4xf32, #tpu.memory_space<vmem>>, vector<128x1xf32>,
    %68 = vector.extract_strided_slice %5 {offsets = [0, 8], sizes = [128, 8], strides = [1, 1]} : vector<128x32xf32> to vector<128x8xf32>
    %cst_35 = arith.constant dense<0.000000e+00> : vector<128x8xf32>
    %69 = tpu.matmul %60, %68, %cst_35 {dimension_numbers = #tpu.dot_dimension_numbers<[1], [0], [0], [1], [0, 0, 1, 1], [], []>} : vector<128x128xf32>, vector<128x8xf32>, vector<128x8xf32> -> vector<128x8xf32>
    %c0_36 = arith.constant 0 : index
    %c8 = arith.constant 8 : index
    %70 = vector.load %arg10[%c0_36, %c8] : memref<128x32xf32, #tpu.memory_space<vmem>>, vector<128x8xf32>
    %71 = vector.broadcast %57 : vector<128x1xf32> to vector<128x8xf32>
    %72 = arith.mulf %71, %70 : vector<128x8xf32>
    %73 = arith.addf %72, %69 : vector<128x8xf32>
    %c0_37 = arith.constant 0 : index
    %c8_38 = arith.constant 8 : index
    %74 = vector.load %arg10[%c0_37, %c8_38] : memref<128x32xf32, #tpu.memory_space<vmem>>, vector<128x8xf32>
    tpu.vector_store %arg10[%c0_37, %c8_38], %73 {strides = array<i32>} : memref<128x32xf32, #tpu.memory_space<vmem>>, vector<128x8xf32>,
    %75 = vector.extract_strided_slice %3 {offsets = [0, 2], sizes = [128, 1], strides = [1, 1]} : vector<128x4xf32> to vector<128x1xf32>
    %76 = vector.extract_strided_slice %4 {offsets = [2, 0], sizes = [1, 128], strides = [1, 1]} : vector<4x128xf32> to vector<1x128xf32>
    %77 = vector.broadcast %75 : vector<128x1xf32> to vector<128x128xf32>
    %78 = vector.broadcast %76 : vector<1x128xf32> to vector<128x128xf32>
    %79 = arith.addf %77, %78 : vector<128x128xf32>
    %cst_39 = arith.constant 2.000000e-01 : f32
    %80 = vector.broadcast %cst_39 : f32 to vector<128x128xf32>
    %81 = arith.mulf %79, %80 : vector<128x128xf32>
    %82 = arith.maximumf %79, %81 : vector<128x128xf32>
    %cst_40 = arith.constant -1.000000e+30 : f32
    %83 = vector.broadcast %cst_40 : f32 to vector<128x128xf32>
    %84 = arith.select %8, %82, %83 : vector<128x128xi1>, vector<128x128xf32>
    %c0_41 = arith.constant 0 : index
    %c2 = arith.constant 2 : index
    %85 = vector.load %arg8[%c0_41, %c2] : memref<128x4xf32, #tpu.memory_space<vmem>>, vector<128x1xf32>
    %cst_42 = arith.constant dense<0xFF800000> : vector<128xf32>
    %86 = vector.multi_reduction <maximumf>, %84, %cst_42 [1] : vector<128x128xf32> to vector<128xf32>
    %87 = vector.shape_cast %86 : vector<128xf32> to vector<128x1xf32>
    %88 = arith.maximumf %85, %87 : vector<128x1xf32>
    %89 = arith.subf %85, %88 : vector<128x1xf32>
    %90 = math.exp %89 : vector<128x1xf32>
    %91 = vector.broadcast %88 : vector<128x1xf32> to vector<128x128xf32>
    %92 = arith.subf %84, %91 : vector<128x128xf32>
    %93 = math.exp %92 : vector<128x128xf32>
    %c0_43 = arith.constant 0 : index
    %c2_44 = arith.constant 2 : index
    %94 = vector.load %arg9[%c0_43, %c2_44] : memref<128x4xf32, #tpu.memory_space<vmem>>, vector<128x1xf32>
    %95 = arith.mulf %90, %94 : vector<128x1xf32>
    %cst_45 = arith.constant dense<0.000000e+00> : vector<128xf32>
    %96 = vector.multi_reduction <add>, %93, %cst_45 [1] : vector<128x128xf32> to vector<128xf32>
    %97 = vector.shape_cast %96 : vector<128xf32> to vector<128x1xf32>
    %98 = arith.addf %95, %97 : vector<128x1xf32>
    %c0_46 = arith.constant 0 : index
    %c2_47 = arith.constant 2 : index
    %99 = vector.load %arg9[%c0_46, %c2_47] : memref<128x4xf32, #tpu.memory_space<vmem>>, vector<128x1xf32>
    tpu.vector_store %arg9[%c0_46, %c2_47], %98 {strides = array<i32>} : memref<128x4xf32, #tpu.memory_space<vmem>>, vector<128x1xf32>,
    %c0_48 = arith.constant 0 : index
    %c2_49 = arith.constant 2 : index
    %100 = vector.load %arg8[%c0_48, %c2_49] : memref<128x4xf32, #tpu.memory_space<vmem>>, vector<128x1xf32>
    tpu.vector_store %arg8[%c0_48, %c2_49], %88 {strides = array<i32>} : memref<128x4xf32, #tpu.memory_space<vmem>>, vector<128x1xf32>,
    %101 = vector.extract_strided_slice %5 {offsets = [0, 16], sizes = [128, 8], strides = [1, 1]} : vector<128x32xf32> to vector<128x8xf32>
    %cst_50 = arith.constant dense<0.000000e+00> : vector<128x8xf32>
    %102 = tpu.matmul %93, %101, %cst_50 {dimension_numbers = #tpu.dot_dimension_numbers<[1], [0], [0], [1], [0, 0, 1, 1], [], []>} : vector<128x128xf32>, vector<128x8xf32>, vector<128x8xf32> -> vector<128x8xf32>
    %c0_51 = arith.constant 0 : index
    %c16 = arith.constant 16 : index
    %103 = vector.load %arg10[%c0_51, %c16] : memref<128x32xf32, #tpu.memory_space<vmem>>, vector<128x8xf32>
    %104 = vector.broadcast %90 : vector<128x1xf32> to vector<128x8xf32>
    %105 = arith.mulf %104, %103 : vector<128x8xf32>
    %106 = arith.addf %105, %102 : vector<128x8xf32>
    %c0_52 = arith.constant 0 : index
    %c16_53 = arith.constant 16 : index
    %107 = vector.load %arg10[%c0_52, %c16_53] : memref<128x32xf32, #tpu.memory_space<vmem>>, vector<128x8xf32>
    tpu.vector_store %arg10[%c0_52, %c16_53], %106 {strides = array<i32>} : memref<128x32xf32, #tpu.memory_space<vmem>>, vector<128x8xf32>,
    %108 = vector.extract_strided_slice %3 {offsets = [0, 3], sizes = [128, 1], strides = [1, 1]} : vector<128x4xf32> to vector<128x1xf32>
    %109 = vector.extract_strided_slice %4 {offsets = [3, 0], sizes = [1, 128], strides = [1, 1]} : vector<4x128xf32> to vector<1x128xf32>
    %110 = vector.broadcast %108 : vector<128x1xf32> to vector<128x128xf32>
    %111 = vector.broadcast %109 : vector<1x128xf32> to vector<128x128xf32>
    %112 = arith.addf %110, %111 : vector<128x128xf32>
    %cst_54 = arith.constant 2.000000e-01 : f32
    %113 = vector.broadcast %cst_54 : f32 to vector<128x128xf32>
    %114 = arith.mulf %112, %113 : vector<128x128xf32>
    %115 = arith.maximumf %112, %114 : vector<128x128xf32>
    %cst_55 = arith.constant -1.000000e+30 : f32
    %116 = vector.broadcast %cst_55 : f32 to vector<128x128xf32>
    %117 = arith.select %8, %115, %116 : vector<128x128xi1>, vector<128x128xf32>
    %c0_56 = arith.constant 0 : index
    %c3 = arith.constant 3 : index
    %118 = vector.load %arg8[%c0_56, %c3] : memref<128x4xf32, #tpu.memory_space<vmem>>, vector<128x1xf32>
    %cst_57 = arith.constant dense<0xFF800000> : vector<128xf32>
    %119 = vector.multi_reduction <maximumf>, %117, %cst_57 [1] : vector<128x128xf32> to vector<128xf32>
    %120 = vector.shape_cast %119 : vector<128xf32> to vector<128x1xf32>
    %121 = arith.maximumf %118, %120 : vector<128x1xf32>
    %122 = arith.subf %118, %121 : vector<128x1xf32>
    %123 = math.exp %122 : vector<128x1xf32>
    %124 = vector.broadcast %121 : vector<128x1xf32> to vector<128x128xf32>
    %125 = arith.subf %117, %124 : vector<128x128xf32>
    %126 = math.exp %125 : vector<128x128xf32>
    %c0_58 = arith.constant 0 : index
    %c3_59 = arith.constant 3 : index
    %127 = vector.load %arg9[%c0_58, %c3_59] : memref<128x4xf32, #tpu.memory_space<vmem>>, vector<128x1xf32>
    %128 = arith.mulf %123, %127 : vector<128x1xf32>
    %cst_60 = arith.constant dense<0.000000e+00> : vector<128xf32>
    %129 = vector.multi_reduction <add>, %126, %cst_60 [1] : vector<128x128xf32> to vector<128xf32>
    %130 = vector.shape_cast %129 : vector<128xf32> to vector<128x1xf32>
    %131 = arith.addf %128, %130 : vector<128x1xf32>
    %c0_61 = arith.constant 0 : index
    %c3_62 = arith.constant 3 : index
    %132 = vector.load %arg9[%c0_61, %c3_62] : memref<128x4xf32, #tpu.memory_space<vmem>>, vector<128x1xf32>
    tpu.vector_store %arg9[%c0_61, %c3_62], %131 {strides = array<i32>} : memref<128x4xf32, #tpu.memory_space<vmem>>, vector<128x1xf32>,
    %c0_63 = arith.constant 0 : index
    %c3_64 = arith.constant 3 : index
    %133 = vector.load %arg8[%c0_63, %c3_64] : memref<128x4xf32, #tpu.memory_space<vmem>>, vector<128x1xf32>
    tpu.vector_store %arg8[%c0_63, %c3_64], %121 {strides = array<i32>} : memref<128x4xf32, #tpu.memory_space<vmem>>, vector<128x1xf32>,
    %134 = vector.extract_strided_slice %5 {offsets = [0, 24], sizes = [128, 8], strides = [1, 1]} : vector<128x32xf32> to vector<128x8xf32>
    %cst_65 = arith.constant dense<0.000000e+00> : vector<128x8xf32>
    %135 = tpu.matmul %126, %134, %cst_65 {dimension_numbers = #tpu.dot_dimension_numbers<[1], [0], [0], [1], [0, 0, 1, 1], [], []>} : vector<128x128xf32>, vector<128x8xf32>, vector<128x8xf32> -> vector<128x8xf32>
    %c0_66 = arith.constant 0 : index
    %c24 = arith.constant 24 : index
    %136 = vector.load %arg10[%c0_66, %c24] : memref<128x32xf32, #tpu.memory_space<vmem>>, vector<128x8xf32>
    %137 = vector.broadcast %123 : vector<128x1xf32> to vector<128x8xf32>
    %138 = arith.mulf %137, %136 : vector<128x8xf32>
    %139 = arith.addf %138, %135 : vector<128x8xf32>
    %c0_67 = arith.constant 0 : index
    %c24_68 = arith.constant 24 : index
    %140 = vector.load %arg10[%c0_67, %c24_68] : memref<128x32xf32, #tpu.memory_space<vmem>>, vector<128x8xf32>
    tpu.vector_store %arg10[%c0_67, %c24_68], %139 {strides = array<i32>} : memref<128x32xf32, #tpu.memory_space<vmem>>, vector<128x8xf32>,
    %c1_i32 = arith.constant 1 : i32
    %141 = arith.cmpi eq, %arg1, %c1_i32 : i32
    %142 = arith.extui %141 : i1 to i32
    %c0_i32_69 = arith.constant 0 : i32
    %143 = arith.cmpi ne, %142, %c0_i32_69 : i32
    scf.if %143 {
      %c0_70 = arith.constant 0 : index
      %c0_71 = arith.constant 0 : index
      %144 = vector.load %arg9[%c0_70, %c0_71] : memref<128x4xf32, #tpu.memory_space<vmem>>, vector<128x4xf32>
      %145 = tpu.reciprocal %144 {approx = true} : vector<128x4xf32> -> vector<128x4xf32>
      %c0_72 = arith.constant 0 : index
      %c0_73 = arith.constant 0 : index
      %146 = vector.load %arg10[%c0_72, %c0_73] : memref<128x32xf32, #tpu.memory_space<vmem>>, vector<128x32xf32>
      %147 = vector.extract_strided_slice %146 {offsets = [0, 0], sizes = [128, 8], strides = [1, 1]} : vector<128x32xf32> to vector<128x8xf32>
      %148 = vector.extract_strided_slice %145 {offsets = [0, 0], sizes = [128, 1], strides = [1, 1]} : vector<128x4xf32> to vector<128x1xf32>
      %149 = vector.broadcast %148 : vector<128x1xf32> to vector<128x8xf32>
      %150 = arith.mulf %147, %149 : vector<128x8xf32>
      %151 = vector.extract_strided_slice %146 {offsets = [0, 8], sizes = [128, 8], strides = [1, 1]} : vector<128x32xf32> to vector<128x8xf32>
      %152 = vector.extract_strided_slice %145 {offsets = [0, 1], sizes = [128, 1], strides = [1, 1]} : vector<128x4xf32> to vector<128x1xf32>
      %153 = vector.broadcast %152 : vector<128x1xf32> to vector<128x8xf32>
      %154 = arith.mulf %151, %153 : vector<128x8xf32>
      %155 = vector.extract_strided_slice %146 {offsets = [0, 16], sizes = [128, 8], strides = [1, 1]} : vector<128x32xf32> to vector<128x8xf32>
      %156 = vector.extract_strided_slice %145 {offsets = [0, 2], sizes = [128, 1], strides = [1, 1]} : vector<128x4xf32> to vector<128x1xf32>
      %157 = vector.broadcast %156 : vector<128x1xf32> to vector<128x8xf32>
      %158 = arith.mulf %155, %157 : vector<128x8xf32>
      %159 = vector.extract_strided_slice %146 {offsets = [0, 24], sizes = [128, 8], strides = [1, 1]} : vector<128x32xf32> to vector<128x8xf32>
      %160 = vector.extract_strided_slice %145 {offsets = [0, 3], sizes = [128, 1], strides = [1, 1]} : vector<128x4xf32> to vector<128x1xf32>
      %161 = vector.broadcast %160 : vector<128x1xf32> to vector<128x8xf32>
      %162 = arith.mulf %159, %161 : vector<128x8xf32>
      %163 = tpu.concatenate %150, %154, %158, %162 in 1 : vector<128x8xf32>, vector<128x8xf32>, vector<128x8xf32>, vector<128x8xf32> -> vector<128x32xf32>
      %c0_74 = arith.constant 0 : index
      %c0_75 = arith.constant 0 : index
      %164 = vector.load %arg6[%c0_74, %c0_75] : memref<1x32xf32, #tpu.memory_space<vmem>>, vector<1x32xf32>
      %165 = vector.broadcast %164 : vector<1x32xf32> to vector<128x32xf32>
      %166 = arith.addf %163, %165 : vector<128x32xf32>
      %c0_76 = arith.constant 0 : index
      %c0_77 = arith.constant 0 : index
      %167 = vector.load %arg7[%c0_76, %c0_77] : memref<128x32xf32, #tpu.memory_space<vmem>>, vector<128x32xf32>
      tpu.vector_store %arg7[%c0_76, %c0_77], %166 {strides = array<i32>} : memref<128x32xf32, #tpu.memory_space<vmem>>, vector<128x32xf32>,
    } else {
    }
    return
  }
  func.func @transform_0(%arg0: i32, %arg1: i32) -> (i32, i32) {
    %c0_i32 = arith.constant 0 : i32
    %c0_i32_0 = arith.constant 0 : i32
    return %arg0, %c0_i32 : i32, i32
  }
  func.func @transform_1(%arg0: i32, %arg1: i32) -> (i32, i32) {
    %c0_i32 = arith.constant 0 : i32
    %c0_i32_0 = arith.constant 0 : i32
    return %c0_i32, %arg1 : i32, i32
  }
  func.func @transform_2(%arg0: i32, %arg1: i32) -> (i32, i32) {
    %c0_i32 = arith.constant 0 : i32
    %c0_i32_0 = arith.constant 0 : i32
    return %arg1, %c0_i32 : i32, i32
  }
  func.func @transform_3(%arg0: i32, %arg1: i32) -> (i32, i32) {
    %c0_i32 = arith.constant 0 : i32
    return %arg0, %arg1 : i32, i32
  }
  func.func @transform_4(%arg0: i32, %arg1: i32) -> (i32, i32) {
    %c0_i32 = arith.constant 0 : i32
    %c0_i32_0 = arith.constant 0 : i32
    %c0_i32_1 = arith.constant 0 : i32
    return %c0_i32, %c0_i32_0 : i32, i32
  }
  func.func @transform_5(%arg0: i32, %arg1: i32) -> (i32, i32) {
    %c0_i32 = arith.constant 0 : i32
    %c0_i32_0 = arith.constant 0 : i32
    return %arg0, %c0_i32 : i32, i32
  }
}

</mosaic_0001>

<bundles_post_ra>
// kernel: tpu_custom_call.1
= control target key start
LH: loop header
LB: loop body
LE: loop exit
PB: predicated region body
PF: predicated region fallthrough
CT: control target
= control target key end

     0   :  { %s4993_s18 = smov 0   ;;  %s4995_s19 = smov 0   ;;  %s7748_s0 = inlined_call_operand.vmem [shape: f32[256,4], index: 0, kind: input, shape index: {}]   ;;  %s7749_s1 = inlined_call_operand.vmem [shape: f32[4,256], index: 1, kind: input, shape index: {}]   ;;  %s7750_s2 = inlined_call_operand.vmem [shape: f32[256,32], index: 2, kind: input, shape index: {}]   ;;  %s7751_s3 = inlined_call_operand.vmem [shape: s8[256,256], index: 3, kind: input, shape index: {}]   ;;  %s7752_s4 = inlined_call_operand.vmem [shape: f32[1,32], index: 4, kind: input, shape index: {}]   ;;  %s7753_s5 = inlined_call_operand.vmem [shape: f32[256,32], index: 5, kind: output, shape index: {}]  }
   0x1   :  { %s4997_s20 = smov 0   ;;  %s4999_s21 = smov 0  }
   0x2   :  { %s5001_s22 = smov 0   ;;  %s5003_s23 = smov 0  }
   0x3   :  { %s5005_s24 = smov 0  }
   0x4 LB: > { %s24_s25 = sadd.s32 1, %s4937_s22  ;;  %s27_s26 = sadd.s32 1, %s4941_s23  ;;  %s4945_s24 = sphi %s5005_s24, %s15_s24   ;;  %s4941_s23 = sphi %s5003_s23, %s7955_s23   ;;  %s4937_s22 = sphi %s5001_s22, %s7954_s22   ;;  %s4933_s21 = sphi %s4999_s21, %s7953_s21   ;;  %s4929_s20 = sphi %s4997_s20, %s7952_s20   ;;  %s4925_s19 = sphi %s4995_s19, %s7951_s19   ;;  %s4921_s18 = sphi %s4993_s18, %s7950_s18  }
   0x5   : > { %p25_p0 = scmp.ge.s32.totalorder %s24_s25, 2  ;;  %p121_p1 = scmp.ne.s32.totalorder %s4925_s19, %s4921_s18 }
   0x6   : > { %p122_p2 = scmp.eq.s32.totalorder %s4945_s24, 0  ;;  %s114_s30 = sadd.s32 1, %s4925_s19 }
   0x7   : > { %s7957_s25 = smov (%p25_p0, %s24_s25), 0  ;;  %s7959_s26 = smov (!%p25_p0, %s27_s26), %s4941_s23 }
   0x8   : > { %p123_p3 = por %p122_p2, %p121_p1  ;;  %p29_p4 = scmp.ge.s32.totalorder %s7959_s26, 2 }
   0x9   : > { %s110_s27 = ssub.s32 %s4937_s22, %s7957_s25  ;;  %p4291_p6 = scmp.ge.s32.totalorder %s4945_s24, 4 }
   0xa   : > { %s7961_s26 = smov (%p29_p4, %s7959_s26), 0 }
   0xb   : > { %s109_s28 = ssub.s32 %s4941_s23, %s7961_s26  ;;  %197 = sbr.rel (%p4291_p6) target bundleno = 26 (0x1a), region = 20 }
   0xc   : > { %s111_s29 = sor.u32 %s110_s27, %s109_s28 }
   0xd   : > { %p112_p5 = scmp.eq.s32.totalorder %s111_s29, 0 }
   0xf   : > { %s5044_s6 = scalar_select %p112_p5, %s4925_s19, %s114_s30  }
  0x10   : > { %225 = sbr.rel (!%p123_p3) target bundleno = 26 (0x1a), region = 36  ;;  %s227_s7 = sand.u32 (%p123_p3), 1, %s4925_s19  }
  0x11   : > { %s4309_s8 = sshll.u32 (%p123_p3), %s4941_s23, 3  ;;  %s4292_s9 = sshll.u32 (%p123_p3), %s227_s7, 5 }
  0x12   : > { %s232_s10 = sadd.s32 (%p123_p3), %s4937_s22, %s4309_s8  ;;  %s229_s15 = scalar_lea.vmem (%p123_p3), [#allocation5], %s4292_s9 }
  0x13   : > { %s4295_s11 = sshll.u32 (%p123_p3), %s232_s10, 3 }
  0x14   : > { %s234_s14 = scalar_lea.vmem (%p123_p3), %s7751_s3, %s4295_s11 }
  0x15   : > { %v269_v0 = vld [vmem:[%s234_s14] sm:$0xff]  ;;  %v271_v1 = vld [vmem:[%s234_s14 + $0x10] sm:$0xff] }
  0x16   : > { %v273_v2 = vld [vmem:[%s234_s14 + $0x20] sm:$0xff]  ;;  %270 = vst [vmem:[%s229_s15] sm:$0xff] %v269_v0  ;;  %v275_v3 = vld [vmem:[%s234_s14 + $0x30] sm:$0xff] }
  0x17   : > { %272 = vst [vmem:[%s229_s15 + $0x8] sm:$0xff] %v271_v1 }
  0x18   : > { %274 = vst [vmem:[%s229_s15 + $0x10] sm:$0xff] %v273_v2 }
  0x19   : > { %276 = vst [vmem:[%s229_s15 + $0x18] sm:$0xff] %v275_v3 }
  0x1a PF: > { %p4296_p7 = scmp.ge.s32.totalorder %s4945_s24, 1  ;;  %p281_p8 = scmp.lt.s32.totalorder %s4945_s24, 5 }
  0x1c   : > { %p282_p9 = pnand %p4296_p7, %p281_p8 }
  0x1e   : > { %285 = sbr.rel (%p282_p9) target bundleno = 4100 (0x1004), region = 74 }
  0x23   : > { %s288_s16 = sand.u32 1, %s4921_s18   ;;  %s4298_s17 = sshll.u32 %s4933_s21, 4 }
  0x24   : > { %s4297_s27 = sshll.u32 %s288_s16, 5  ;;  %p330_p10 = scmp.lt.s32.totalorder %s4298_s17, 31 }
  0x25   : > { %p335_p11 = scmp.lt.s32.totalorder %s4929_s20, 1  ;;  %s4301_s30 = sshll.u32 %s4929_s20, 4 }
  0x26   : > { %s7963_s17 = smov (!%p330_p10, %s4298_s17), 31  ;;  %p340_p12 = scmp.lt.s32.totalorder %s4301_s30, 31 }
  0x27   : > { %s336_s28 = scalar_select %p335_p11, %s4929_s20, 1 }
  0x28   : > { %s4299_s29 = sshll.u32 %s7963_s17, 3  ;;  %s7965_s30 = smov (!%p340_p12, %s4301_s30), 31 }
  0x29   : > { %s5063_s9 = scalar_lea.vmem %s7748_s0, %s4299_s29  ;;  %s4300_s10 = sshll.u32 %s336_s28, 2 }
  0x2a   : > { %s5068_s13 = scalar_lea.vmem %s7749_s1, %s4300_s10  ;;  %s5073_s14 = scalar_lea.vmem %s7753_s5, %s4299_s29 }
  0x2b   : > { %s4302_s15 = sshll.u32 %s7965_s30, 3  ;;  %s5080_s8 = scalar_lea.vmem [#allocation5], %s4297_s27 }
  0x2c   : > { %s5078_s7 = scalar_lea.vmem %s7750_s2, %s4302_s15  ;;  %p4305_p13 = scmp.ne.s32.totalorder %s4929_s20, 0 }
  0x2e   : > { %357 = sbr.rel (%p4305_p13) target bundleno = 100 (0x64), region = 82 }
  0x33   : > { %vm358_vm0 = vcmask 31744   ;;  %v4947_v4 = vmov -inf   ;;  %v4948_v5 = vmov 0.0   ;;  %vm391_vm1 = vcmask 261120  }
  0x34   : > { %359 = vst.msk [vmem:[#allocation2] sm:$0xff] %vm358_vm0, %v4947_v4 }
  0x35   : > { %360 = vst.msk [vmem:[#allocation2 + $0x8] sm:$0xff] %vm358_vm0, %v4947_v4 }
  0x36   : > { %361 = vst.msk [vmem:[#allocation2 + $0x10] sm:$0xff] %vm358_vm0, %v4947_v4 }
  0x37   : > { %362 = vst.msk [vmem:[#allocation2 + $0x18] sm:$0xff] %vm358_vm0, %v4947_v4 }
  0x38   : > { %363 = vst.msk [vmem:[#allocation2 + $0x20] sm:$0xff] %vm358_vm0, %v4947_v4 }
  0x39   : > { %364 = vst.msk [vmem:[#allocation2 + $0x28] sm:$0xff] %vm358_vm0, %v4947_v4 }
  0x3a   : > { %365 = vst.msk [vmem:[#allocation2 + $0x30] sm:$0xff] %vm358_vm0, %v4947_v4 }
  0x3b   : > { %366 = vst.msk [vmem:[#allocation2 + $0x38] sm:$0xff] %vm358_vm0, %v4947_v4 }
  0x3c   : > { %367 = vst.msk [vmem:[#allocation2 + $0x40] sm:$0xff] %vm358_vm0, %v4947_v4 }
  0x3d   : > { %368 = vst.msk [vmem:[#allocation2 + $0x48] sm:$0xff] %vm358_vm0, %v4947_v4 }
  0x3e   : > { %369 = vst.msk [vmem:[#allocation2 + $0x50] sm:$0xff] %vm358_vm0, %v4947_v4 }
  0x3f   : > { %370 = vst.msk [vmem:[#allocation2 + $0x58] sm:$0xff] %vm358_vm0, %v4947_v4 }
  0x40   : > { %371 = vst.msk [vmem:[#allocation2 + $0x60] sm:$0xff] %vm358_vm0, %v4947_v4 }
  0x41   : > { %372 = vst.msk [vmem:[#allocation2 + $0x68] sm:$0xff] %vm358_vm0, %v4947_v4 }
  0x42   : > { %373 = vst.msk [vmem:[#allocation2 + $0x70] sm:$0xff] %vm358_vm0, %v4947_v4 }
  0x43   : > { %374 = vst.msk [vmem:[#allocation2 + $0x78] sm:$0xff] %vm358_vm0, %v4947_v4 }
  0x44   : > { %375 = vst.msk [vmem:[#allocation3] sm:$0xff] %vm358_vm0, %v4948_v5 }
  0x45   : > { %376 = vst.msk [vmem:[#allocation3 + $0x8] sm:$0xff] %vm358_vm0, %v4948_v5 }
  0x46   : > { %377 = vst.msk [vmem:[#allocation3 + $0x10] sm:$0xff] %vm358_vm0, %v4948_v5 }
  0x47   : > { %378 = vst.msk [vmem:[#allocation3 + $0x18] sm:$0xff] %vm358_vm0, %v4948_v5 }
  0x48   : > { %379 = vst.msk [vmem:[#allocation3 + $0x20] sm:$0xff] %vm358_vm0, %v4948_v5 }
  0x49   : > { %380 = vst.msk [vmem:[#allocation3 + $0x28] sm:$0xff] %vm358_vm0, %v4948_v5 }
  0x4a   : > { %381 = vst.msk [vmem:[#allocation3 + $0x30] sm:$0xff] %vm358_vm0, %v4948_v5 }
  0x4b   : > { %382 = vst.msk [vmem:[#allocation3 + $0x38] sm:$0xff] %vm358_vm0, %v4948_v5 }
  0x4c   : > { %383 = vst.msk [vmem:[#allocation3 + $0x40] sm:$0xff] %vm358_vm0, %v4948_v5 }
  0x4d   : > { %384 = vst.msk [vmem:[#allocation3 + $0x48] sm:$0xff] %vm358_vm0, %v4948_v5 }
  0x4e   : > { %385 = vst.msk [vmem:[#allocation3 + $0x50] sm:$0xff] %vm358_vm0, %v4948_v5 }
  0x4f   : > { %386 = vst.msk [vmem:[#allocation3 + $0x58] sm:$0xff] %vm358_vm0, %v4948_v5 }
  0x50   : > { %387 = vst.msk [vmem:[#allocation3 + $0x60] sm:$0xff] %vm358_vm0, %v4948_v5 }
  0x51   : > { %388 = vst.msk [vmem:[#allocation3 + $0x68] sm:$0xff] %vm358_vm0, %v4948_v5 }
  0x52   : > { %389 = vst.msk [vmem:[#allocation3 + $0x70] sm:$0xff] %vm358_vm0, %v4948_v5 }
  0x53   : > { %390 = vst.msk [vmem:[#allocation3 + $0x78] sm:$0xff] %vm358_vm0, %v4948_v5 }
  0x54   : > { %392 = vst.msk [vmem:[#allocation4] sm:$0xff] %vm391_vm1, %v4948_v5 }
  0x55   : > { %393 = vst.msk [vmem:[#allocation4 + $0x8] sm:$0xff] %vm391_vm1, %v4948_v5 }
  0x56   : > { %394 = vst.msk [vmem:[#allocation4 + $0x10] sm:$0xff] %vm391_vm1, %v4948_v5 }
  0x57   : > { %395 = vst.msk [vmem:[#allocation4 + $0x18] sm:$0xff] %vm391_vm1, %v4948_v5 }
  0x58   : > { %396 = vst.msk [vmem:[#allocation4 + $0x20] sm:$0xff] %vm391_vm1, %v4948_v5 }
  0x59   : > { %397 = vst.msk [vmem:[#allocation4 + $0x28] sm:$0xff] %vm391_vm1, %v4948_v5 }
  0x5a   : > { %398 = vst.msk [vmem:[#allocation4 + $0x30] sm:$0xff] %vm391_vm1, %v4948_v5 }
  0x5b   : > { %399 = vst.msk [vmem:[#allocation4 + $0x38] sm:$0xff] %vm391_vm1, %v4948_v5 }
  0x5c   : > { %400 = vst.msk [vmem:[#allocation4 + $0x40] sm:$0xff] %vm391_vm1, %v4948_v5 }
  0x5d   : > { %401 = vst.msk [vmem:[#allocation4 + $0x48] sm:$0xff] %vm391_vm1, %v4948_v5 }
  0x5e   : > { %402 = vst.msk [vmem:[#allocation4 + $0x50] sm:$0xff] %vm391_vm1, %v4948_v5 }
  0x5f   : > { %403 = vst.msk [vmem:[#allocation4 + $0x58] sm:$0xff] %vm391_vm1, %v4948_v5 }
  0x60   : > { %404 = vst.msk [vmem:[#allocation4 + $0x60] sm:$0xff] %vm391_vm1, %v4948_v5 }
  0x61   : > { %405 = vst.msk [vmem:[#allocation4 + $0x68] sm:$0xff] %vm391_vm1, %v4948_v5 }
  0x62   : > { %406 = vst.msk [vmem:[#allocation4 + $0x70] sm:$0xff] %vm391_vm1, %v4948_v5 }
  0x63   : > { %407 = vst.msk [vmem:[#allocation4 + $0x78] sm:$0xff] %vm391_vm1, %v4948_v5 }
  0x64 PF: > { %v5132_v6 = vld [vmem:[%s5063_s9 + $0x10] sm:$0xff]  ;;  %v5135_v7 = vld [vmem:[%s5063_s9] sm:$0xff]  ;;  %v4949_v8 = vmov 0   ;;  %v5147_v10 = vld [vmem:[%s5063_s9 + $0x18] sm:$0xff]  ;;  %v7804_v62 = vmov 0  ;;  %s4951_s27 = smov 120  }
  0x65   : > { %4383 = vset.pattern.permute.xlu1 %v4949_v8  ;;  %4382 = vset.pattern.permute.xlu0 %v4949_v8  ;;  %v5140_v9 = vld [vmem:[%s5063_s9 + $0x20] sm:$0xff]  ;;  %v5150_v11 = vld [vmem:[%s5063_s9 + $0x8] sm:$0xff]  ;;  %v5159_v13 = vld [vmem:[%s5063_s9 + $0x38] sm:$0xff]  ;;  %s4952_s28 = smov 8   ;;  %s4954_s29 = smov 112  }
  0x66   : > { %461 = vperm.xlu1 %4383, %v5132_v6   ;;  %451 = vperm.xlu0 %4382, %v5135_v7   ;;  %v5153_v12 = vld [vmem:[%s5063_s9 + $0x28] sm:$0xff]  ;;  %v5162_v14 = vld [vmem:[%s5063_s9 + $0x30] sm:$0xff]  ;;  %v5165_v15 = vld [vmem:[%s5063_s9 + $0x40] sm:$0xff]  ;;  %s4955_s30 = smov 16   ;;  %s4957_s10 = smov 104  }
  0x67   : > { %4384 = vset.pattern.permute.xlu2 %v4949_v8  ;;  %v5171_v16 = vld [vmem:[%s5063_s9 + $0x50] sm:$0xff]  ;;  %v5174_v17 = vld [vmem:[%s5063_s9 + $0x48] sm:$0xff]  ;;  %v5177_v18 = vld [vmem:[%s5063_s9 + $0x58] sm:$0xff]  ;;  %p4306_p0 = scmp.ne.s32.totalorder %s4929_s20, 1 }
  0x68   : > { %471 = vperm.xlu2 %4384, %v5140_v9   ;;  %v5183_v19 = vld [vmem:[%s5063_s9 + $0x68] sm:$0xff]  ;;  %v5186_v20 = vld [vmem:[%s5063_s9 + $0x60] sm:$0xff]  ;;  %v422_v21 = vld [vmem:[%s5063_s9 + $0x70] sm:$0xff] }
  0x69   : > { %v423_v22 = vld [vmem:[%s5063_s9 + $0x78] sm:$0xff]  ;;  %v441_v23 = vld [vmem:[%s5080_s8] sm:$0xff]  ;;  %v442_v25 = vld [vmem:[%s5080_s8 + $0x8] sm:$0xff] }
  0x6a   : > { %vm445_vm2 = vnez %v441_v23  ;;  %vm446_vm3 = vnez %v442_v25  ;;  %v5200_v38 = vld [vmem:[%s5068_s13] sm:$0xf]  ;;  %v443_v47 = vld [vmem:[%s5080_s8 + $0x10] sm:$0xff]  ;;  %v444_v23 = vld [vmem:[%s5080_s8 + $0x18] sm:$0xff] }
  0x6b   : > { %v578_v24 = vsel %vm445_vm2, 16843009, %v4949_v8  ;;  %v5196_v28 = vsel %vm446_vm3, 16843009, %v4949_v8  ;;  %v5205_v43 = vperm.slane %v5200_v38, 0  ;;  %vm447_vm8 = vnez %v443_v47 }
  0x6c   : > { %v584_v26 = vunpack.c.2.s8 %v578_v24  ;;  %v582_v27 = vunpack.c.0.s8 %v578_v24  ;;  %v586_v31 = vunpack.c.0.s8 %v5196_v28  ;;  %v583_v34 = vunpack.c.1.s8 %v578_v24 }
  0x6d   : > { %v585_v36 = vunpack.c.3.s8 %v578_v24  ;;  %v589_v45 = vunpack.c.3.s8 %v5196_v28  ;;  %v588_v46 = vunpack.c.2.s8 %v5196_v28  ;;  %v5228_v3 = vsel %vm447_vm8, 16843009, %v4949_v8 }
  0x6e   : > { %466 = vperm.xlu1 %4383, %v5147_v10   ;;  %456 = vperm.xlu0 %4382, %v5150_v11   ;;  %v602_v29 = vpack.c.b16 %v584_v26, %v584_v26  ;;  %v598_v30 = vpack.c.b16 %v582_v27, %v582_v27  ;;  %v606_v35 = vpack.c.b16 %v586_v31, %v586_v31  ;;  %v592_v26 = vunpack.c.2.s8 %v5228_v3 }
  0x6f   : > { %v600_v37 = vpack.c.b16 %v583_v34, %v583_v34  ;;  %v604_v42 = vpack.c.b16 %v585_v36, %v585_v36  ;;  %v612_v58 = vpack.c.b16 %v589_v45, %v589_v45  ;;  %v610_v59 = vpack.c.b16 %v588_v46, %v588_v46 }
  0x70   : > { %476 = vperm.xlu2 %4384, %v5153_v12   ;;  %v603_v32 = vpack.c.b8 %v602_v29, %v602_v29  ;;  %v599_v33 = vpack.c.b8 %v598_v30, %v598_v30  ;;  %v607_v39 = vpack.c.b8 %v606_v35, %v606_v35  ;;  %v591_v27 = vunpack.c.1.s8 %v5228_v3 }
  0x71   : > { %v601_v44 = vpack.c.b8 %v600_v37, %v600_v37  ;;  %v605_v54 = vpack.c.b8 %v604_v42, %v604_v42  ;;  %v613_v24 = vpack.c.b8 %v612_v58, %v612_v58  ;;  %v611_v25 = vpack.c.b8 %v610_v59, %v610_v59 }
  0x72   : > { %vm632_vm4 = vnez %v603_v32  ;;  %vm630_vm5 = vnez %v599_v33  ;;  %vm634_vm6 = vnez %v607_v39  ;;  %vm448_vm12 = vnez %v444_v23 }
  0x73   : > { %v648_v40 = vsel %vm632_vm4, 16843009, %v4949_v8  ;;  %v646_v41 = vsel %vm630_vm5, 16843009, %v4949_v8  ;;  %vm631_vm7 = vnez %v601_v44  ;;  %v650_v57 = vsel %vm634_vm6, 16843009, %v4949_v8 }
  0x74   : > { %v664_v49 = vunpack.c.0.s8 %v648_v40  ;;  %v662_v50 = vunpack.c.0.s8 %v646_v41  ;;  %v647_v1 = vsel %vm631_vm7, 16843009, %v4949_v8  ;;  %vm5223_vm11 = vnez %v605_v54 }
  0x75   : > { %v663_v33 = vunpack.c.0.s8 %v647_v1  ;;  %v7811_v35 = vmov 0  ;;  %v649_v36 = vsel %vm5223_vm11, 16843009, %v4949_v8  ;;  %vm637_vm14 = vnez %v613_v24 }
  0x76   : > { %486 = vperm.xlu1 %4383, %v5159_v13   ;;  %481 = vperm.xlu0 %4382, %v5162_v14   ;;  %vm5214_vm9 = vcmp.ne.s32.totalorder %v664_v49, 0  ;;  %vm5218_vm10 = vcmp.ne.s32.totalorder %v662_v50, 0  ;;  %vm636_vm15 = vnez %v611_v25  ;;  %v618_v40 = vpack.c.b16 %v592_v26, %v592_v26 }
  0x77   : > { %v7805_v62 = vsel %vm5214_vm9, 4294967295, %v7804_v62  ;;  %v616_v41 = vpack.c.b16 %v591_v27, %v591_v27  ;;  %v5254_v45 = vsel %vm448_vm12, 16843009, %v4949_v8  ;;  %vm5260_vm0 = vcmp.ne.s32.totalorder %v663_v33, 0 }
  0x78   : > { %491 = vperm.xlu2 %4384, %v5165_v15   ;;  %7806 = vst [vmem:[#allocation6_spill] sm:$0xff] %v7805_v62  ;;  %v7814_v47 = vmov 0  ;;  %v590_v49 = vunpack.c.0.s8 %v5228_v3  ;;  %v619_v54 = vpack.c.b8 %v618_v40, %v618_v40  ;;  %v7817_v1 = vmov 0 }
  0x79   : > { %v7815_v47 = vsel %vm5260_vm0, 4294967295, %v7814_v47  ;;  %v7823_v33 = vmov 0 }
  0x7a   : > { %7816 = vst [vmem:[#allocation8_spill] sm:$0xff] %v7815_v47  ;;  %vm640_vm3 = vnez %v619_v54 }
  0x7b   : > { %v656_v40 = vsel %vm640_vm3, 16843009, %v4949_v8 }
  0x7c   : > { %v672_v54 = vunpack.c.0.s8 %v656_v40 }
  0x7e   : > { %501 = vperm.xlu1 %4383, %v5171_v16   ;;  %496 = vperm.xlu0 %4382, %v5174_v17   ;;  %vm5324_vm12 = vcmp.ne.s32.totalorder %v672_v54, 0 }
  0x80   : > { %506 = vperm.xlu2 %4384, %v5177_v18  }
  0x86   : > { %516 = vperm.xlu1 %4383, %v5183_v19   ;;  %511 = vperm.xlu0 %4382, %v5186_v20  }
  0x88   : > { %521 = vperm.xlu2 %4384, %v422_v21   ;;  %v666_v21 = vunpack.c.0.s8 %v650_v57  ;;  %v594_v57 = vunpack.c.0.s8 %v5254_v45 }
  0x8a   : > { %vm5245_vm13 = vcmp.ne.s32.totalorder %v666_v21, 0  ;;  %v622_v24 = vpack.c.b16 %v594_v57, %v594_v57 }
  0x8b   : > { %v7812_v35 = vsel %vm5245_vm13, 4294967295, %v7811_v35 }
  0x8c   : > { %7813 = vst [vmem:[#allocation7_spill] sm:$0xff] %v7812_v35 }
  0x8e   : > { %526 = vperm.xlu0 %4382, %v423_v22   ;;  %v587_v22 = vunpack.c.1.s8 %v5196_v28 }
  0x90   : > { %v608_v37 = vpack.c.b16 %v587_v22, %v587_v22 }
  0xc2   : > { %v472_v48 = vpop.permute.xlu2 %471 }
  0xc3   : > { %v534_v51 = vadd.f32 %v5205_v43, %v472_v48  ;;  %v665_v48 = vunpack.c.0.s8 %v649_v36 }
  0xc5   : > { %v550_v0 = vmul.f32 0.2, %v534_v51  ;;  %vm5275_vm1 = vcmp.ne.s32.totalorder %v665_v48, 0  ;;  %v597_v48 = vunpack.c.3.s8 %v5254_v45 }
  0xc6   : > { %v7818_v1 = vsel %vm5275_vm1, 4294967295, %v7817_v1 }
  0xc7   : > { %v566_v32 = vmax.f32 %v534_v51, %v550_v0  ;;  %v653_v51 = vsel %vm637_vm14, 16843009, %v4949_v8  ;;  %7819 = vst [vmem:[#allocation9_spill] sm:$0xff] %v7818_v1 }
  0xc8   : > { %v669_v0 = vunpack.c.0.s8 %v653_v51 }
  0xc9   : > { %v5258_v46 = vsel %vm5245_vm13, %v566_v32, -1e+30  ;;  %v7820_v32 = vmov 0 }
  0xca   : > { %v477_v39 = vpop.permute.xlu2 %476  ;;  %vm5285_vm5 = vcmp.ne.s32.totalorder %v669_v0, 0  ;;  %v7756_v0 = vmov 1  }
  0xcb   : > { %v7821_v32 = vsel %vm5285_vm5, 4294967295, %v7820_v32  ;;  %4386 = vset.pattern.permute.xlu1 %v7756_v0  ;;  %4385 = vset.pattern.permute.xlu0 %v7756_v0 }
  0xcc   : > { %7822 = vst [vmem:[#allocation10_spill] sm:$0xff] %v7821_v32  ;;  %4387 = vset.pattern.permute.xlu2 %v7756_v0 }
  0xd8   : > { %v462_v52 = vpop.permute.xlu1 %461  ;;  %v452_v53 = vpop.permute.xlu0 %451 }
  0xd9   : > { %v532_v55 = vadd.f32 %v5205_v43, %v462_v52  ;;  %v530_v56 = vadd.f32 %v5205_v43, %v452_v53  ;;  %v652_v52 = vsel %vm636_vm15, 16843009, %v4949_v8  ;;  %v609_v53 = vpack.c.b8 %v608_v37, %v608_v37 }
  0xda   : > { %v668_v2 = vunpack.c.0.s8 %v652_v52 }
  0xdb   : > { %v548_v60 = vmul.f32 0.2, %v532_v55  ;;  %v546_v61 = vmul.f32 0.2, %v530_v56  ;;  %vm635_vm2 = vnez %v609_v53 }
  0xdc   : > { %vm5289_vm6 = vcmp.ne.s32.totalorder %v668_v2, 0 }
  0xdd   : > { %v564_v4 = vmax.f32 %v532_v55, %v548_v60  ;;  %v562_v5 = vmax.f32 %v530_v56, %v546_v61  ;;  %v617_v55 = vpack.c.b8 %v616_v41, %v616_v41  ;;  %v595_v56 = vunpack.c.1.s8 %v5254_v45 }
  0xde   : > { %v7824_v33 = vsel %vm5289_vm6, 4294967295, %v7823_v33 }
  0xdf   : > { %v5236_v29 = vsel %vm5214_vm9, %v564_v4, -1e+30  ;;  %v5240_v30 = vsel %vm5218_vm10, %v562_v5, -1e+30  ;;  %v614_v4 = vpack.c.b16 %v590_v49, %v590_v49  ;;  %v5280_v5 = vadd.f32 %v5205_v43, %v477_v39  ;;  %7825 = vst [vmem:[#allocation11_spill] sm:$0xff] %v7824_v33 }
  0xe0   : > { %v467_v31 = vpop.permute.xlu1 %466  ;;  %730 = vmax.xlane.f32.xlu0 %v5236_v29  ;;  %726 = vmax.xlane.f32.xlu1 %v5240_v30  ;;  %v457_v28 = vpop.permute.xlu0 %456  ;;  %vm639_vm4 = vnez %v617_v55  ;;  %v624_v23 = vpack.c.b16 %v595_v56, %v595_v56 }
  0xe1   : > { %v531_v34 = vadd.f32 %v5205_v43, %v457_v28  ;;  %v533_v42 = vadd.f32 %v5205_v43, %v467_v31  ;;  %v593_v31 = vunpack.c.3.s8 %v5228_v3  ;;  %v492_v28 = vpop.permute.xlu2 %491  ;;  %v615_v36 = vpack.c.b8 %v614_v4, %v614_v4 }
  0xe2   : > { %v655_v41 = vsel %vm639_vm4, 16843009, %v4949_v8  ;;  %v551_v3 = vmul.f32 0.2, %v5280_v5  ;;  %v538_v2 = vadd.f32 %v5205_v43, %v492_v28  ;;  %v628_v4 = vpack.c.b16 %v597_v48, %v597_v48 }
  0xe3   : > { %v547_v44 = vmul.f32 0.2, %v531_v34  ;;  %v549_v58 = vmul.f32 0.2, %v533_v42  ;;  %v671_v56 = vunpack.c.0.s8 %v655_v41  ;;  %vm5315_vm7 = vnez %v615_v36 }
  0xe4   : > { %v554_v36 = vmul.f32 0.2, %v538_v2  ;;  %v629_v40 = vpack.c.b8 %v628_v4, %v628_v4  ;;  %v596_v41 = vunpack.c.2.s8 %v5254_v45 }
  0xe5   : > { %v563_v50 = vmax.f32 %v531_v34, %v547_v44  ;;  %v565_v27 = vmax.f32 %v533_v42, %v549_v58  ;;  %v651_v34 = vsel %vm635_vm2, 16843009, %v4949_v8  ;;  %v625_v42 = vpack.c.b8 %v624_v23, %v624_v23 }
  0xe6   : > { %v623_v44 = vpack.c.b8 %v622_v24, %v622_v24  ;;  %v667_v55 = vunpack.c.0.s8 %v651_v34  ;;  %v567_v23 = vmax.f32 %v5280_v5, %v551_v3  ;;  %v7828_v24 = vmov 0 }
  0xe7   : > { %v5271_v59 = vsel %vm5260_vm0, %v563_v50, -1e+30  ;;  %v5304_v50 = vsel %vm5275_vm1, %v565_v27, -1e+30  ;;  %vm643_vm8 = vnez %v625_v42  ;;  %v7829_v24 = vsel %vm5324_vm12, 4294967295, %v7828_v24 }
  0xe8   : > { %v487_v60 = vpop.permute.xlu1 %486  ;;  %734 = vmax.xlane.f32.xlu1 %v5258_v46  ;;  %728 = vmax.xlane.f32.xlu2 %v5271_v59  ;;  %v482_v61 = vpop.permute.xlu0 %481  ;;  %vm642_vm11 = vnez %v623_v44  ;;  %7830 = vst [vmem:[#allocation12_spill] sm:$0xff] %v7829_v24  ;;  %vm5328_vm14 = vcmp.ne.s32.totalorder %v667_v55, 0  ;;  %vm5332_vm15 = vcmp.ne.s32.totalorder %v671_v56, 0  ;;  %v654_v27 = vsel %vm5315_vm7, 16843009, %v4949_v8 }
  0xe9   : > { %v537_v21 = vadd.f32 %v5205_v43, %v487_v60  ;;  %v536_v22 = vadd.f32 %v5205_v43, %v482_v61  ;;  %v620_v61 = vpack.c.b16 %v593_v31, %v593_v31  ;;  %v659_v5 = vsel %vm643_vm8, 16843009, %v4949_v8 }
  0xea   : > { %v658_v34 = vsel %vm642_vm11, 16843009, %v4949_v8  ;;  %v5348_v42 = vsel %vm5328_vm14, %v567_v23, -1e+30  ;;  %v670_v48 = vunpack.c.0.s8 %v654_v27  ;;  %v675_v45 = vunpack.c.0.s8 %v659_v5 }
  0xeb   : > { %v553_v25 = vmul.f32 0.2, %v537_v21  ;;  %v552_v26 = vmul.f32 0.2, %v536_v22  ;;  %v674_v54 = vunpack.c.0.s8 %v658_v34  ;;  %vm645_vm3 = vnez %v629_v40 }
  0xec   : > { %vm5360_vm4 = vcmp.ne.s32.totalorder %v670_v48, 0  ;;  %vm5364_vm7 = vcmp.ne.s32.totalorder %v675_v45, 0  ;;  %v7843_v23 = vmov 0 }
  0xed   : > { %v569_v37 = vmax.f32 %v537_v21, %v553_v25  ;;  %v568_v39 = vmax.f32 %v536_v22, %v552_v26  ;;  %v7831_v25 = vmov 0  ;;  %v7834_v26 = vmov 0 }
  0xee   : > { %v7832_v25 = vsel %vm5328_vm14, 4294967295, %v7831_v25  ;;  %v7835_v26 = vsel %vm5332_vm15, 4294967295, %v7834_v26  ;;  %vm5368_vm8 = vcmp.ne.s32.totalorder %v674_v54, 0 }
  0xef   : > { %v5300_v49 = vsel %vm5285_vm5, %v569_v37, -1e+30  ;;  %v5308_v51 = vsel %vm5289_vm6, %v568_v39, -1e+30  ;;  %7833 = vst [vmem:[#allocation13_spill] sm:$0xff] %v7832_v25  ;;  %v507_v37 = vpop.permute.xlu2 %506  ;;  %v621_v39 = vpack.c.b8 %v620_v61, %v620_v61  ;;  %v7844_v23 = vsel %vm5368_vm8, 4294967295, %v7843_v23 }
  0xf0   : > { %v502_v52 = vpop.permute.xlu1 %501  ;;  %740 = vmax.xlane.f32.xlu1 %v5300_v49  ;;  %732 = vmax.xlane.f32.xlu2 %v5304_v50  ;;  %v497_v53 = vpop.permute.xlu0 %496  ;;  %7836 = vst [vmem:[#allocation14_spill] sm:$0xff] %v7835_v26  ;;  %v541_v60 = vadd.f32 %v5205_v43, %v507_v37 }
  0xf1   : > { %v540_v57 = vadd.f32 %v5205_v43, %v502_v52  ;;  %738 = vmax.xlane.f32.xlu0 %v5308_v51  ;;  %v539_v58 = vadd.f32 %v5205_v43, %v497_v53  ;;  %vm641_vm2 = vnez %v621_v39  ;;  %7845 = vst [vmem:[#allocation17_spill] sm:$0xff] %v7844_v23 }
  0xf3   : > { %v556_v21 = vmul.f32 0.2, %v540_v57  ;;  %v555_v22 = vmul.f32 0.2, %v539_v58 }
  0xf5   : > { %v572_v31 = vmax.f32 %v540_v57, %v556_v21  ;;  %v571_v28 = vmax.f32 %v539_v58, %v555_v22  ;;  %v570_v57 = vmax.f32 %v538_v2, %v554_v36  ;;  %v626_v58 = vpack.c.b16 %v596_v41, %v596_v41 }
  0xf6   : > { %v7837_v21 = vmov 0  ;;  %v7840_v22 = vmov 0  ;;  %v557_v36 = vmul.f32 0.2, %v541_v60 }
  0xf7   : > { %v5344_v3 = vsel %vm5324_vm12, %v572_v31, -1e+30  ;;  %v5352_v44 = vsel %vm5332_vm15, %v571_v28, -1e+30  ;;  %v7838_v21 = vsel %vm5360_vm4, 4294967295, %v7837_v21  ;;  %v7841_v22 = vsel %vm5364_vm7, 4294967295, %v7840_v22  ;;  %v522_v40 = vpop.permute.xlu2 %521 }
  0xf8   : > { %v517_v52 = vpop.permute.xlu1 %516  ;;  %746 = vmax.xlane.f32.xlu1 %v5344_v3  ;;  %736 = vmax.xlane.f32.xlu2 %v5348_v42  ;;  %v512_v53 = vpop.permute.xlu0 %511  ;;  %7839 = vst [vmem:[#allocation15_spill] sm:$0xff] %v7838_v21  ;;  %v657_v31 = vsel %vm641_vm2, 16843009, %v4949_v8  ;;  %v661_v28 = vsel %vm645_vm3, 16843009, %v4949_v8  ;;  %v627_v34 = vpack.c.b8 %v626_v58, %v626_v58  ;;  %v544_v45 = vadd.f32 %v5205_v43, %v522_v40 }
  0xf9   : > { %v543_v55 = vadd.f32 %v5205_v43, %v517_v52  ;;  %744 = vmax.xlane.f32.xlu0 %v5352_v44  ;;  %v542_v56 = vadd.f32 %v5205_v43, %v512_v53  ;;  %7842 = vst [vmem:[#allocation16_spill] sm:$0xff] %v7841_v22  ;;  %v5376_v5 = vsel %vm5360_vm4, %v570_v57, -1e+30  ;;  %v673_v48 = vunpack.c.0.s8 %v657_v31 }
  0xfa   : > { %v677_v52 = vunpack.c.0.s8 %v661_v28  ;;  %vm644_vm11 = vnez %v627_v34  ;;  %v7849_v57 = vmov 0  ;;  %v7852_v31 = vmov 0  ;;  %v5429_v34 = vld [vmem:[#allocation2] sm:$0xff] }
  0xfb   : > { %v559_v61 = vmul.f32 0.2, %v543_v55  ;;  %v558_v4 = vmul.f32 0.2, %v542_v56  ;;  %vm5391_vm2 = vcmp.ne.s32.totalorder %v673_v48, 0  ;;  %v5447_v48 = vld [vmem:[#allocation2 + $0x38] sm:$0xff] }
  0xfc   : > { %vm5395_vm3 = vcmp.ne.s32.totalorder %v677_v52, 0  ;;  %v5449_v52 = vld [vmem:[#allocation2 + $0x18] sm:$0xff] }
  0xfd   : > { %v575_v2 = vmax.f32 %v543_v55, %v559_v61  ;;  %v574_v27 = vmax.f32 %v542_v56, %v558_v4  ;;  %v573_v55 = vmax.f32 %v541_v60, %v557_v36  ;;  %v7846_v56 = vmov 0 }
  0xfe   : > { %v7847_v56 = vsel %vm5391_vm2, 4294967295, %v7846_v56  ;;  %v7850_v57 = vsel %vm5395_vm3, 4294967295, %v7849_v57  ;;  %v660_v61 = vsel %vm644_vm11, 16843009, %v4949_v8  ;;  %v560_v4 = vmul.f32 0.2, %v544_v45 }
  0xff   : > { %v5380_v37 = vsel %vm5364_vm7, %v575_v2, -1e+30  ;;  %v5384_v39 = vsel %vm5368_vm8, %v574_v27, -1e+30  ;;  %7848 = vst [vmem:[#allocation18_spill] sm:$0xff] %v7847_v56  ;;  %v676_v60 = vunpack.c.0.s8 %v660_v61  ;;  %vm7788_vm11 = vcmask 7168  }
 0x100   : > { %752 = vmax.xlane.f32.xlu1 %v5380_v37  ;;  %742 = vmax.xlane.f32.xlu2 %v5376_v5  ;;  %v527_v41 = vpop.permute.xlu0 %526  ;;  %7851 = vst [vmem:[#allocation19_spill] sm:$0xff] %v7850_v57  ;;  %v5402_v2 = vsel %vm5391_vm2, %v573_v55, -1e+30  ;;  %v576_v27 = vmax.f32 %v544_v45, %v560_v4 }
 0x101   : > { %750 = vmax.xlane.f32.xlu0 %v5384_v39  ;;  %v545_v53 = vadd.f32 %v5205_v43, %v527_v41  ;;  %vm5410_vm8 = vcmp.ne.s32.totalorder %v676_v60, 0  ;;  %v5466_v60 = vld [vmem:[#allocation2 + $0x50] sm:$0xff] }
 0x102   : > { %v7853_v31 = vsel %vm5410_vm8, 4294967295, %v7852_v31  ;;  %v5416_v28 = vsel %vm5410_vm8, %v576_v27, -1e+30  ;;  %v5468_v27 = vld [vmem:[#allocation2 + $0x28] sm:$0xff] }
 0x103   : > { %v561_v54 = vmul.f32 0.2, %v545_v53  ;;  %7854 = vst [vmem:[#allocation20_spill] sm:$0xff] %v7853_v31 }
 0x105   : > { %v577_v58 = vmax.f32 %v545_v53, %v561_v54  ;;  %v5451_v53 = vld [vmem:[#allocation2 + $0x30] sm:$0xff] }
 0x107   : > { %v5406_v43 = vsel %vm5395_vm3, %v577_v58, -1e+30 }
 0x108   : > { %748 = vmax.xlane.f32.xlu2 %v5402_v2 }
 0x109   : > { %756 = vmax.xlane.f32.xlu0 %v5406_v43 }
 0x110   : > { %754 = vmax.xlane.f32.xlu2 %v5416_v28 }
 0x119   : > { %1278 = vperm.xlu1 %4386, %v5150_v11   ;;  %v712_v11 = vld [vmem:[#allocation2 + $0x10] sm:$0xff] }
 0x11d   : > { %1274 = vperm.xlu0 %4385, %v5135_v7  }
 0x121   : > { %1286 = vperm.xlu1 %4386, %v5147_v10  }
 0x125   : > { %1294 = vperm.xlu0 %4385, %v5153_v12  }
 0x128   : > { %1282 = vperm.xlu2 %4387, %v5132_v6  }
 0x129   : > { %1298 = vperm.xlu1 %4386, %v5162_v14  }
 0x12d   : > { %4390 = vset.pattern.permute.xlu0 %v4949_v8 }
 0x130   : > { %1290 = vperm.xlu2 %4387, %v5140_v9   ;;  %v714_v9 = vld [vmem:[#allocation2 + $0x20] sm:$0xff] }
 0x131   : > { %4388 = vset.pattern.permute.xlu1 %v4949_v8 }
 0x138   : > { %4389 = vset.pattern.permute.xlu2 %v4949_v8  ;;  %v5438_v8 = vld [vmem:[#allocation2 + $0x8] sm:$0xff] }
 0x153   : > { %v727_v7 = vpop.xlane.xlu1 %726  ;;  %v731_v10 = vpop.xlane.xlu0 %730 }
 0x154   : > { %v5432_v12 = vmax.f32 %v5429_v34, %v727_v7  ;;  %v760_v6 = vmax.f32 %v712_v11, %v731_v10  ;;  %v5470_v7 = vld [vmem:[#allocation2 + $0x48] sm:$0xff] }
 0x156   : > { %1047 = vst.msk [vmem:[#allocation2] sm:$0xff] %vm7788_vm11, %v5432_v12  ;;  %824 = vperm.xlu1 %4388, %v5432_v12   ;;  %834 = vperm.xlu0 %4390, %v760_v6   ;;  %v776_v0 = vsub.f32 %v712_v11, %v760_v6 }
 0x157   : > { %1049 = vst.msk [vmem:[#allocation2 + $0x10] sm:$0xff] %vm7788_vm11, %v760_v6 }
 0x158   : > { %v794_v57 = vmul.f32 1.442695, %v776_v0 }
 0x15a   : > { %4520 = vpow2.f32 %v794_v57 }
 0x15b   : > { %v735_v14 = vpop.xlane.xlu1 %734  ;;  %v729_v36 = vpop.xlane.xlu2 %728 }
 0x15c   : > { %v762_v40 = vmax.f32 %v714_v9, %v735_v14  ;;  %v5441_v41 = vmax.f32 %v5438_v8, %v729_v36 }
 0x15e   : > { %1051 = vst.msk [vmem:[#allocation2 + $0x20] sm:$0xff] %vm7788_vm11, %v762_v40  ;;  %829 = vperm.xlu2 %4389, %v5441_v41   ;;  %844 = vperm.xlu0 %4390, %v762_v40   ;;  %v778_v0 = vsub.f32 %v714_v9, %v762_v40  ;;  %v774_v40 = vsub.f32 %v5429_v34, %v5432_v12 }
 0x15f   : > { %1048 = vst.msk [vmem:[#allocation2 + $0x8] sm:$0xff] %vm7788_vm11, %v5441_v41 }
 0x160   : > { %v5521_v57 = vpop.eup %4520  ;;  %v790_v34 = vmul.f32 1.442695, %v774_v40 }
 0x163   : > { %v741_v45 = vpop.xlane.xlu1 %740  ;;  %v733_v54 = vpop.xlane.xlu2 %732 }
 0x164   : > { %v765_v55 = vmax.f32 %v5447_v48, %v741_v45  ;;  %v5455_v58 = vmax.f32 %v5449_v52, %v733_v54  ;;  %v739_v61 = vpop.xlane.xlu0 %738 }
 0x165   : > { %v5458_v4 = vmax.f32 %v5451_v53, %v739_v61 }
 0x166   : > { %1054 = vst.msk [vmem:[#allocation2 + $0x38] sm:$0xff] %vm7788_vm11, %v765_v55  ;;  %839 = vperm.xlu1 %4388, %v5455_v58   ;;  %859 = vperm.xlu0 %4390, %v765_v55  }
 0x167   : > { %1050 = vst.msk [vmem:[#allocation2 + $0x18] sm:$0xff] %vm7788_vm11, %v5455_v58 }
 0x168   : > { %1053 = vst.msk [vmem:[#allocation2 + $0x30] sm:$0xff] %vm7788_vm11, %v5458_v4 }
 0x16b   : > { %v747_v10 = vpop.xlane.xlu1 %746  ;;  %v737_v14 = vpop.xlane.xlu2 %736 }
 0x16c   : > { %v5473_v36 = vmax.f32 %v5466_v60, %v747_v10  ;;  %v5476_v45 = vmax.f32 %v5468_v27, %v737_v14  ;;  %v745_v54 = vpop.xlane.xlu0 %744  ;;  %v5490_v10 = vld [vmem:[#allocation2 + $0x68] sm:$0xff]  ;;  %v5492_v14 = vld [vmem:[#allocation2 + $0x40] sm:$0xff] }
 0x16d   : > { %v5479_v61 = vmax.f32 %v5470_v7, %v745_v54  ;;  %v5494_v54 = vld [vmem:[#allocation2 + $0x60] sm:$0xff] }
 0x16e   : > { %1057 = vst.msk [vmem:[#allocation2 + $0x50] sm:$0xff] %vm7788_vm11, %v5473_v36  ;;  %849 = vperm.xlu2 %4389, %v5476_v45   ;;  %874 = vperm.xlu0 %4390, %v5473_v36  }
 0x16f   : > { %1052 = vst.msk [vmem:[#allocation2 + $0x28] sm:$0xff] %vm7788_vm11, %v5476_v45  ;;  %854 = vperm.xlu1 %4388, %v5458_v4  }
 0x170   : > { %1056 = vst.msk [vmem:[#allocation2 + $0x48] sm:$0xff] %vm7788_vm11, %v5479_v61 }
 0x173   : > { %v753_v31 = vpop.xlane.xlu1 %752  ;;  %v743_v23 = vpop.xlane.xlu2 %742 }
 0x174   : > { %v5497_v26 = vmax.f32 %v5490_v10, %v753_v31  ;;  %v5500_v11 = vmax.f32 %v5492_v14, %v743_v23  ;;  %v751_v6 = vpop.xlane.xlu0 %750  ;;  %v5514_v23 = vld [vmem:[#allocation2 + $0x58] sm:$0xff] }
 0x175   : > { %v5503_v22 = vmax.f32 %v5494_v54, %v751_v6  ;;  %v5516_v31 = vld [vmem:[#allocation2 + $0x78] sm:$0xff]  ;;  %v798_v6 = vmul.f32 1.442695, %v778_v0  ;;  %v5538_v0 = vld [vmem:[#allocation2 + $0x70] sm:$0xff] }
 0x176   : > { %1060 = vst.msk [vmem:[#allocation2 + $0x68] sm:$0xff] %vm7788_vm11, %v5497_v26  ;;  %864 = vperm.xlu2 %4389, %v5500_v11   ;;  %889 = vperm.xlu0 %4390, %v5497_v26  }
 0x177   : > { %1055 = vst.msk [vmem:[#allocation2 + $0x40] sm:$0xff] %vm7788_vm11, %v5500_v11  ;;  %869 = vperm.xlu1 %4388, %v5479_v61   ;;  %4522 = vpow2.f32 %v798_v6 }
 0x178   : > { %1059 = vst.msk [vmem:[#allocation2 + $0x60] sm:$0xff] %vm7788_vm11, %v5503_v22  ;;  %4524 = vpow2.f32 %v790_v34 }
 0x17b   : > { %v749_v33 = vpop.xlane.xlu2 %748 }
 0x17c   : > { %v5519_v56 = vmax.f32 %v5514_v23, %v749_v33  ;;  %v757_v24 = vpop.xlane.xlu0 %756  ;;  %v781_v33 = vsub.f32 %v5447_v48, %v765_v55  ;;  %v777_v48 = vsub.f32 %v5449_v52, %v5455_v58 }
 0x17d   : > { %v5524_v9 = vmax.f32 %v5516_v31, %v757_v24  ;;  %v775_v24 = vsub.f32 %v5438_v8, %v5441_v41  ;;  %v5543_v6 = vpop.eup %4522  ;;  %v784_v8 = vsub.f32 %v5466_v60, %v5473_v36  ;;  %v780_v60 = vsub.f32 %v5451_v53, %v5458_v4 }
 0x17e   : > { %1058 = vst.msk [vmem:[#allocation2 + $0x58] sm:$0xff] %vm7788_vm11, %v5519_v56  ;;  %879 = vperm.xlu2 %4389, %v5519_v56   ;;  %1156 = vperm.xlu0 %4390, %v5521_v57   ;;  %v804_v12 = vmul.f32 1.442695, %v781_v33  ;;  %v796_v41 = vmul.f32 1.442695, %v777_v48  ;;  %v5556_v55 = vpop.eup %4524  ;;  %v782_v36 = vsub.f32 %v5492_v14, %v5500_v11  ;;  %v785_v14 = vsub.f32 %v5514_v23, %v5519_v56  ;;  %v438_v11 = vld [vmem:[%s5078_s7 + $0x68] sm:$0xff] }
 0x17f   : > { %1062 = vst.msk [vmem:[#allocation2 + $0x78] sm:$0xff] %vm7788_vm11, %v5524_v9  ;;  %884 = vperm.xlu1 %4388, %v5503_v22   ;;  %v792_v21 = vmul.f32 1.442695, %v775_v24  ;;  %v810_v52 = vmul.f32 1.442695, %v784_v8  ;;  %v435_v56 = vld [vmem:[%s5078_s7 + $0x50] sm:$0xff]  ;;  %v786_v23 = vsub.f32 %v5494_v54, %v5503_v22 }
 0x180   : > { %4526 = vpow2.f32 %v804_v12  ;;  %v806_v24 = vmul.f32 1.442695, %v782_v36  ;;  %v7855_v54 = vmov 1  }
 0x181   : > { %4528 = vpow2.f32 %v792_v21  ;;  %v787_v21 = vsub.f32 %v5490_v10, %v5497_v26  ;;  %v783_v26 = vsub.f32 %v5470_v7, %v5479_v61  ;;  %v439_v10 = vld [vmem:[%s5078_s7 + $0x70] sm:$0xff]  ;;  %v436_v61 = vld [vmem:[%s5078_s7 + $0x58] sm:$0xff] }
 0x182   : > { %4530 = vpow2.f32 %v796_v41  ;;  %v437_v41 = vld [vmem:[%s5078_s7 + $0x60] sm:$0xff] }
 0x183   : > { %v755_v1 = vpop.xlane.xlu2 %754  ;;  %4532 = vpow2.f32 %v810_v52  ;;  %v816_v53 = vmul.f32 1.442695, %v787_v21  ;;  %v808_v48 = vmul.f32 1.442695, %v783_v26  ;;  %v433_v21 = vld [vmem:[%s5078_s7 + $0x40] sm:$0xff] }
 0x184   : > { %v5541_v32 = vmax.f32 %v5538_v0, %v755_v1  ;;  %v779_v1 = vsub.f32 %v5468_v27, %v5476_v45  ;;  %v440_v27 = vld [vmem:[%s5078_s7 + $0x78] sm:$0xff]  ;;  %v802_v45 = vmul.f32 1.442695, %v780_v60  ;;  %v434_v60 = vld [vmem:[%s5078_s7 + $0x48] sm:$0xff] }
 0x185   : > { %1063 = vmatpush.msra.mxu0 %v440_v27  ;;  %v814_v27 = vmul.f32 1.442695, %v786_v23 }
 0x186   : > { %1061 = vst.msk [vmem:[#allocation2 + $0x70] sm:$0xff] %vm7788_vm11, %v5541_v32  ;;  %894 = vperm.xlu2 %4389, %v5541_v32   ;;  %1166 = vperm.xlu0 %4390, %v5543_v6   ;;  %v800_v58 = vmul.f32 1.442695, %v779_v1  ;;  %v5558_v40 = vpop.eup %4526  ;;  %v812_v1 = vmul.f32 1.442695, %v785_v14  ;;  %v429_v14 = vld [vmem:[%s5078_s7 + $0x20] sm:$0xff] }
 0x187   : > { %899 = vperm.xlu1 %4388, %v5524_v9   ;;  %v5560_v33 = vpop.eup %4528  ;;  %1064 = vmatpush.msra.mxu0 %v439_v10 }
 0x188   : > { %4534 = vpow2.f32 %v800_v58  ;;  %v5572_v4 = vpop.eup %4530  ;;  %v788_v58 = vsub.f32 %v5538_v0, %v5541_v32  ;;  %v789_v32 = vsub.f32 %v5516_v31, %v5524_v9  ;;  %v431_v0 = vld [vmem:[%s5078_s7 + $0x30] sm:$0xff] }
 0x189   : > { %v5574_v34 = vpop.eup %4532  ;;  %4536 = vpow2.f32 %v802_v45  ;;  %1065 = vmatpush.msra.mxu0 %v438_v11 }
 0x18a   : > { %4538 = vpow2.f32 %v816_v53  ;;  %v818_v36 = vmul.f32 1.442695, %v788_v58  ;;  %v432_v53 = vld [vmem:[%s5078_s7 + $0x38] sm:$0xff]  ;;  %v820_v26 = vmul.f32 1.442695, %v789_v32 }
 0x18b   : > { %4540 = vpow2.f32 %v806_v24  ;;  %1066 = vmatpush.msra.mxu0 %v437_v41  ;;  %v430_v24 = vld [vmem:[%s5078_s7 + $0x28] sm:$0xff]  ;;  %v5618_v10 = vpop.permute.xlu1 %1278  ;;  %v5625_v9 = vpop.permute.xlu2 %1282  ;;  %v425_v41 = vld [vmem:[%s5078_s7] sm:$0xff] }
 0x18c   : > { %4542 = vpow2.f32 %v808_v48  ;;  %v427_v48 = vld [vmem:[%s5078_s7 + $0x10] sm:$0xff] }
 0x18d   : > { %1067 = vmatpush.msra.mxu0 %v436_v61  ;;  %4544 = vpow2.f32 %v812_v1  ;;  %v426_v1 = vld [vmem:[%s5078_s7 + $0x8] sm:$0xff] }
 0x18e   : > { %1146 = vperm.xlu2 %4389, %v5556_v55   ;;  %1181 = vperm.xlu0 %4390, %v5558_v40   ;;  %v5576_v12 = vpop.eup %4534  ;;  %4546 = vpow2.f32 %v814_v27 }
 0x18f   : > { %1151 = vperm.xlu1 %4388, %v5560_v33   ;;  %v5587_v8 = vpop.eup %4536  ;;  %1068 = vmatpush.msra.mxu0 %v435_v56  ;;  %4548 = vpow2.f32 %v818_v36  ;;  %v5639_v23 = vpop.permute.xlu0 %1274 }
 0x190   : > { %v5590_v7 = vpop.eup %4538  ;;  %4550 = vpow2.f32 %v820_v26 }
 0x191   : > { %v5593_v52 = vpop.eup %4540  ;;  %1069 = vmatpush.msra.mxu0 %v434_v60 }
 0x192   : > { %v5605_v45 = vpop.eup %4542 }
 0x193   : > { %1070 = vmatpush.msra.mxu0 %v433_v21  ;;  %v5608_v22 = vpop.eup %4544  ;;  %v5636_v56 = vpop.permute.xlu1 %1286 }
 0x194   : > { %v5621_v11 = vpop.eup %4546  ;;  %v5642_v58 = vpop.permute.xlu2 %1290 }
 0x195   : > { %1071 = vmatpush.msra.mxu0 %v432_v53  ;;  %v5623_v31 = vpop.eup %4548 }
 0x196   : > { %1161 = vperm.xlu2 %4389, %v5572_v4   ;;  %1196 = vperm.xlu0 %4390, %v5574_v34   ;;  %v5634_v61 = vpop.eup %4550 }
 0x197   : > { %1171 = vperm.xlu1 %4388, %v5576_v12   ;;  %1072 = vmatpush.msra.mxu0 %v431_v0  ;;  %v5650_v21 = vpop.permute.xlu0 %1294 }
 0x199   : > { %1073 = vmatpush.msra.mxu0 %v430_v24 }
 0x19b   : > { %1074 = vmatpush.msra.mxu0 %v429_v14  ;;  %v5647_v60 = vpop.permute.xlu1 %1298 }
 0x19e   : > { %1211 = vperm.xlu0 %4390, %v5590_v7   ;;  %1176 = vperm.xlu2 %4389, %v5587_v8  }
 0x19f   : > { %1186 = vperm.xlu1 %4388, %v5593_v52  }
 0x1a6   : > { %4392 = vset.pattern.permute.xlu0 %v7855_v54  ;;  %1191 = vperm.xlu2 %4389, %v5605_v45  }
 0x1a7   : > { %1201 = vperm.xlu1 %4388, %v5608_v22   ;;  %1306 = vperm.xlu0 %4392, %v5165_v15   ;;  %v428_v15 = vld [vmem:[%s5078_s7 + $0x18] sm:$0xff] }
 0x1a8   : > { %1075 = vmatpush.msra.mxu0 %v428_v15 }
 0x1aa   : > { %1076 = vmatpush.msra.mxu0 %v427_v48 }
 0x1ac   : > { %1077 = vmatpush.msra.mxu0 %v426_v1 }
 0x1ae   : > { %1206 = vperm.xlu2 %4389, %v5621_v11   ;;  %1078 = vmatpush.msra.mxu0 %v425_v41 }
 0x1af   : > { %1216 = vperm.xlu1 %4388, %v5623_v31   ;;  %1318 = vperm.xlu0 %4392, %v5177_v18  }
 0x1b6   : > { %1221 = vperm.xlu2 %4389, %v5634_v61  }
 0x1b7   : > { %4393 = vset.pattern.permute.xlu1 %v7855_v54 }
 0x1b8   : > { %1310 = vperm.xlu1 %4393, %v5174_v17   ;;  %v830_v18 = vpop.permute.xlu2 %829 }
 0x1b9   : > { %v903_v17 = vsub.f32 %v5271_v59, %v830_v18 }
 0x1be   : > { %4391 = vset.pattern.permute.xlu2 %v7855_v54  ;;  %v920_v54 = vmul.f32 1.442695, %v903_v17 }
 0x1bf   : > { %1302 = vperm.xlu2 %4391, %v5159_v13  }
 0x1c0   : > { %1322 = vperm.xlu1 %4393, %v5186_v20  }
 0x1c7   : > { %1314 = vperm.xlu2 %4391, %v5171_v16  }
 0x1c8   : > { %v825_v27 = vpop.permute.xlu1 %824  ;;  %v850_v36 = vpop.permute.xlu2 %849 }
 0x1c9   : > { %v902_v53 = vsub.f32 %v5240_v30, %v825_v27  ;;  %v835_v32 = vpop.permute.xlu0 %834 }
 0x1ca   : > { %v904_v20 = vsub.f32 %v5236_v29, %v835_v32  ;;  %v907_v32 = vsub.f32 %v5348_v42, %v850_v36 }
 0x1cb   : > { %v918_v0 = vmul.f32 1.442695, %v902_v53 }
 0x1cc   : > { %v922_v16 = vmul.f32 1.442695, %v904_v20  ;;  %v928_v17 = vmul.f32 1.442695, %v907_v32 }
 0x1cd   : > { %4552 = vpow2.f32 %v918_v0 }
 0x1ce   : > { %4554 = vpow2.f32 %v920_v54 }
 0x1cf   : > { %1326 = vperm.xlu2 %4391, %v5183_v19   ;;  %4556 = vpow2.f32 %v922_v16 }
 0x1d0   : > { %v865_v13 = vpop.permute.xlu2 %864 }
 0x1d1   : > { %v845_v24 = vpop.permute.xlu0 %844 }
 0x1d3   : > { %v4553_v26 = vpop.eup %4552 }
 0x1d4   : > { %1079 = vmatmul.f32.vlgmr.msra.gmra.mxu0 %v4553_v26  ;;  %v4555_v59 = vpop.eup %4554 }
 0x1d5   : > { %v4557_v29 = vpop.eup %4556 }
 0x1d8   : > { %v840_v14 = vpop.permute.xlu1 %839  ;;  %v880_v15 = vpop.permute.xlu2 %879 }
 0x1d9   : > { %v905_v30 = vsub.f32 %v5304_v50, %v840_v14  ;;  %v5658_v48 = vpop.permute.xlu0 %859  ;;  %982 = vadd.xlane.f32.xlu0 %v4553_v26  ;;  %v906_v50 = vsub.f32 %v5258_v46, %v845_v24 }
 0x1db   : > { %v924_v1 = vmul.f32 1.442695, %v905_v30  ;;  %v926_v26 = vmul.f32 1.442695, %v906_v50 }
 0x1dc   : > { %1082 = vmatmul.f32.gmra.mxu0 %v4555_v59 }
 0x1dd   : > { %4558 = vpow2.f32 %v924_v1 }
 0x1e0   : > { %v895_v19 = vpop.permute.xlu2 %894 }
 0x1e1   : > { %v855_v41 = vpop.permute.xlu1 %854  ;;  %v5660_v18 = vpop.permute.xlu0 %874 }
 0x1e2   : > { %v908_v27 = vsub.f32 %v5308_v51, %v855_v41  ;;  %v910_v51 = vsub.f32 %v5376_v5, %v865_v13  ;;  %v913_v5 = vsub.f32 %v5402_v2, %v880_v15  ;;  %v916_v15 = vsub.f32 %v5416_v28, %v895_v19 }
 0x1e3   : > { %v4559_v53 = vpop.eup %4558  ;;  %v912_v28 = vsub.f32 %v5344_v3, %v5660_v18 }
 0x1e4   : > { %v930_v0 = vmul.f32 1.442695, %v908_v27  ;;  %988 = vadd.xlane.f32.xlu0 %v4559_v53  ;;  %1085 = vmatmul.f32.gmra.mxu0 %v4557_v29  ;;  %v934_v46 = vmul.f32 1.442695, %v910_v51 }
 0x1e6   : > { %4560 = vpow2.f32 %v930_v0 }
 0x1e7   : > { %4562 = vpow2.f32 %v928_v17 }
 0x1e8   : > { %v5665_v54 = vpop.permute.xlu2 %1146  ;;  %4564 = vpow2.f32 %v926_v26 }
 0x1e9   : > { %v870_v20 = vpop.permute.xlu1 %869  ;;  %v5667_v16 = vpop.permute.xlu0 %889 }
 0x1ea   : > { %v911_v14 = vsub.f32 %v5352_v44, %v870_v20  ;;  %986 = vadd.xlane.f32.xlu1 %v4557_v29 }
 0x1ec   : > { %v4561_v42 = vpop.eup %4560  ;;  %v936_v36 = vmul.f32 1.442695, %v911_v14  ;;  %1088 = vmatmul.f32.gmra.mxu0 %v4559_v53  ;;  %v940_v53 = vmul.f32 1.442695, %v913_v5  ;;  %v5695_v14 = vperm.slane %v5200_v38, 1 }
 0x1ed   : > { %994 = vadd.xlane.f32.xlu0 %v4561_v42  ;;  %v4563_v30 = vpop.eup %4562 }
 0x1ee   : > { %4566 = vpow2.f32 %v936_v36  ;;  %v4565_v44 = vpop.eup %4564  ;;  %v1342_v3 = vadd.f32 %v5695_v14, %v5642_v58 }
 0x1ef   : > { %4568 = vpow2.f32 %v934_v46 }
 0x1f0   : > { %v5671_v24 = vpop.permute.xlu2 %1161 }
 0x1f1   : > { %v885_v1 = vpop.permute.xlu1 %884  ;;  %v5673_v41 = vpop.permute.xlu0 %1156 }
 0x1f2   : > { %v914_v27 = vsub.f32 %v5384_v39, %v885_v1  ;;  %992 = vadd.xlane.f32.xlu1 %v4563_v30  ;;  %v909_v39 = vsub.f32 %v5300_v49, %v5658_v48  ;;  %v946_v49 = vmul.f32 1.442695, %v916_v15 }
 0x1f4   : > { %v5677_v13 = vpop.eup %4566  ;;  %v942_v29 = vmul.f32 1.442695, %v914_v27  ;;  %1091 = vmatmul.f32.gmra.mxu0 %v4565_v44 }
 0x1f5   : > { %1000 = vadd.xlane.f32.xlu0 %v5677_v13  ;;  %v5682_v0 = vpop.eup %4568 }
 0x1f6   : > { %4570 = vpow2.f32 %v942_v29 }
 0x1f7   : > { %4572 = vpow2.f32 %v940_v53  ;;  %v1358_v53 = vmul.f32 0.2, %v1342_v3 }
 0x1f8   : > { %v5680_v32 = vpop.permute.xlu2 %1176  ;;  %984 = vadd.xlane.f32.xlu2 %v4555_v59  ;;  %v932_v59 = vmul.f32 1.442695, %v909_v39  ;;  %v1343_v39 = vadd.f32 %v5695_v14, %v5650_v21  ;;  %v1338_v21 = vadd.f32 %v5695_v14, %v5639_v23 }
 0x1f9   : > { %v900_v50 = vpop.permute.xlu1 %899  ;;  %v5686_v17 = vpop.permute.xlu0 %1166  ;;  %v1374_v15 = vmax.f32 %v1342_v3, %v1358_v53 }
 0x1fa   : > { %v917_v2 = vsub.f32 %v5406_v43, %v900_v50  ;;  %998 = vadd.xlane.f32.xlu1 %v5682_v0  ;;  %v1339_v43 = vadd.f32 %v5695_v14, %v5618_v10  ;;  %v1340_v10 = vadd.f32 %v5695_v14, %v5625_v9 }
 0x1fc   : > { %v5691_v26 = vpop.eup %4570  ;;  %v948_v20 = vmul.f32 1.442695, %v917_v2  ;;  %1094 = vmatmul.f32.gmra.mxu0 %v4563_v30  ;;  %v1355_v46 = vmul.f32 0.2, %v1339_v43  ;;  %v938_v30 = vmul.f32 1.442695, %v912_v28 }
 0x1fd   : > { %1006 = vadd.xlane.f32.xlu0 %v5691_v26  ;;  %v5701_v51 = vpop.eup %4572  ;;  %v1356_v5 = vmul.f32 0.2, %v1340_v10  ;;  %v5750_v28 = vsel %vm5245_vm13, %v1374_v15, -1e+30 }
 0x1fe   : > { %4574 = vpow2.f32 %v948_v20  ;;  %v1371_v27 = vmax.f32 %v1339_v43, %v1355_v46  ;;  %v1359_v20 = vmul.f32 0.2, %v1343_v39 }
 0x1ff   : > { %4576 = vpow2.f32 %v932_v59  ;;  %v1372_v2 = vmax.f32 %v1340_v10, %v1356_v5  ;;  %v1341_v5 = vadd.f32 %v5695_v14, %v5636_v56 }
 0x200   : > { %v5699_v48 = vpop.permute.xlu2 %1191  ;;  %990 = vadd.xlane.f32.xlu2 %v4565_v44  ;;  %4578 = vpow2.f32 %v946_v49  ;;  %v5730_v58 = vsel %vm5260_vm0, %v1371_v27, -1e+30  ;;  %v1375_v46 = vmax.f32 %v1343_v39, %v1359_v20 }
 0x201   : > { %v5705_v19 = vpop.permute.xlu1 %1151  ;;  %v5707_v36 = vpop.permute.xlu0 %1181  ;;  %4580 = vpow2.f32 %v938_v30  ;;  %v5743_v43 = vsel %vm5214_vm9, %v1372_v2, -1e+30  ;;  %v1354_v30 = vmul.f32 0.2, %v1338_v21  ;;  %v1357_v15 = vmul.f32 0.2, %v1341_v5 }
 0x202   : > { %1004 = vadd.xlane.f32.xlu1 %v5701_v51  ;;  %v5761_v23 = vsel %vm5328_vm14, %v1375_v46, -1e+30 }
 0x203   : > { %v1370_v53 = vmax.f32 %v1338_v21, %v1354_v30 }
 0x204   : > { %v5710_v38 = vpop.eup %4574  ;;  %1097 = vmatmul.f32.gmra.mxu0 %v4561_v42  ;;  %v915_v42 = vsub.f32 %v5380_v37, %v5667_v16 }
 0x205   : > { %1012 = vadd.xlane.f32.xlu0 %v5710_v38  ;;  %v4577_v1 = vpop.eup %4576  ;;  %v5771_v20 = vsel %vm5218_vm10, %v1370_v53, -1e+30 }
 0x206   : > { %v5719_v44 = vpop.eup %4578  ;;  %v944_v50 = vmul.f32 1.442695, %v915_v42 }
 0x207   : > { %v4581_v37 = vpop.eup %4580 }
 0x208   : > { %v5717_v18 = vpop.permute.xlu2 %1206  ;;  %996 = vadd.xlane.f32.xlu2 %v4577_v1  ;;  %4582 = vpow2.f32 %v944_v50 }
 0x209   : > { %v5723_v29 = vpop.permute.xlu1 %1171  ;;  %v5725_v9 = vpop.permute.xlu0 %1196 }
 0x20a   : > { %1010 = vadd.xlane.f32.xlu1 %v5719_v44 }
 0x20c   : > { %1100 = vmatmul.f32.gmra.mxu0 %v4577_v1 }
 0x20d   : > { %1420 = vmax.xlane.f32.xlu0 %v5730_v58 }
 0x20e   : > { %v5754_v10 = vpop.eup %4582 }
 0x210   : > { %v5735_v16 = vpop.permute.xlu2 %1221  ;;  %1002 = vadd.xlane.f32.xlu2 %v4581_v37 }
 0x211   : > { %v5737_v59 = vpop.permute.xlu1 %1186  ;;  %v5739_v49 = vpop.permute.xlu0 %1211 }
 0x212   : > { %1422 = vmax.xlane.f32.xlu1 %v5743_v43 }
 0x214   : > { %1103 = vmatmul.f32.gmra.mxu0 %v5682_v0 }
 0x215   : > { %1426 = vmax.xlane.f32.xlu0 %v5750_v28 }
 0x218   : > { %1008 = vadd.xlane.f32.xlu2 %v5754_v10 }
 0x219   : > { %v5757_v1 = vpop.permute.xlu1 %1201  ;;  %v1303_v3 = vpop.permute.xlu2 %1302 }
 0x21a   : > { %v1345_v27 = vadd.f32 %v5695_v14, %v1303_v3  ;;  %1428 = vmax.xlane.f32.xlu1 %v5761_v23  ;;  %v1307_v0 = vpop.permute.xlu0 %1306 }
 0x21b   : > { %v1346_v42 = vadd.f32 %v5695_v14, %v1307_v0 }
 0x21c   : > { %v1361_v39 = vmul.f32 0.2, %v1345_v27  ;;  %1106 = vmatmul.f32.gmra.mxu0 %v5677_v13 }
 0x21d   : > { %v1362_v50 = vmul.f32 0.2, %v1346_v42 }
 0x21e   : > { %v1377_v2 = vmax.f32 %v1345_v27, %v1361_v39  ;;  %v1373_v39 = vmax.f32 %v1341_v5, %v1357_v15  ;;  %v953_v5 = vld [vmem:[#allocation3 + $0x18] sm:$0xff] }
 0x21f   : > { %v1378_v46 = vmax.f32 %v1346_v42, %v1362_v50  ;;  %v1344_v42 = vadd.f32 %v5695_v14, %v5647_v60 }
 0x220   : > { %1418 = vmax.xlane.f32.xlu2 %v5771_v20  ;;  %v5776_v35 = vsel %vm5285_vm5, %v1377_v2, -1e+30  ;;  %v5792_v25 = vsel %vm5275_vm1, %v1373_v39, -1e+30  ;;  %vm1722_vm5 = vcmask 15368  }
 0x221   : > { %1432 = vmax.xlane.f32.xlu0 %v5776_v35  ;;  %v1315_v56 = vpop.permute.xlu2 %1314  ;;  %v5781_v13 = vsel %vm5360_vm4, %v1378_v46, -1e+30  ;;  %v5783_v30 = vpop.permute.xlu1 %1216  ;;  %v1360_v21 = vmul.f32 0.2, %v1344_v42 }
 0x222   : > { %v1348_v27 = vadd.f32 %v5695_v14, %v1315_v56  ;;  %1434 = vmax.xlane.f32.xlu1 %v5781_v13  ;;  %v1319_v0 = vpop.permute.xlu0 %1318 }
 0x223   : > { %v1349_v53 = vadd.f32 %v5695_v14, %v1319_v0 }
 0x224   : > { %v1364_v50 = vmul.f32 0.2, %v1348_v27  ;;  %1109 = vmatmul.f32.gmra.mxu0 %v4581_v37 }
 0x225   : > { %v1365_v2 = vmul.f32 0.2, %v1349_v53 }
 0x226   : > { %v1380_v3 = vmax.f32 %v1348_v27, %v1364_v50 }
 0x227   : > { %v1381_v62 = vmax.f32 %v1349_v53, %v1365_v2  ;;  %v1376_v53 = vmax.f32 %v1344_v42, %v1360_v21 }
 0x228   : > { %1424 = vmax.xlane.f32.xlu2 %v5792_v25  ;;  %v5797_v47 = vsel %vm5324_vm12, %v1380_v3, -1e+30  ;;  %vm7797_vm12 = vcmask 64512  }
 0x229   : > { %1438 = vmax.xlane.f32.xlu0 %v5797_v47  ;;  %v1327_v60 = vpop.permute.xlu2 %1326  ;;  %v5802_v37 = vsel %vm5391_vm2, %v1381_v62, -1e+30  ;;  %v5810_v56 = vsel %vm5289_vm6, %v1376_v53, -1e+30 }
 0x22a   : > { %v1351_v15 = vadd.f32 %v5695_v14, %v1327_v60  ;;  %1440 = vmax.xlane.f32.xlu1 %v5802_v37  ;;  %v1311_v27 = vpop.permute.xlu1 %1310 }
 0x22b   : > { %v1347_v0 = vadd.f32 %v5695_v14, %v1311_v27 }
 0x22c   : > { %v1367_v39 = vmul.f32 0.2, %v1351_v15  ;;  %1112 = vmatmul.f32.gmra.mxu0 %v5701_v51 }
 0x22d   : > { %v1363_v3 = vmul.f32 0.2, %v1347_v0 }
 0x22e   : > { %v1383_v50 = vmax.f32 %v1351_v15, %v1367_v39  ;;  %v952_v15 = vld [vmem:[#allocation3 + $0x10] sm:$0xff] }
 0x22f   : > { %v1379_v27 = vmax.f32 %v1347_v0, %v1363_v3  ;;  %v4776_v0 = vld [vmem:[%s5063_s9 + $0x70] sm:$0xff] }
 0x230   : > { %1430 = vmax.xlane.f32.xlu2 %v5810_v56  ;;  %v5815_v60 = vsel %vm5364_vm7, %v1383_v50, -1e+30  ;;  %v7864_v50 = vld [vmem:[#allocation17_spill] sm:$0xff]  ;;  %vm7866_vm7 = vcmask 7168  }
 0x231   : > { %1444 = vmax.xlane.f32.xlu0 %v5815_v60  ;;  %v5822_v53 = vsel %vm5332_vm15, %v1379_v27, -1e+30  ;;  %vm7865_vm11 = vnez %v7864_v50  ;;  %vm7867_vm2 = vmmov %vm7866_vm7 }
 0x232   : > { %v1323_v21 = vpop.permute.xlu1 %1322 }
 0x233   : > { %v1350_v42 = vadd.f32 %v5695_v14, %v1323_v21  ;;  %v1128_v21 = vld [vmem:[#allocation4] sm:$0xff] }
 0x234   : > { %1115 = vmatmul.f32.gmra.mxu0 %v5691_v26  ;;  %v950_v26 = vld [vmem:[#allocation3] sm:$0xff] }
 0x235   : > { %v1366_v51 = vmul.f32 0.2, %v1350_v42  ;;  %v966_v3 = vmul.f32 %v5556_v55, %v950_v26 }
 0x237   : > { %v1382_v39 = vmax.f32 %v1350_v42, %v1366_v51 }
 0x238   : > { %1436 = vmax.xlane.f32.xlu2 %v5822_v53 }
 0x239   : > { %v5828_v62 = vsel %vm7865_vm11, %v1382_v39, -1e+30  ;;  %vm7870_vm11 = vmmov %vm7867_vm2 }
 0x23c   : > { %1118 = vmatmul.f32.gmra.mxu0 %v5754_v10  ;;  %v1224_v10 = vmul.f32 %v5665_v54, %v1128_v21  ;;  %v968_v54 = vmul.f32 %v5521_v57, %v952_v15  ;;  %v1130_v21 = vld [vmem:[#allocation4 + $0x10] sm:$0xff]  ;;  %v959_v15 = vld [vmem:[#allocation3 + $0x48] sm:$0xff] }
 0x240   : > { %1442 = vmax.xlane.f32.xlu2 %v5828_v62 }
 0x244   : > { %1121 = vmatmul.f32.gmra.mxu0 %v5719_v44  ;;  %v1129_v44 = vld [vmem:[#allocation4 + $0x8] sm:$0xff] }
 0x245   : > { %1330 = vperm.xlu0 %4392, %v4776_v0   ;;  %v969_v0 = vmul.f32 %v5572_v4, %v953_v5  ;;  %v1225_v55 = vmul.f32 %v5705_v19, %v1129_v44  ;;  %v1226_v4 = vmul.f32 %v5673_v41, %v1130_v21  ;;  %v951_v41 = vld [vmem:[#allocation3 + $0x8] sm:$0xff]  ;;  %v958_v21 = vld [vmem:[#allocation3 + $0x40] sm:$0xff] }
 0x24c   : > { %1124 = vmatmul.f32.gmra.mxu0 %v5710_v38  ;;  %v983_v27 = vpop.xlane.xlu0 %982 }
 0x24d   : > { %v1014_v42 = vadd.f32 %v983_v27, %v966_v3  ;;  %v956_v27 = vld [vmem:[#allocation3 + $0x30] sm:$0xff] }
 0x24f   : > { %1031 = vst.msk [vmem:[#allocation3] sm:$0xff] %vm7866_vm7, %v1014_v42  ;;  %vm7868_vm7 = vmmov %vm7867_vm2 }
 0x251   : > { %v1080_v51 = vpop.f32.mrf.mxu0 }
 0x252   : > { %v1240_v39 = vadd.f32 %v1224_v10, %v1080_v51  ;;  %v972_v51 = vmul.f32 %v5587_v8, %v956_v27  ;;  %v975_v8 = vmul.f32 %v5605_v45, %v959_v15  ;;  %v974_v45 = vmul.f32 %v5593_v52, %v958_v21 }
 0x254   : > { %1257 = vst.msk [vmem:[#allocation4] sm:$0xff] %vm7797_vm12, %v1240_v39  ;;  %v955_v39 = vld [vmem:[#allocation3 + $0x28] sm:$0xff] }
 0x255   : > { %v971_v57 = vmul.f32 %v5576_v12, %v955_v39  ;;  %v954_v39 = vld [vmem:[#allocation3 + $0x20] sm:$0xff] }
 0x256   : > { %v970_v52 = vmul.f32 %v5543_v6, %v954_v39  ;;  %v5875_v39 = vld [vmem:[#allocation2 + $0x8] sm:$0xff] }
 0x257   : > { %v989_v50 = vpop.xlane.xlu0 %988 }
 0x258   : > { %v1017_v38 = vadd.f32 %v989_v50, %v969_v0  ;;  %v1131_v0 = vld [vmem:[#allocation4 + $0x18] sm:$0xff] }
 0x259   : > { %v1083_v26 = vpop.f32.mrf.mxu0 }
 0x25a   : > { %1034 = vst.msk [vmem:[#allocation3 + $0x18] sm:$0xff] %vm7867_vm2, %v1017_v38  ;;  %v1241_v3 = vadd.f32 %v1225_v55, %v1083_v26  ;;  %v1227_v26 = vmul.f32 %v5671_v24, %v1131_v0  ;;  %v961_v0 = vld [vmem:[#allocation3 + $0x58] sm:$0xff] }
 0x25c   : > { %1258 = vst.msk [vmem:[#allocation4 + $0x8] sm:$0xff] %vm7797_vm12, %v1241_v3 }
 0x25d   : > { %v987_v42 = vpop.xlane.xlu1 %986 }
 0x25e   : > { %v1016_v10 = vadd.f32 %v987_v42, %v968_v54 }
 0x260   : > { %1033 = vst.msk [vmem:[#allocation3 + $0x10] sm:$0xff] %vm7868_vm7, %v1016_v10  ;;  %v995_v19 = vpop.xlane.xlu0 %994  ;;  %vm7869_vm7 = vmmov %vm7867_vm2  ;;  %v967_v10 = vmul.f32 %v5560_v33, %v951_v41  ;;  %v965_v41 = vld [vmem:[#allocation3 + $0x78] sm:$0xff] }
 0x261   : > { %v1020_v5 = vadd.f32 %v995_v19, %v972_v51  ;;  %v1086_v50 = vpop.f32.mrf.mxu0  ;;  %v1132_v19 = vld [vmem:[#allocation4 + $0x20] sm:$0xff] }
 0x262   : > { %v1242_v44 = vadd.f32 %v1226_v4, %v1086_v50  ;;  %v962_v4 = vld [vmem:[#allocation3 + $0x60] sm:$0xff] }
 0x263   : > { %1037 = vst.msk [vmem:[#allocation3 + $0x30] sm:$0xff] %vm7867_vm2, %v1020_v5  ;;  %v978_v50 = vmul.f32 %v5621_v11, %v962_v4  ;;  %v977_v11 = vmul.f32 %v5608_v22, %v961_v0  ;;  %v1135_v0 = vld [vmem:[#allocation4 + $0x38] sm:$0xff] }
 0x264   : > { %1259 = vst.msk [vmem:[#allocation4 + $0x10] sm:$0xff] %vm7797_vm12, %v1242_v44  ;;  %v1228_v44 = vmul.f32 %v5686_v17, %v1132_v19  ;;  %v1134_v19 = vld [vmem:[#allocation4 + $0x30] sm:$0xff] }
 0x265   : > { %v993_v55 = vpop.xlane.xlu1 %992 }
 0x266   : > { %v1019_v38 = vadd.f32 %v993_v55, %v971_v57 }
 0x268   : > { %1036 = vst.msk [vmem:[#allocation3 + $0x28] sm:$0xff] %vm7869_vm7, %v1019_v38  ;;  %v1001_v3 = vpop.xlane.xlu0 %1000  ;;  %vm7871_vm7 = vmmov %vm7867_vm2 }
 0x269   : > { %v1023_v54 = vadd.f32 %v1001_v3, %v975_v8  ;;  %v1089_v27 = vpop.f32.mrf.mxu0 }
 0x26a   : > { %v1243_v42 = vadd.f32 %v1227_v26, %v1089_v27  ;;  %v1133_v26 = vld [vmem:[#allocation4 + $0x28] sm:$0xff]  ;;  %v957_v27 = vld [vmem:[#allocation3 + $0x38] sm:$0xff] }
 0x26b   : > { %1040 = vst.msk [vmem:[#allocation3 + $0x48] sm:$0xff] %vm7867_vm2, %v1023_v54  ;;  %v985_v12 = vpop.xlane.xlu2 %984  ;;  %v981_v54 = vmul.f32 %v5634_v61, %v965_v41  ;;  %v1229_v21 = vmul.f32 %v5723_v29, %v1133_v26  ;;  %v973_v22 = vmul.f32 %v5558_v40, %v957_v27 }
 0x26c   : > { %1260 = vst.msk [vmem:[#allocation4 + $0x18] sm:$0xff] %vm7797_vm12, %v1243_v42  ;;  %v1015_v51 = vadd.f32 %v985_v12, %v967_v10  ;;  %v964_v12 = vld [vmem:[#allocation3 + $0x70] sm:$0xff] }
 0x26d   : > { %v999_v24 = vpop.xlane.xlu1 %998  ;;  %v980_v61 = vmul.f32 %v5623_v31, %v964_v12 }
 0x26e   : > { %1032 = vst.msk [vmem:[#allocation3 + $0x8] sm:$0xff] %vm7870_vm11, %v1015_v51  ;;  %v1022_v5 = vadd.f32 %v999_v24, %v974_v45  ;;  %vm7872_vm11 = vmmov %vm7867_vm2 }
 0x270   : > { %1039 = vst.msk [vmem:[#allocation3 + $0x40] sm:$0xff] %vm7871_vm7, %v1022_v5  ;;  %v1007_v33 = vpop.xlane.xlu0 %1006  ;;  %vm7873_vm7 = vmmov %vm7867_vm2  ;;  %v960_v5 = vld [vmem:[#allocation3 + $0x50] sm:$0xff] }
 0x271   : > { %v1026_v57 = vadd.f32 %v1007_v33, %v978_v50  ;;  %v1092_v15 = vpop.f32.mrf.mxu0  ;;  %v1230_v50 = vmul.f32 %v5680_v32, %v1134_v19  ;;  %v976_v31 = vmul.f32 %v5574_v34, %v960_v5  ;;  %v5893_v34 = vld [vmem:[#allocation2 + $0x20] sm:$0xff]  ;;  %v5919_v19 = vld [vmem:[#allocation2 + $0x38] sm:$0xff] }
 0x272   : > { %v1244_v55 = vadd.f32 %v1228_v44, %v1092_v15 }
 0x273   : > { %1043 = vst.msk [vmem:[#allocation3 + $0x60] sm:$0xff] %vm7867_vm2, %v1026_v57  ;;  %v991_v38 = vpop.xlane.xlu2 %990 }
 0x274   : > { %1261 = vst.msk [vmem:[#allocation4 + $0x20] sm:$0xff] %vm7797_vm12, %v1244_v55  ;;  %v1018_v8 = vadd.f32 %v991_v38, %v970_v52  ;;  %v5884_v55 = vld [vmem:[#allocation2 + $0x10] sm:$0xff] }
 0x275   : > { %v1005_v17 = vpop.xlane.xlu1 %1004 }
 0x276   : > { %1035 = vst.msk [vmem:[#allocation3 + $0x20] sm:$0xff] %vm7872_vm11, %v1018_v8  ;;  %v1025_v3 = vadd.f32 %v1005_v17, %v977_v11  ;;  %vm7874_vm11 = vmmov %vm7867_vm2  ;;  %v963_v8 = vld [vmem:[#allocation3 + $0x68] sm:$0xff]  ;;  %v1231_v11 = vmul.f32 %v5707_v36, %v1135_v0  ;;  %v5941_v0 = vld [vmem:[#allocation2 + $0x18] sm:$0xff] }
 0x278   : > { %1042 = vst.msk [vmem:[#allocation3 + $0x58] sm:$0xff] %vm7873_vm7, %v1025_v3  ;;  %v1013_v6 = vpop.xlane.xlu0 %1012  ;;  %vm7875_vm7 = vmmov %vm7867_vm2 }
 0x279   : > { %v1029_v42 = vadd.f32 %v1013_v6, %v981_v54  ;;  %v1095_v10 = vpop.f32.mrf.mxu0  ;;  %v979_v54 = vmul.f32 %v5590_v7, %v963_v8  ;;  %v5902_v6 = vld [vmem:[#allocation2 + $0x28] sm:$0xff] }
 0x27a   : > { %v1245_v51 = vadd.f32 %v1229_v21, %v1095_v10  ;;  %v1136_v21 = vld [vmem:[#allocation4 + $0x40] sm:$0xff] }
 0x27b   : > { %1046 = vst.msk [vmem:[#allocation3 + $0x78] sm:$0xff] %vm7867_vm2, %v1029_v42  ;;  %v997_v45 = vpop.xlane.xlu2 %996  ;;  %v1232_v12 = vmul.f32 %v5737_v59, %v1136_v21  ;;  %v1137_v59 = vld [vmem:[#allocation4 + $0x48] sm:$0xff] }
 0x27c   : > { %1262 = vst.msk [vmem:[#allocation4 + $0x28] sm:$0xff] %vm7797_vm12, %v1245_v51  ;;  %v1021_v4 = vadd.f32 %v997_v45, %v973_v22  ;;  %v5913_v45 = vld [vmem:[#allocation2] sm:$0xff] }
 0x27d   : > { %v1011_v24 = vpop.xlane.xlu1 %1010 }
 0x27e   : > { %1038 = vst.msk [vmem:[#allocation3 + $0x38] sm:$0xff] %vm7874_vm11, %v1021_v4  ;;  %v1028_v29 = vadd.f32 %v1011_v24, %v980_v61  ;;  %vm7876_vm11 = vmmov %vm7867_vm2 }
 0x280   : > { %1045 = vst.msk [vmem:[#allocation3 + $0x70] sm:$0xff] %vm7875_vm7, %v1028_v29  ;;  %v1421_v40 = vpop.xlane.xlu0 %1420  ;;  %v5921_v29 = vld [vmem:[#allocation2 + $0x40] sm:$0xff] }
 0x281   : > { %v5878_v44 = vmax.f32 %v5875_v39, %v1421_v40  ;;  %v1098_v33 = vpop.f32.mrf.mxu0 }
 0x282   : > { %v1246_v57 = vadd.f32 %v1230_v50, %v1098_v33 }
 0x283   : > { %1740 = vst.msk [vmem:[#allocation2 + $0x8] sm:$0xff] %vm1722_vm5, %v5878_v44  ;;  %v1003_v15 = vpop.xlane.xlu2 %1002 }
 0x284   : > { %1263 = vst.msk [vmem:[#allocation4 + $0x30] sm:$0xff] %vm7797_vm12, %v1246_v57  ;;  %v1024_v32 = vadd.f32 %v1003_v15, %v976_v31  ;;  %v1233_v57 = vmul.f32 %v5699_v48, %v1137_v59  ;;  %v1138_v48 = vld [vmem:[#allocation4 + $0x50] sm:$0xff]  ;;  %v5975_v59 = vld [vmem:[#allocation2 + $0x68] sm:$0xff] }
 0x285   : > { %v1423_v52 = vpop.xlane.xlu1 %1422  ;;  %v1234_v21 = vmul.f32 %v5725_v9, %v1138_v48  ;;  %v1139_v9 = vld [vmem:[#allocation4 + $0x58] sm:$0xff] }
 0x286   : > { %1041 = vst.msk [vmem:[#allocation3 + $0x50] sm:$0xff] %vm7867_vm2, %v1024_v32  ;;  %v5888_v38 = vmax.f32 %v5884_v55, %v1423_v52 }
 0x288   : > { %1741 = vst.msk [vmem:[#allocation2 + $0x10] sm:$0xff] %vm1722_vm5, %v5888_v38  ;;  %v1427_v41 = vpop.xlane.xlu0 %1426 }
 0x289   : > { %v5896_v26 = vmax.f32 %v5893_v34, %v1427_v41  ;;  %v1101_v17 = vpop.f32.mrf.mxu0 }
 0x28a   : > { %v1247_v3 = vadd.f32 %v1231_v11, %v1101_v17  ;;  %v5947_v11 = vld [vmem:[#allocation2 + $0x50] sm:$0xff]  ;;  %v5949_v17 = vld [vmem:[#allocation2 + $0x58] sm:$0xff] }
 0x28b   : > { %1743 = vst.msk [vmem:[#allocation2 + $0x20] sm:$0xff] %vm1722_vm5, %v5896_v26  ;;  %v1009_v27 = vpop.xlane.xlu2 %1008 }
 0x28c   : > { %1264 = vst.msk [vmem:[#allocation4 + $0x38] sm:$0xff] %vm7797_vm12, %v1247_v3  ;;  %v1027_v36 = vadd.f32 %v1009_v27, %v979_v54 }
 0x28d   : > { %v1429_v42 = vpop.xlane.xlu1 %1428 }
 0x28e   : > { %1044 = vst.msk [vmem:[#allocation3 + $0x68] sm:$0xff] %vm7876_vm11, %v1027_v36  ;;  %v5906_v10 = vmax.f32 %v5902_v6, %v1429_v42 }
 0x290   : > { %1744 = vst.msk [vmem:[#allocation2 + $0x28] sm:$0xff] %vm1722_vm5, %v5906_v10 }
 0x291   : > { %v1104_v51 = vpop.f32.mrf.mxu0 }
 0x292   : > { %v1248_v22 = vadd.f32 %v1232_v12, %v1104_v51 }
 0x293   : > { %v1419_v4 = vpop.xlane.xlu2 %1418 }
 0x294   : > { %1265 = vst.msk [vmem:[#allocation4 + $0x40] sm:$0xff] %vm7797_vm12, %v1248_v22  ;;  %v5917_v61 = vmax.f32 %v5913_v45, %v1419_v4  ;;  %v1433_v24 = vpop.xlane.xlu0 %1432  ;;  %v5969_v22 = vld [vmem:[#allocation2 + $0x30] sm:$0xff] }
 0x295   : > { %v1435_v5 = vpop.xlane.xlu1 %1434  ;;  %v5924_v50 = vmax.f32 %v5919_v19, %v1433_v24 }
 0x296   : > { %v1466_v40 = vsub.f32 %v5913_v45, %v5917_v61  ;;  %1739 = vst.msk [vmem:[#allocation2] sm:$0xff] %vm1722_vm5, %v5917_v61  ;;  %v5931_v33 = vmax.f32 %v5921_v29, %v1435_v5  ;;  %1516 = vperm.xlu0 %4392, %v5917_v61   ;;  %v1642_v45 = vld [vmem:[#allocation3] sm:$0xff] }
 0x297   : > { %1746 = vst.msk [vmem:[#allocation2 + $0x38] sm:$0xff] %vm1722_vm5, %v5924_v50 }
 0x298   : > { %1747 = vst.msk [vmem:[#allocation2 + $0x40] sm:$0xff] %vm1722_vm5, %v5931_v33 }
 0x299   : > { %v1107_v15 = vpop.f32.mrf.mxu0 }
 0x29a   : > { %v1249_v32 = vadd.f32 %v1233_v57, %v1107_v15  ;;  %v1235_v15 = vmul.f32 %v5757_v1, %v1139_v9 }
 0x29b   : > { %v1425_v52 = vpop.xlane.xlu2 %1424 }
 0x29c   : > { %1266 = vst.msk [vmem:[#allocation4 + $0x48] sm:$0xff] %vm7797_vm12, %v1249_v32  ;;  %v5945_v8 = vmax.f32 %v5941_v0, %v1425_v52  ;;  %v1439_v41 = vpop.xlane.xlu0 %1438 }
 0x29d   : > { %v1441_v3 = vpop.xlane.xlu1 %1440  ;;  %v5952_v54 = vmax.f32 %v5947_v11, %v1439_v41  ;;  %v5986_v41 = vld [vmem:[#allocation2 + $0x48] sm:$0xff] }
 0x29e   : > { %1742 = vst.msk [vmem:[#allocation2 + $0x18] sm:$0xff] %vm1722_vm5, %v5945_v8  ;;  %v5959_v36 = vmax.f32 %v5949_v17, %v1441_v3  ;;  %1531 = vperm.xlu0 %4392, %v5945_v8  }
 0x29f   : > { %1749 = vst.msk [vmem:[#allocation2 + $0x50] sm:$0xff] %vm1722_vm5, %v5952_v54 }
 0x2a0   : > { %1750 = vst.msk [vmem:[#allocation2 + $0x58] sm:$0xff] %vm1722_vm5, %v5959_v36 }
 0x2a1   : > { %v1110_v12 = vpop.f32.mrf.mxu0 }
 0x2a2   : > { %v1250_v51 = vadd.f32 %v1234_v21, %v1110_v12  ;;  %v1140_v21 = vld [vmem:[#allocation4 + $0x60] sm:$0xff] }
 0x2a3   : > { %v1431_v4 = vpop.xlane.xlu2 %1430  ;;  %v1236_v12 = vmul.f32 %v5717_v18, %v1140_v21 }
 0x2a4   : > { %1267 = vst.msk [vmem:[#allocation4 + $0x50] sm:$0xff] %vm7797_vm12, %v1250_v51  ;;  %v5973_v24 = vmax.f32 %v5969_v22, %v1431_v4  ;;  %v1445_v5 = vpop.xlane.xlu0 %1444  ;;  %v5996_v4 = vld [vmem:[#allocation2 + $0x60] sm:$0xff] }
 0x2a5   : > { %v5978_v57 = vmax.f32 %v5975_v59, %v1445_v5 }
 0x2a6   : > { %1745 = vst.msk [vmem:[#allocation2 + $0x30] sm:$0xff] %vm1722_vm5, %v5973_v24  ;;  %1541 = vperm.xlu0 %4392, %v5906_v10  }
 0x2a7   : > { %1752 = vst.msk [vmem:[#allocation2 + $0x68] sm:$0xff] %vm1722_vm5, %v5978_v57 }
 0x2a9   : > { %v1113_v32 = vpop.f32.mrf.mxu0 }
 0x2aa   : > { %v1251_v52 = vadd.f32 %v1235_v15, %v1113_v32  ;;  %v1141_v15 = vld [vmem:[#allocation4 + $0x68] sm:$0xff] }
 0x2ab   : > { %v1437_v48 = vpop.xlane.xlu2 %1436 }
 0x2ac   : > { %1268 = vst.msk [vmem:[#allocation4 + $0x58] sm:$0xff] %vm7797_vm12, %v1251_v52  ;;  %v5990_v3 = vmax.f32 %v5986_v41, %v1437_v48  ;;  %v1237_v52 = vmul.f32 %v5739_v49, %v1141_v15  ;;  %v1143_v15 = vld [vmem:[#allocation4 + $0x78] sm:$0xff] }
 0x2ae   : > { %1748 = vst.msk [vmem:[#allocation2 + $0x48] sm:$0xff] %vm1722_vm5, %v5990_v3  ;;  %1556 = vperm.xlu0 %4392, %v5931_v33  }
 0x2b1   : > { %v1116_v51 = vpop.f32.mrf.mxu0 }
 0x2b2   : > { %v1252_v1 = vadd.f32 %v1236_v12, %v1116_v51 }
 0x2b3   : > { %v1443_v5 = vpop.xlane.xlu2 %1442 }
 0x2b4   : > { %1269 = vst.msk [vmem:[#allocation4 + $0x60] sm:$0xff] %vm7797_vm12, %v1252_v1  ;;  %v6000_v9 = vmax.f32 %v5996_v4, %v1443_v5  ;;  %v1142_v1 = vld [vmem:[#allocation4 + $0x70] sm:$0xff] }
 0x2b5   : > { %v1238_v31 = vmul.f32 %v5783_v30, %v1142_v1 }
 0x2b6   : > { %1751 = vst.msk [vmem:[#allocation2 + $0x60] sm:$0xff] %vm1722_vm5, %v6000_v9  ;;  %1571 = vperm.xlu0 %4392, %v5959_v36  }
 0x2b7   : > { %v1331_v32 = vpop.permute.xlu0 %1330 }
 0x2b8   : > { %v1352_v18 = vadd.f32 %v5695_v14, %v1331_v32  ;;  %v1239_v32 = vmul.f32 %v5735_v16, %v1143_v15 }
 0x2b9   : > { %v1119_v48 = vpop.f32.mrf.mxu0 }
 0x2ba   : > { %v1368_v21 = vmul.f32 0.2, %v1352_v18  ;;  %v1253_v12 = vadd.f32 %v1237_v52, %v1119_v48 }
 0x2bc   : > { %1270 = vst.msk [vmem:[#allocation4 + $0x68] sm:$0xff] %vm7797_vm12, %v1253_v12  ;;  %v1384_v51 = vmax.f32 %v1352_v18, %v1368_v21  ;;  %v4777_v18 = vld [vmem:[%s5063_s9 + $0x78] sm:$0xff] }
 0x2be   : > { %v6010_v42 = vsel %vm5410_vm8, %v1384_v51, -1e+30 }
 0x2bf   : > { %1446 = vmax.xlane.f32.xlu1 %v6010_v42 }
 0x2c1   : > { %v1122_v7 = vpop.f32.mrf.mxu0 }
 0x2c2   : > { %v1254_v49 = vadd.f32 %v1238_v31, %v1122_v7 }
 0x2c4   : > { %1271 = vst.msk [vmem:[#allocation4 + $0x70] sm:$0xff] %vm7797_vm12, %v1254_v49  ;;  %v6030_v49 = vld [vmem:[#allocation2 + $0x70] sm:$0xff] }
 0x2c9   : > { %v1125_v52 = vpop.f32.mrf.mxu0 }
 0x2ca   : > { %v1255_v48 = vadd.f32 %v1239_v32, %v1125_v52 }
 0x2cc   : > { %1272 = vst.msk [vmem:[#allocation4 + $0x78] sm:$0xff] %vm7797_vm12, %v1255_v48 }
 0x2d8   : > { %1334 = vperm.xlu1 %4393, %v4777_v18  }
 0x2e0   : > { %1521 = vperm.xlu1 %4393, %v5878_v44  }
 0x2e8   : > { %1536 = vperm.xlu1 %4393, %v5896_v26  }
 0x2f0   : > { %1551 = vperm.xlu1 %4393, %v5924_v50  }
 0x2f8   : > { %1566 = vperm.xlu1 %4393, %v5952_v54  }
 0x300   : > { %1581 = vperm.xlu1 %4393, %v5978_v57  }
 0x308   : > { %v1517_v30 = vpop.permute.xlu0 %1516 }
 0x309   : > { %v1594_v7 = vsub.f32 %v5771_v20, %v1517_v30 }
 0x30b   : > { %v1610_v16 = vmul.f32 1.442695, %v1594_v7 }
 0x30d   : > { %4584 = vpow2.f32 %v1610_v16 }
 0x310   : > { %v1532_v31 = vpop.permute.xlu0 %1531 }
 0x311   : > { %v1597_v21 = vsub.f32 %v5792_v25, %v1532_v31 }
 0x313   : > { %v1616_v12 = vmul.f32 1.442695, %v1597_v21  ;;  %v6025_v51 = vpop.eup %4584 }
 0x315   : > { %4586 = vpow2.f32 %v1616_v12 }
 0x31b   : > { %v6028_v1 = vpop.eup %4586 }
 0x32a   : > { %1674 = vadd.xlane.f32.xlu1 %v6025_v51 }
 0x332   : > { %v1447_v15 = vpop.xlane.xlu1 %1446  ;;  %1680 = vadd.xlane.f32.xlu1 %v6028_v1 }
 0x333   : > { %v6034_v20 = vmax.f32 %v6030_v49, %v1447_v15 }
 0x335   : > { %1753 = vst.msk [vmem:[#allocation2 + $0x70] sm:$0xff] %vm1722_vm5, %v6034_v20 }
 0x34a   : > { %v1335_v25 = vpop.permute.xlu1 %1334 }
 0x34b   : > { %v1353_v32 = vadd.f32 %v5695_v14, %v1335_v25 }
 0x34d   : > { %v1369_v52 = vmul.f32 0.2, %v1353_v32 }
 0x34f   : > { %v1385_v48 = vmax.f32 %v1353_v32, %v1369_v52 }
 0x351   : > { %v6041_v30 = vsel %vm5395_vm3, %v1385_v48, -1e+30 }
 0x352   : > { %1448 = vmax.xlane.f32.xlu2 %v6041_v30  ;;  %v1522_v7 = vpop.permute.xlu1 %1521 }
 0x353   : > { %v1595_v16 = vsub.f32 %v5730_v58, %v1522_v7 }
 0x355   : > { %v1612_v31 = vmul.f32 1.442695, %v1595_v16 }
 0x357   : > { %4588 = vpow2.f32 %v1612_v31 }
 0x35a   : > { %v1537_v21 = vpop.permute.xlu1 %1536 }
 0x35b   : > { %v1598_v12 = vsub.f32 %v5750_v28, %v1537_v21  ;;  %v1482_v21 = vmul.f32 1.442695, %v1466_v40 }
 0x35d   : > { %v6046_v15 = vpop.eup %4588  ;;  %v1618_v27 = vmul.f32 1.442695, %v1598_v12  ;;  %v4779_v12 = vld [vmem:[%s5078_s7] sm:$0xff] }
 0x35e   : > { %1676 = vadd.xlane.f32.xlu0 %v6046_v15 }
 0x35f   : > { %4590 = vpow2.f32 %v1618_v27 }
 0x362   : > { %v1552_v14 = vpop.permute.xlu1 %1551 }
 0x363   : > { %v1601_v25 = vsub.f32 %v5776_v35, %v1552_v14 }
 0x365   : > { %v6050_v32 = vpop.eup %4590  ;;  %v1624_v52 = vmul.f32 1.442695, %v1601_v25  ;;  %v7879_v25 = vsub.f32 %v5941_v0, %v5945_v8  ;;  %v1645_v0 = vld [vmem:[#allocation3 + $0x18] sm:$0xff] }
 0x366   : > { %1682 = vadd.xlane.f32.xlu0 %v6050_v32 }
 0x367   : > { %4592 = vpow2.f32 %v1624_v52  ;;  %v1488_v52 = vmul.f32 1.442695, %v7879_v25 }
 0x36a   : > { %1526 = vperm.xlu2 %4391, %v5888_v38   ;;  %v1567_v58 = vpop.permute.xlu1 %1566 }
 0x36b   : > { %v1604_v28 = vsub.f32 %v5797_v47, %v1567_v58 }
 0x36d   : > { %v6055_v48 = vpop.eup %4592  ;;  %v1630_v7 = vmul.f32 1.442695, %v1604_v28 }
 0x36e   : > { %1688 = vadd.xlane.f32.xlu0 %v6055_v48 }
 0x36f   : > { %4594 = vpow2.f32 %v1630_v7  ;;  %v4780_v7 = vld [vmem:[%s5078_s7 + $0x38] sm:$0xff] }
 0x372   : > { %1546 = vperm.xlu2 %4391, %v5973_v24   ;;  %v1582_v35 = vpop.permute.xlu1 %1581 }
 0x373   : > { %v1607_v27 = vsub.f32 %v5815_v60, %v1582_v35  ;;  %v4778_v60 = vld [vmem:[%s5078_s7 + $0x8] sm:$0xff]  ;;  %v4781_v35 = vld [vmem:[%s5078_s7 + $0x30] sm:$0xff] }
 0x374   : > { %v4394_v14 = vpack.i.bf16 %v4778_v60, %v4779_v12  ;;  %v4782_v12 = vld [vmem:[%s5078_s7 + $0x58] sm:$0xff] }
 0x375   : > { %v6060_v16 = vpop.eup %4594  ;;  %v1636_v31 = vmul.f32 1.442695, %v1607_v27  ;;  %v4409_v27 = vpack.i.bf16 %v4780_v7, %v4781_v35 }
 0x376   : > { %1694 = vadd.xlane.f32.xlu0 %v6060_v16 }
 0x377   : > { %4596 = vpow2.f32 %v1636_v31 }
 0x378   : > { %4598 = vpow2.f32 %v1482_v21 }
 0x379   : > { %4600 = vpow2.f32 %v1488_v52  ;;  %v1472_v52 = vsub.f32 %v5969_v22, %v5973_v24  ;;  %v1478_v22 = vsub.f32 %v5996_v4, %v6000_v9  ;;  %v1417_v24 = vld [vmem:[#allocation2 + $0x78] sm:$0xff] }
 0x37a   : > { %1561 = vperm.xlu2 %4391, %v5990_v3  }
 0x37d   : > { %v6064_v47 = vpop.eup %4596 }
 0x37e   : > { %1700 = vadd.xlane.f32.xlu0 %v6064_v47  ;;  %v4599_v58 = vpop.eup %4598 }
 0x37f   : > { %v1658_v61 = vmul.f32 %v4599_v58, %v1642_v45  ;;  %v4601_v31 = vpop.eup %4600  ;;  %v1542_v45 = vpop.permute.xlu0 %1541 }
 0x380   : > { %v1661_v8 = vmul.f32 %v4601_v31, %v1645_v0 }
 0x382   : > { %1576 = vperm.xlu2 %4391, %v6000_v9  }
 0x387   : > { %v1557_v35 = vpop.permute.xlu0 %1556 }
 0x392   : > { %1586 = vperm.xlu0 %4392, %v6034_v20  }
 0x39a   : > { %4395 = vrot.lane.b32.xlu0 %v4394_v14, %s4951_s27  ;;  %v4783_v14 = vld [vmem:[%s5078_s7 + $0x50] sm:$0xff] }
 0x39b   : > { %v4419_v25 = vpack.i.bf16 %v4782_v12, %v4783_v14  ;;  %v1643_v12 = vld [vmem:[#allocation3 + $0x8] sm:$0xff] }
 0x39d   : > { %v1675_v40 = vpop.xlane.xlu1 %1674 }
 0x39e   : > { %v1706_v28 = vadd.f32 %v1675_v40, %v1658_v61  ;;  %v1494_v61 = vmul.f32 1.442695, %v1472_v52  ;;  %v1475_v40 = vsub.f32 %v5986_v41, %v5990_v3  ;;  %v1470_v41 = vsub.f32 %v5893_v34, %v5896_v26  ;;  %v6105_v3 = vpop.permute.xlu0 %1571 }
 0x39f   : > { %v1473_v34 = vsub.f32 %v5919_v19, %v5924_v50 }
 0x3a0   : > { %1723 = vst.msk [vmem:[#allocation3] sm:$0xff] %vm1722_vm5, %v1706_v28  ;;  %4602 = vpow2.f32 %v1494_v61  ;;  %v1467_v28 = vsub.f32 %v5875_v39, %v5878_v44  ;;  %v1500_v7 = vmul.f32 1.442695, %v1475_v40  ;;  %v1506_v39 = vmul.f32 1.442695, %v1478_v22 }
 0x3a1   : > { %v1599_v61 = vsub.f32 %v5761_v23, %v1542_v45  ;;  %v1476_v22 = vsub.f32 %v5947_v11, %v5952_v54  ;;  %v1646_v23 = vld [vmem:[#allocation3 + $0x20] sm:$0xff] }
 0x3a2   : > { %4410 = vrot.lane.b32.xlu0 %v4409_v27, %s4951_s27  ;;  %4604 = vpow2.f32 %v1500_v7  ;;  %v1496_v7 = vmul.f32 1.442695, %v1473_v34 }
 0x3a3   : > { %v1620_v19 = vmul.f32 1.442695, %v1599_v61 }
 0x3a5   : > { %v1681_v21 = vpop.xlane.xlu1 %1680 }
 0x3a6   : > { %v1709_v60 = vadd.f32 %v1681_v21, %v1661_v8  ;;  %v6092_v27 = vpop.eup %4602  ;;  %v1490_v8 = vmul.f32 1.442695, %v1470_v41 }
 0x3a8   : > { %1726 = vst.msk [vmem:[#allocation3 + $0x18] sm:$0xff] %vm1722_vm5, %v1709_v60  ;;  %v6103_v44 = vpop.eup %4604 }
 0x3aa   : > { %4420 = vrot.lane.b32.xlu0 %v4419_v25, %s4951_s27 }
 0x3b2   : > { %1902 = vperm.xlu0 %4392, %v4599_v58   ;;  %v1484_v58 = vmul.f32 1.442695, %v1467_v28 }
 0x3b4   : > { %4606 = vpow2.f32 %v1484_v58 }
 0x3b5   : > { %4608 = vpow2.f32 %v1506_v39  ;;  %v1602_v39 = vsub.f32 %v5781_v13, %v1557_v35  ;;  %v1479_v13 = vsub.f32 %v5975_v59, %v5978_v57  ;;  %v1649_v35 = vld [vmem:[#allocation3 + $0x38] sm:$0xff] }
 0x3b6   : > { %4610 = vpow2.f32 %v1490_v8 }
 0x3b7   : > { %v1626_v54 = vmul.f32 1.442695, %v1602_v39 }
 0x3ba   : > { %1917 = vperm.xlu0 %4392, %v4601_v31   ;;  %v6109_v9 = vpop.eup %4606 }
 0x3bb   : > { %v1659_v25 = vmul.f32 %v6109_v9, %v1643_v12  ;;  %v6115_v52 = vpop.eup %4608 }
 0x3c2   : > { %1932 = vperm.xlu0 %4392, %v6092_v27  }
 0x3c5   : > { %v1449_v31 = vpop.xlane.xlu2 %1448 }
 0x3c6   : > { %v6097_v0 = vmax.f32 %v1417_v24, %v1449_v31 }
 0x3c8   : > { %1754 = vst.msk [vmem:[#allocation2 + $0x78] sm:$0xff] %vm1722_vm5, %v6097_v0  ;;  %v1481_v4 = vsub.f32 %v1417_v24, %v6097_v0 }
 0x3ca   : > { %1947 = vperm.xlu0 %4392, %v6103_v44   ;;  %v1512_v26 = vmul.f32 1.442695, %v1481_v4  ;;  %v1502_v4 = vmul.f32 1.442695, %v1476_v22 }
 0x3cd   : > { %v1527_v21 = vpop.permute.xlu2 %1526 }
 0x3ce   : > { %v1596_v60 = vsub.f32 %v5743_v43, %v1527_v21  ;;  %v6120_v43 = vpop.eup %4610 }
 0x3cf   : > { %v1662_v31 = vmul.f32 %v6120_v43, %v1646_v23 }
 0x3d0   : > { %v1614_v14 = vmul.f32 1.442695, %v1596_v60 }
 0x3d1   : > { %v1677_v40 = vpop.xlane.xlu0 %1676 }
 0x3d2   : > { %4612 = vpow2.f32 %v1614_v14  ;;  %v1707_v28 = vadd.f32 %v1677_v40, %v1659_v25  ;;  %1962 = vperm.xlu0 %4392, %v6115_v52   ;;  %v1605_v25 = vsub.f32 %v5802_v37, %v6105_v3  ;;  %v1508_v40 = vmul.f32 1.442695, %v1479_v13  ;;  %v1652_v37 = vld [vmem:[#allocation3 + $0x50] sm:$0xff] }
 0x3d3   : > { %4614 = vpow2.f32 %v1512_v26 }
 0x3d4   : > { %1724 = vst.msk [vmem:[#allocation3 + $0x8] sm:$0xff] %vm1722_vm5, %v1707_v28  ;;  %4616 = vpow2.f32 %v1496_v7  ;;  %v1632_v57 = vmul.f32 1.442695, %v1605_v25  ;;  %v4786_v25 = vld [vmem:[%s5078_s7 + $0x48] sm:$0xff] }
 0x3d5   : > { %v1547_v50 = vpop.permute.xlu2 %1546  ;;  %4618 = vpow2.f32 %v1620_v19 }
 0x3d6   : > { %v1600_v58 = vsub.f32 %v5810_v56, %v1547_v50 }
 0x3d8   : > { %v6125_v45 = vpop.eup %4612  ;;  %v1622_v24 = vmul.f32 1.442695, %v1600_v58 }
 0x3d9   : > { %v6128_v41 = vpop.eup %4614  ;;  %1678 = vadd.xlane.f32.xlu2 %v6125_v45  ;;  %v1683_v8 = vpop.xlane.xlu0 %1682 }
 0x3da   : > { %4620 = vpow2.f32 %v1622_v24  ;;  %v1710_v56 = vadd.f32 %v1683_v8, %v1662_v31  ;;  %1977 = vperm.xlu0 %4392, %v6128_v41   ;;  %v6134_v11 = vpop.eup %4616  ;;  %v1655_v31 = vld [vmem:[#allocation3 + $0x68] sm:$0xff] }
 0x3db   : > { %v6137_v34 = vpop.eup %4618  ;;  %4622 = vpow2.f32 %v1502_v4  ;;  %v1665_v14 = vmul.f32 %v6134_v11, %v1649_v35  ;;  %v4784_v35 = vld [vmem:[%s5078_s7 + $0x18] sm:$0xff] }
 0x3dc   : > { %1727 = vst.msk [vmem:[#allocation3 + $0x20] sm:$0xff] %vm1722_vm5, %v1710_v56  ;;  %4624 = vpow2.f32 %v1626_v54 }
 0x3dd   : > { %v1562_v21 = vpop.permute.xlu2 %1561 }
 0x3de   : > { %v1603_v60 = vsub.f32 %v5822_v53, %v1562_v21 }
 0x3e0   : > { %v6141_v26 = vpop.eup %4620  ;;  %v1628_v12 = vmul.f32 1.442695, %v1603_v60 }
 0x3e1   : > { %1686 = vadd.xlane.f32.xlu1 %v6141_v26  ;;  %1684 = vadd.xlane.f32.xlu2 %v6137_v34  ;;  %v1689_v53 = vpop.xlane.xlu0 %1688  ;;  %v6149_v59 = vpop.eup %4622 }
 0x3e2   : > { %4626 = vpow2.f32 %v1628_v12  ;;  %v1713_v61 = vadd.f32 %v1689_v53, %v1665_v14  ;;  %v6152_v19 = vpop.eup %4624  ;;  %v1668_v58 = vmul.f32 %v6149_v59, %v1652_v37  ;;  %v4785_v12 = vld [vmem:[%s5078_s7 + $0x10] sm:$0xff]  ;;  %v4787_v53 = vld [vmem:[%s5078_s7 + $0x40] sm:$0xff] }
 0x3e3   : > { %4628 = vpow2.f32 %v1508_v40  ;;  %v4399_v14 = vpack.i.bf16 %v4784_v35, %v4785_v12  ;;  %v4788_v40 = vld [vmem:[%s5078_s7 + $0x78] sm:$0xff] }
 0x3e4   : > { %1730 = vst.msk [vmem:[#allocation3 + $0x38] sm:$0xff] %vm1722_vm5, %v1713_v61  ;;  %4630 = vpow2.f32 %v1632_v57  ;;  %v4414_v61 = vpack.i.bf16 %v4786_v25, %v4787_v53  ;;  %v4789_v57 = vld [vmem:[%s5078_s7 + $0x70] sm:$0xff]  ;;  %v1650_v25 = vld [vmem:[#allocation3 + $0x40] sm:$0xff] }
 0x3e5   : > { %v1577_v28 = vpop.permute.xlu2 %1576 }
 0x3e6   : > { %v1606_v7 = vsub.f32 %v5828_v62, %v1577_v28  ;;  %v4429_v28 = vpack.i.bf16 %v4788_v40, %v4789_v57 }
 0x3e8   : > { %v6154_v3 = vpop.eup %4626  ;;  %v1634_v50 = vmul.f32 1.442695, %v1606_v7 }
 0x3e9   : > { %1692 = vadd.xlane.f32.xlu1 %v6154_v3  ;;  %1690 = vadd.xlane.f32.xlu2 %v6152_v19  ;;  %v1695_v22 = vpop.xlane.xlu0 %1694  ;;  %v6160_v62 = vpop.eup %4628 }
 0x3ea   : > { %4632 = vpow2.f32 %v1634_v50  ;;  %v1716_v23 = vadd.f32 %v1695_v22, %v1668_v58  ;;  %v6162_v24 = vpop.eup %4630  ;;  %v1671_v8 = vmul.f32 %v6160_v62, %v1655_v31  ;;  %v1644_v58 = vld [vmem:[#allocation3 + $0x10] sm:$0xff] }
 0x3ec   : > { %1733 = vst.msk [vmem:[#allocation3 + $0x50] sm:$0xff] %vm1722_vm5, %v1716_v23 }
 0x3f0   : > { %v6164_v39 = vpop.eup %4632 }
 0x3f1   : > { %1698 = vadd.xlane.f32.xlu1 %v6164_v39  ;;  %1696 = vadd.xlane.f32.xlu2 %v6162_v24  ;;  %v1701_v56 = vpop.xlane.xlu0 %1700 }
 0x3f2   : > { %v1719_v4 = vadd.f32 %v1701_v56, %v1671_v8  ;;  %v1648_v56 = vld [vmem:[#allocation3 + $0x30] sm:$0xff] }
 0x3f4   : > { %1736 = vst.msk [vmem:[#allocation3 + $0x68] sm:$0xff] %vm1722_vm5, %v1719_v4  ;;  %v1647_v4 = vld [vmem:[#allocation3 + $0x28] sm:$0xff] }
 0x404   : > { %v1587_v54 = vpop.permute.xlu0 %1586 }
 0x405   : > { %v1608_v21 = vsub.f32 %v6010_v42, %v1587_v54  ;;  %v1468_v42 = vsub.f32 %v5884_v55, %v5888_v38  ;;  %v7881_v55 = vsub.f32 %v5921_v29, %v5931_v33 }
 0x407   : > { %v1638_v60 = vmul.f32 1.442695, %v1608_v21  ;;  %v1486_v7 = vmul.f32 1.442695, %v1468_v42  ;;  %v1498_v38 = vmul.f32 1.442695, %v7881_v55 }
 0x409   : > { %4634 = vpow2.f32 %v1638_v60  ;;  %v7882_v60 = vsub.f32 %v5949_v17, %v5959_v36 }
 0x40a   : > { %4636 = vpow2.f32 %v1486_v7  ;;  %v1654_v7 = vld [vmem:[#allocation3 + $0x60] sm:$0xff] }
 0x40b   : > { %v1504_v35 = vmul.f32 1.442695, %v7882_v60  ;;  %v4793_v60 = vld [vmem:[%s5078_s7 + $0x60] sm:$0xff] }
 0x40f   : > { %v6171_v13 = vpop.eup %4634 }
 0x410   : > { %1702 = vadd.xlane.f32.xlu2 %v6171_v13  ;;  %v4637_v50 = vpop.eup %4636 }
 0x411   : > { %v1660_v22 = vmul.f32 %v4637_v50, %v1644_v58 }
 0x428   : > { %1591 = vperm.xlu2 %4391, %v6097_v0   ;;  %v7880_v0 = vsub.f32 %v5902_v6, %v5906_v10  ;;  %v1664_v6 = vmul.f32 %v6092_v27, %v1648_v56  ;;  %v1651_v27 = vld [vmem:[#allocation3 + $0x48] sm:$0xff] }
 0x429   : > { %v1667_v53 = vmul.f32 %v6103_v44, %v1651_v27  ;;  %v1657_v27 = vld [vmem:[#allocation3 + $0x78] sm:$0xff] }
 0x42a   : > { %v1492_v37 = vmul.f32 1.442695, %v7880_v0  ;;  %v1653_v0 = vld [vmem:[#allocation3 + $0x58] sm:$0xff] }
 0x42c   : > { %4638 = vpow2.f32 %v1492_v37 }
 0x42d   : > { %4640 = vpow2.f32 %v1498_v38 }
 0x42e   : > { %4642 = vpow2.f32 %v1504_v35 }
 0x430   : > { %4400 = vrot.lane.b32.xlu2 %v4399_v14, %s4951_s27  ;;  %v1480_v14 = vsub.f32 %v6030_v49, %v6034_v20  ;;  %v1670_v49 = vmul.f32 %v6115_v52, %v1654_v7 }
 0x432   : > { %v4639_v8 = vpop.eup %4638  ;;  %v1510_v36 = vmul.f32 1.442695, %v1480_v14 }
 0x433   : > { %v1663_v10 = vmul.f32 %v4639_v8, %v1647_v4  ;;  %v4641_v33 = vpop.eup %4640 }
 0x434   : > { %4644 = vpow2.f32 %v1510_v36 }
 0x438   : > { %4415 = vrot.lane.b32.xlu2 %v4414_v61, %s4951_s27  ;;  %v1666_v61 = vmul.f32 %v4641_v33, %v1650_v25  ;;  %v1673_v25 = vmul.f32 %v6128_v41, %v1657_v27  ;;  %v4794_v27 = vld [vmem:[%s5063_s9] sm:$0xff] }
 0x440   : > { %4430 = vrot.lane.b32.xlu2 %v4429_v28, %s4951_s27  ;;  %v4643_v28 = vpop.eup %4642 }
 0x441   : > { %v1669_v20 = vmul.f32 %v4643_v28, %v1653_v0 }
 0x448   : > { %1912 = vperm.xlu2 %4391, %v4637_v50  }
 0x44c   : > { %v1679_v23 = vpop.xlane.xlu2 %1678 }
 0x44d   : > { %v1708_v31 = vadd.f32 %v1679_v23, %v1660_v22  ;;  %v4645_v22 = vpop.eup %4644  ;;  %v1656_v23 = vld [vmem:[#allocation3 + $0x70] sm:$0xff] }
 0x44e   : > { %v1672_v55 = vmul.f32 %v4645_v22, %v1656_v23 }
 0x44f   : > { %1725 = vst.msk [vmem:[#allocation3 + $0x10] sm:$0xff] %vm1722_vm5, %v1708_v31 }
 0x450   : > { %1927 = vperm.xlu2 %4391, %v4639_v8  }
 0x454   : > { %v1687_v54 = vpop.xlane.xlu1 %1686  ;;  %v1685_v21 = vpop.xlane.xlu2 %1684 }
 0x455   : > { %v1712_v12 = vadd.f32 %v1687_v54, %v1664_v6  ;;  %v1711_v29 = vadd.f32 %v1685_v21, %v1663_v10  ;;  %v4790_v6 = vld [vmem:[%s5078_s7 + $0x28] sm:$0xff]  ;;  %v4791_v10 = vld [vmem:[%s5078_s7 + $0x20] sm:$0xff] }
 0x456   : > { %v4404_v54 = vpack.i.bf16 %v4790_v6, %v4791_v10  ;;  %v4792_v21 = vld [vmem:[%s5078_s7 + $0x68] sm:$0xff] }
 0x457   : > { %1729 = vst.msk [vmem:[#allocation3 + $0x30] sm:$0xff] %vm1722_vm5, %v1712_v12  ;;  %v4424_v35 = vpack.i.bf16 %v4792_v21, %v4793_v60  ;;  %v1885_v6 = vld [vmem:[#allocation4 + $0x8] sm:$0xff] }
 0x458   : > { %1728 = vst.msk [vmem:[#allocation3 + $0x28] sm:$0xff] %vm1722_vm5, %v1711_v29  ;;  %1942 = vperm.xlu2 %4391, %v4641_v33  }
 0x45c   : > { %v1693_v42 = vpop.xlane.xlu1 %1692  ;;  %v1691_v17 = vpop.xlane.xlu2 %1690 }
 0x45d   : > { %v1715_v40 = vadd.f32 %v1693_v42, %v1667_v53  ;;  %v1714_v57 = vadd.f32 %v1691_v17, %v1666_v61 }
 0x45f   : > { %1732 = vst.msk [vmem:[#allocation3 + $0x48] sm:$0xff] %vm1722_vm5, %v1715_v40 }
 0x460   : > { %1731 = vst.msk [vmem:[#allocation3 + $0x40] sm:$0xff] %vm1722_vm5, %v1714_v57  ;;  %1957 = vperm.xlu2 %4391, %v4643_v28  }
 0x464   : > { %v1699_v37 = vpop.xlane.xlu1 %1698  ;;  %v1697_v44 = vpop.xlane.xlu2 %1696 }
 0x465   : > { %v1718_v50 = vadd.f32 %v1699_v37, %v1670_v49  ;;  %v1717_v58 = vadd.f32 %v1697_v44, %v1669_v20 }
 0x467   : > { %1735 = vst.msk [vmem:[#allocation3 + $0x60] sm:$0xff] %vm1722_vm5, %v1718_v50 }
 0x468   : > { %1734 = vst.msk [vmem:[#allocation3 + $0x58] sm:$0xff] %vm1722_vm5, %v1717_v58  ;;  %1972 = vperm.xlu2 %4391, %v4645_v22   ;;  %v4953_v58 = vmov 2  }
 0x469   : > { %4435 = vset.pattern.permute.xlu0 %v4953_v58 }
 0x470   : > { %4434 = vset.pattern.permute.xlu2 %v4953_v58 }
 0x483   : > { %v1703_v38 = vpop.xlane.xlu2 %1702 }
 0x484   : > { %v1720_v31 = vadd.f32 %v1703_v38, %v1672_v55 }
 0x486   : > { %1737 = vst.msk [vmem:[#allocation3 + $0x70] sm:$0xff] %vm1722_vm5, %v1720_v31 }
 0x48b   : > { %v1592_v52 = vpop.permute.xlu2 %1591 }
 0x48c   : > { %v1609_v8 = vsub.f32 %v6041_v30, %v1592_v52 }
 0x48e   : > { %v1640_v56 = vmul.f32 1.442695, %v1609_v8 }
 0x490   : > { %4646 = vpow2.f32 %v1640_v56 }
 0x493   : > { %v4401_v30 = vpop.permute.xlu2 %4400 }
 0x494   : > { %v4403_v20 = vunpack.i.h.bf16 %v4401_v30  ;;  %v4402_v37 = vunpack.i.l.bf16 %v4401_v30 }
 0x496   : > { %v6209_v4 = vpop.eup %4646 }
 0x497   : > { %1704 = vadd.xlane.f32.xlu1 %v6209_v4 }
 0x49b   : > { %v4416_v12 = vpop.permute.xlu2 %4415 }
 0x49c   : > { %v4418_v57 = vunpack.i.h.bf16 %v4416_v12  ;;  %v4417_v41 = vunpack.i.l.bf16 %v4416_v12 }
 0x4a3   : > { %v4431_v29 = vpop.permute.xlu2 %4430 }
 0x4a4   : > { %v4433_v33 = vunpack.i.h.bf16 %v4431_v29  ;;  %v4432_v14 = vunpack.i.l.bf16 %v4431_v29 }
 0x4a6   : > { %1819 = vmatpush.msra.mxu1 %v4433_v33  ;;  %v1884_v33 = vld [vmem:[#allocation4] sm:$0xff] }
 0x4a8   : > { %1820 = vmatpush.msra.mxu1 %v4432_v14 }
 0x4b0   : > { %4405 = vrot.lane.b32.xlu1 %v4404_v54, %s4951_s27 }
 0x4b8   : > { %4425 = vrot.lane.b32.xlu1 %v4424_v35, %s4951_s27 }
 0x4c0   : > { %1907 = vperm.xlu1 %4393, %v6109_v9  }
 0x4c8   : > { %1922 = vperm.xlu1 %4393, %v6120_v43   ;;  %v4396_v43 = vpop.permute.xlu0 %4395 }
 0x4c9   : > { %v4398_v44 = vunpack.i.h.bf16 %v4396_v43  ;;  %v4397_v50 = vunpack.i.l.bf16 %v4396_v43 }
 0x4d0   : > { %1937 = vperm.xlu1 %4393, %v6134_v11   ;;  %v4411_v11 = vpop.permute.xlu0 %4410 }
 0x4d1   : > { %v4413_v28 = vunpack.i.h.bf16 %v4411_v11  ;;  %v4412_v7 = vunpack.i.l.bf16 %v4411_v11  ;;  %v1888_v11 = vld [vmem:[#allocation4 + $0x20] sm:$0xff] }
 0x4d8   : > { %1952 = vperm.xlu1 %4393, %v6149_v59  }
 0x4e0   : > { %1967 = vperm.xlu1 %4393, %v6160_v62   ;;  %v4421_v62 = vpop.permute.xlu0 %4420 }
 0x4e1   : > { %v4423_v36 = vunpack.i.h.bf16 %v4421_v62  ;;  %v4422_v40 = vunpack.i.l.bf16 %v4421_v62 }
 0x4e8   : > { %4436 = vset.pattern.permute.xlu1 %v4953_v58  ;;  %v4807_v58 = vld [vmem:[%s5063_s9 + $0x50] sm:$0xff] }
 0x50a   : > { %v1705_v53 = vpop.xlane.xlu1 %1704 }
 0x50b   : > { %v1721_v9 = vadd.f32 %v1705_v53, %v1673_v25 }
 0x50d   : > { %1738 = vst.msk [vmem:[#allocation3 + $0x78] sm:$0xff] %vm1722_vm5, %v1721_v9  ;;  %vm2076_vm5 = vcmask 130112  }
 0x522   : > { %v4406_v61 = vpop.permute.xlu1 %4405 }
 0x523   : > { %v4408_v0 = vunpack.i.h.bf16 %v4406_v61  ;;  %v4407_v49 = vunpack.i.l.bf16 %v4406_v61  ;;  %v4795_v61 = vld [vmem:[%s5063_s9 + $0x18] sm:$0xff] }
 0x52a   : > { %v4426_v59 = vpop.permute.xlu1 %4425 }
 0x52b   : > { %v4428_v42 = vunpack.i.h.bf16 %v4426_v59  ;;  %v4427_v17 = vunpack.i.l.bf16 %v4426_v59  ;;  %v4796_v59 = vld [vmem:[%s5063_s9 + $0x8] sm:$0xff] }
 0x52d   : > { %1821 = vmatpush.msra.mxu1 %v4428_v42 }
 0x52f   : > { %1822 = vmatpush.msra.mxu1 %v4427_v17 }
 0x531   : > { %1823 = vmatpush.msra.mxu1 %v4423_v36 }
 0x533   : > { %1824 = vmatpush.msra.mxu1 %v4422_v40  ;;  %v1886_v40 = vld [vmem:[#allocation4 + $0x10] sm:$0xff] }
 0x535   : > { %1825 = vmatpush.msra.mxu1 %v4418_v57  ;;  %v4797_v57 = vld [vmem:[%s5063_s9 + $0x28] sm:$0xff] }
 0x537   : > { %1826 = vmatpush.msra.mxu1 %v4417_v41  ;;  %v4798_v41 = vld [vmem:[%s5063_s9 + $0x30] sm:$0xff] }
 0x539   : > { %1827 = vmatpush.msra.mxu1 %v4413_v28 }
 0x53b   : > { %1828 = vmatpush.msra.mxu1 %v4412_v7  ;;  %v4799_v7 = vld [vmem:[%s5063_s9 + $0x10] sm:$0xff] }
 0x53d   : > { %1829 = vmatpush.msra.mxu1 %v4408_v0 }
 0x53f   : > { %1830 = vmatpush.msra.mxu1 %v4407_v49 }
 0x541   : > { %1831 = vmatpush.msra.mxu1 %v4403_v20  ;;  %v1887_v20 = vld [vmem:[#allocation4 + $0x18] sm:$0xff] }
 0x543   : > { %1832 = vmatpush.msra.mxu1 %v4402_v37  ;;  %v4800_v37 = vld [vmem:[%s5063_s9 + $0x40] sm:$0xff] }
 0x545   : > { %1833 = vmatpush.msra.mxu1 %v4398_v44  ;;  %v4801_v44 = vld [vmem:[%s5063_s9 + $0x48] sm:$0xff] }
 0x547   : > { %1834 = vmatpush.msra.mxu1 %v4397_v50 }
 0x548   : > { %1835 = vmatmul.f32.vlgmr.msra.gmra.mxu1 %v6025_v51 }
 0x550   : > { %1838 = vmatmul.f32.gmra.mxu1 %v6046_v15 }
 0x558   : > { %1841 = vmatmul.f32.gmra.mxu1 %v6125_v45  ;;  %v6248_v45 = vpop.permute.xlu2 %1912 }
 0x559   : > { %v1982_v28 = vmul.f32 %v6248_v45, %v1886_v40  ;;  %v4805_v45 = vld [vmem:[%s5063_s9 + $0x38] sm:$0xff] }
 0x560   : > { %1844 = vmatmul.f32.gmra.mxu1 %v6028_v1 }
 0x568   : > { %1847 = vmatmul.f32.gmra.mxu1 %v6050_v32 }
 0x570   : > { %1850 = vmatmul.f32.gmra.mxu1 %v6137_v34 }
 0x578   : > { %1853 = vmatmul.f32.gmra.mxu1 %v6141_v26  ;;  %v6251_v26 = vpop.permute.xlu2 %1927 }
 0x580   : > { %1856 = vmatmul.f32.gmra.mxu1 %v6055_v48 }
 0x588   : > { %1859 = vmatmul.f32.gmra.mxu1 %v6152_v19 }
 0x590   : > { %1862 = vmatmul.f32.gmra.mxu1 %v6154_v3  ;;  %v1908_v3 = vpop.permute.xlu1 %1907 }
 0x591   : > { %v1981_v54 = vmul.f32 %v1908_v3, %v1885_v6  ;;  %v1889_v3 = vld [vmem:[#allocation4 + $0x28] sm:$0xff] }
 0x598   : > { %1865 = vmatmul.f32.gmra.mxu1 %v6060_v16  ;;  %v1923_v22 = vpop.permute.xlu1 %1922 }
 0x599   : > { %v1984_v42 = vmul.f32 %v1923_v22, %v1888_v11 }
 0x5a0   : > { %1868 = vmatmul.f32.gmra.mxu1 %v6162_v24  ;;  %v6254_v24 = vpop.permute.xlu2 %1942  ;;  %v6260_v31 = vpop.permute.xlu1 %1937 }
 0x5a8   : > { %1871 = vmatmul.f32.gmra.mxu1 %v6164_v39  ;;  %v6257_v55 = vpop.permute.xlu2 %1957  ;;  %v6267_v10 = vpop.permute.xlu1 %1952 }
 0x5b0   : > { %1874 = vmatmul.f32.gmra.mxu1 %v6064_v47  ;;  %v6263_v8 = vpop.permute.xlu2 %1972  ;;  %v6274_v12 = vpop.permute.xlu1 %1967 }
 0x5b8   : > { %1877 = vmatmul.f32.gmra.mxu1 %v6171_v13  ;;  %v1903_v13 = vpop.permute.xlu0 %1902 }
 0x5b9   : > { %v1980_v25 = vmul.f32 %v1903_v13, %v1884_v33  ;;  %v1985_v13 = vmul.f32 %v6251_v26, %v1889_v3 }
 0x5c0   : > { %1880 = vmatmul.f32.gmra.mxu1 %v6209_v4  ;;  %v1918_v38 = vpop.permute.xlu0 %1917 }
 0x5c1   : > { %v1983_v50 = vmul.f32 %v1918_v38, %v1887_v20  ;;  %v1890_v38 = vld [vmem:[#allocation4 + $0x30] sm:$0xff] }
 0x5c2   : > { %v1898_v20 = vld [vmem:[#allocation4 + $0x70] sm:$0xff] }
 0x5c5   : > { %v1836_v51 = vpop.f32.mrf.mxu1 }
 0x5c6   : > { %2012 = vrot.lane.b32.xlu1 %v1836_v51, %s4952_s28  ;;  %v4802_v51 = vld [vmem:[%s5063_s9 + $0x20] sm:$0xff] }
 0x5c8   : > { %v6265_v56 = vpop.permute.xlu0 %1932 }
 0x5cd   : > { %v1839_v1 = vpop.f32.mrf.mxu1 }
 0x5ce   : > { %2014 = vrot.lane.b32.xlu2 %v1839_v1, %s4952_s28 }
 0x5d0   : > { %v6271_v35 = vpop.permute.xlu0 %1947 }
 0x5d5   : > { %v1842_v15 = vpop.f32.mrf.mxu1 }
 0x5d6   : > { %2016 = vrot.lane.b32.xlu0 %v1842_v15, %s4952_s28 }
 0x5d8   : > { %v6276_v14 = vpop.permute.xlu0 %1962 }
 0x5dd   : > { %v1845_v32 = vpop.f32.mrf.mxu1 }
 0x5de   : > { %2018 = vrot.lane.b32.xlu1 %v1845_v32, %s4952_s28  ;;  %v1891_v32 = vld [vmem:[#allocation4 + $0x38] sm:$0xff] }
 0x5e0   : > { %v6284_v62 = vpop.permute.xlu0 %1977 }
 0x5e5   : > { %v1848_v48 = vpop.f32.mrf.mxu1 }
 0x5e6   : > { %2020 = vrot.lane.b32.xlu2 %v1848_v48, %s4952_s28  ;;  %v4803_v48 = vld [vmem:[%s5063_s9 + $0x58] sm:$0xff] }
 0x5ed   : > { %v1851_v16 = vpop.f32.mrf.mxu1 }
 0x5ee   : > { %2022 = vrot.lane.b32.xlu0 %v1851_v16, %s4952_s28  ;;  %v4804_v16 = vld [vmem:[%s5063_s9 + $0x60] sm:$0xff] }
 0x5f5   : > { %v1854_v47 = vpop.f32.mrf.mxu1 }
 0x5f6   : > { %2024 = vrot.lane.b32.xlu1 %v1854_v47, %s4952_s28  ;;  %v1987_v47 = vmul.f32 %v6260_v31, %v1891_v32  ;;  %v1986_v31 = vmul.f32 %v6265_v56, %v1890_v38  ;;  %v1893_v56 = vld [vmem:[#allocation4 + $0x48] sm:$0xff] }
 0x5fd   : > { %v1857_v34 = vpop.f32.mrf.mxu1 }
 0x5fe   : > { %2026 = vrot.lane.b32.xlu2 %v1857_v34, %s4952_s28 }
 0x605   : > { %v1860_v19 = vpop.f32.mrf.mxu1 }
 0x606   : > { %2028 = vrot.lane.b32.xlu0 %v1860_v19, %s4952_s28 }
 0x60d   : > { %v1863_v39 = vpop.f32.mrf.mxu1 }
 0x60e   : > { %2030 = vrot.lane.b32.xlu1 %v1863_v39, %s4952_s28  ;;  %v4806_v39 = vld [vmem:[%s5063_s9 + $0x70] sm:$0xff] }
 0x615   : > { %v1866_v23 = vpop.f32.mrf.mxu1 }
 0x616   : > { %2032 = vrot.lane.b32.xlu2 %v1866_v23, %s4952_s28 }
 0x61d   : > { %v1869_v52 = vpop.f32.mrf.mxu1 }
 0x61e   : > { %2034 = vrot.lane.b32.xlu0 %v1869_v52, %s4952_s28  ;;  %v4808_v52 = vld [vmem:[%s5063_s9 + $0x68] sm:$0xff] }
 0x625   : > { %v1872_v4 = vpop.f32.mrf.mxu1 }
 0x626   : > { %2036 = vrot.lane.b32.xlu1 %v1872_v4, %s4952_s28 }
 0x628   : > { %v2015_v21 = vpop.permute.xlu2 %2014 }
 0x629   : > { %v2061_v60 = vadd.f32 %v2015_v21, %v1981_v54  ;;  %v1894_v54 = vld [vmem:[#allocation4 + $0x50] sm:$0xff] }
 0x62a   : > { %v1990_v21 = vmul.f32 %v6267_v10, %v1894_v54  ;;  %v1897_v10 = vld [vmem:[#allocation4 + $0x68] sm:$0xff] }
 0x62b   : > { %2078 = vst.msk [vmem:[#allocation4 + $0x8] sm:$0xff] %vm2076_vm5, %v2061_v60 }
 0x62d   : > { %v1875_v30 = vpop.f32.mrf.mxu1 }
 0x62e   : > { %2038 = vrot.lane.b32.xlu2 %v1875_v30, %s4952_s28  ;;  %v1892_v30 = vld [vmem:[#allocation4 + $0x40] sm:$0xff] }
 0x635   : > { %v1878_v29 = vpop.f32.mrf.mxu1 }
 0x636   : > { %2094 = vperm.xlu2 %4434, %v4794_v27   ;;  %2040 = vrot.lane.b32.xlu0 %v1878_v29, %s4952_s28  ;;  %v1988_v29 = vmul.f32 %v6254_v24, %v1892_v30 }
 0x638   : > { %v2013_v53 = vpop.permute.xlu1 %2012 }
 0x639   : > { %v2060_v9 = vadd.f32 %v2013_v53, %v1980_v25  ;;  %v1989_v25 = vmul.f32 %v6271_v35, %v1893_v56 }
 0x63b   : > { %2077 = vst.msk [vmem:[#allocation4] sm:$0xff] %vm2076_vm5, %v2060_v9 }
 0x63d   : > { %v1881_v43 = vpop.f32.mrf.mxu1 }
 0x63e   : > { %2106 = vperm.xlu2 %4434, %v4795_v61   ;;  %2098 = vperm.xlu0 %4435, %v4796_v59   ;;  %v4809_v59 = vld [vmem:[%s5068_s13] sm:$0xf] }
 0x63f   : > { %2042 = vrot.lane.b32.xlu1 %v1881_v43, %s4952_s28  ;;  %v1993_v43 = vmul.f32 %v6274_v12, %v1897_v10  ;;  %v6317_v24 = vperm.slane %v4809_v59, 2  ;;  %v1896_v12 = vld [vmem:[#allocation4 + $0x60] sm:$0xff] }
 0x640   : > { %v2021_v17 = vpop.permute.xlu2 %2020 }
 0x641   : > { %v2064_v36 = vadd.f32 %v2021_v17, %v1984_v42  ;;  %v1895_v42 = vld [vmem:[#allocation4 + $0x58] sm:$0xff] }
 0x642   : > { %v1991_v17 = vmul.f32 %v6257_v55, %v1895_v42 }
 0x643   : > { %2081 = vst.msk [vmem:[#allocation4 + $0x20] sm:$0xff] %vm2076_vm5, %v2064_v36 }
 0x646   : > { %2114 = vperm.xlu2 %4434, %v4797_v57   ;;  %2118 = vperm.xlu0 %4435, %v4798_v41  }
 0x647   : > { %2102 = vperm.xlu1 %4436, %v4799_v7   ;;  %v1992_v7 = vmul.f32 %v6276_v14, %v1896_v12 }
 0x648   : > { %v2017_v0 = vpop.permute.xlu0 %2016 }
 0x649   : > { %v2062_v49 = vadd.f32 %v2017_v0, %v1982_v28 }
 0x64b   : > { %2079 = vst.msk [vmem:[#allocation4 + $0x10] sm:$0xff] %vm2076_vm5, %v2062_v49 }
 0x64e   : > { %2126 = vperm.xlu2 %4434, %v4800_v37   ;;  %2130 = vperm.xlu0 %4435, %v4801_v44   ;;  %v1994_v37 = vmul.f32 %v6263_v8, %v1898_v20 }
 0x64f   : > { %2110 = vperm.xlu1 %4436, %v4802_v51  }
 0x650   : > { %v2019_v1 = vpop.permute.xlu1 %2018 }
 0x651   : > { %v2063_v15 = vadd.f32 %v2019_v1, %v1983_v50  ;;  %v1899_v1 = vld [vmem:[#allocation4 + $0x78] sm:$0xff] }
 0x652   : > { %v1995_v14 = vmul.f32 %v6284_v62, %v1899_v1 }
 0x653   : > { %2080 = vst.msk [vmem:[#allocation4 + $0x18] sm:$0xff] %vm2076_vm5, %v2063_v15 }
 0x656   : > { %2138 = vperm.xlu2 %4434, %v4803_v48   ;;  %2142 = vperm.xlu0 %4435, %v4804_v16  }
 0x657   : > { %2122 = vperm.xlu1 %4436, %v4805_v45  }
 0x658   : > { %v2027_v34 = vpop.permute.xlu2 %2026 }
 0x659   : > { %v2067_v19 = vadd.f32 %v2027_v34, %v1987_v47 }
 0x65b   : > { %2084 = vst.msk [vmem:[#allocation4 + $0x38] sm:$0xff] %vm2076_vm5, %v2067_v19 }
 0x65e   : > { %2150 = vperm.xlu2 %4434, %v4806_v39  }
 0x65f   : > { %2134 = vperm.xlu1 %4436, %v4807_v58  }
 0x660   : > { %v2023_v22 = vpop.permute.xlu0 %2022 }
 0x661   : > { %v2065_v23 = vadd.f32 %v2023_v22, %v1985_v13 }
 0x663   : > { %2082 = vst.msk [vmem:[#allocation4 + $0x28] sm:$0xff] %vm2076_vm5, %v2065_v23 }
 0x667   : > { %2146 = vperm.xlu1 %4436, %v4808_v52  }
 0x668   : > { %v2025_v4 = vpop.permute.xlu1 %2024 }
 0x669   : > { %v2066_v6 = vadd.f32 %v2025_v4, %v1986_v31 }
 0x66b   : > { %2083 = vst.msk [vmem:[#allocation4 + $0x30] sm:$0xff] %vm2076_vm5, %v2066_v6 }
 0x670   : > { %v2033_v60 = vpop.permute.xlu2 %2032 }
 0x671   : > { %v2070_v26 = vadd.f32 %v2033_v60, %v1990_v21 }
 0x673   : > { %2087 = vst.msk [vmem:[#allocation4 + $0x50] sm:$0xff] %vm2076_vm5, %v2070_v26 }
 0x678   : > { %v2029_v33 = vpop.permute.xlu0 %2028 }
 0x679   : > { %v2068_v27 = vadd.f32 %v2029_v33, %v1988_v29 }
 0x67b   : > { %2085 = vst.msk [vmem:[#allocation4 + $0x40] sm:$0xff] %vm2076_vm5, %v2068_v27 }
 0x680   : > { %v2031_v53 = vpop.permute.xlu1 %2030 }
 0x681   : > { %v2069_v9 = vadd.f32 %v2031_v53, %v1989_v25 }
 0x683   : > { %2086 = vst.msk [vmem:[#allocation4 + $0x48] sm:$0xff] %vm2076_vm5, %v2069_v9 }
 0x688   : > { %v2039_v11 = vpop.permute.xlu2 %2038 }
 0x689   : > { %v2073_v61 = vadd.f32 %v2039_v11, %v1993_v43 }
 0x68b   : > { %2090 = vst.msk [vmem:[#allocation4 + $0x68] sm:$0xff] %vm2076_vm5, %v2073_v61 }
 0x690   : > { %v2035_v36 = vpop.permute.xlu0 %2034  ;;  %v2095_v40 = vpop.permute.xlu2 %2094 }
 0x691   : > { %v2071_v35 = vadd.f32 %v2035_v36, %v1991_v17  ;;  %v2158_v57 = vadd.f32 %v6317_v24, %v2095_v40 }
 0x693   : > { %2088 = vst.msk [vmem:[#allocation4 + $0x58] sm:$0xff] %vm2076_vm5, %v2071_v35  ;;  %v2174_v41 = vmul.f32 0.2, %v2158_v57 }
 0x695   : > { %v2190_v28 = vmax.f32 %v2158_v57, %v2174_v41 }
 0x697   : > { %v6325_v0 = vsel %vm5218_vm10, %v2190_v28, -1e+30 }
 0x698   : > { %v2037_v49 = vpop.permute.xlu1 %2036  ;;  %2238 = vmax.xlane.f32.xlu1 %v6325_v0  ;;  %v2107_v50 = vpop.permute.xlu2 %2106 }
 0x699   : > { %v2072_v55 = vadd.f32 %v2037_v49, %v1992_v7  ;;  %v2161_v47 = vadd.f32 %v6317_v24, %v2107_v50 }
 0x69b   : > { %2089 = vst.msk [vmem:[#allocation4 + $0x60] sm:$0xff] %vm2076_vm5, %v2072_v55  ;;  %v2177_v19 = vmul.f32 0.2, %v2161_v47 }
 0x69d   : > { %v2193_v23 = vmax.f32 %v2161_v47, %v2177_v19 }
 0x69f   : > { %v6345_v54 = vsel %vm5275_vm1, %v2193_v23, -1e+30  ;;  %v7893_v23 = vld [vmem:[#allocation18_spill] sm:$0xff] }
 0x6a0   : > { %v2115_v45 = vpop.permute.xlu2 %2114  ;;  %vm7894_vm11 = vnez %v7893_v23 }
 0x6a1   : > { %v2163_v38 = vadd.f32 %v6317_v24, %v2115_v45 }
 0x6a3   : > { %v2179_v21 = vmul.f32 0.2, %v2163_v38 }
 0x6a5   : > { %v2195_v9 = vmax.f32 %v2163_v38, %v2179_v21 }
 0x6a7   : > { %v6363_v17 = vsel %vm5328_vm14, %v2195_v9, -1e+30 }
 0x6a8   : > { %v2041_v44 = vpop.permute.xlu0 %2040  ;;  %v2127_v52 = vpop.permute.xlu2 %2126 }
 0x6a9   : > { %v2074_v51 = vadd.f32 %v2041_v44, %v1994_v37  ;;  %v2166_v25 = vadd.f32 %v6317_v24, %v2127_v52 }
 0x6ab   : > { %2091 = vst.msk [vmem:[#allocation4 + $0x70] sm:$0xff] %vm2076_vm5, %v2074_v51  ;;  %v2182_v59 = vmul.f32 0.2, %v2166_v25 }
 0x6ad   : > { %v2198_v55 = vmax.f32 %v2166_v25, %v2182_v59  ;;  %v4810_v25 = vld [vmem:[%s5063_s9 + $0x78] sm:$0xff] }
 0x6b0   : > { %v2099_v15 = vpop.permute.xlu0 %2098  ;;  %v2139_v61 = vpop.permute.xlu2 %2138 }
 0x6b1   : > { %v2159_v32 = vadd.f32 %v6317_v24, %v2099_v15  ;;  %v2043_v48 = vpop.permute.xlu1 %2042  ;;  %v2169_v7 = vadd.f32 %v6317_v24, %v2139_v61  ;;  %v7889_v15 = vld [vmem:[#allocation10_spill] sm:$0xff]  ;;  %v6428_v61 = vld [vmem:[#allocation2 + $0x8] sm:$0xff] }
 0x6b2   : > { %v2075_v16 = vadd.f32 %v2043_v48, %v1995_v14  ;;  %v6381_v14 = vsel %vm5360_vm4, %v2198_v55, -1e+30  ;;  %vm7890_vm7 = vnez %v7889_v15  ;;  %v2702_v63 = vld [vmem:[#allocation4 + $0x70] sm:$0xff] }
 0x6b3   : > { %v2175_v34 = vmul.f32 0.2, %v2159_v32  ;;  %v2185_v51 = vmul.f32 0.2, %v2169_v7 }
 0x6b4   : > { %2092 = vst.msk [vmem:[#allocation4 + $0x78] sm:$0xff] %vm2076_vm5, %v2075_v16 }
 0x6b5   : > { %v2191_v8 = vmax.f32 %v2159_v32, %v2175_v34  ;;  %v2201_v19 = vmax.f32 %v2169_v7, %v2185_v51  ;;  %v6443_v7 = vld [vmem:[#allocation2 + $0x10] sm:$0xff] }
 0x6b7   : > { %v6337_v39 = vsel %vm5260_vm0, %v2191_v8, -1e+30  ;;  %v6398_v38 = vsel %vm7894_vm11, %v2201_v19, -1e+30  ;;  %vm2542_vm11 = vcmask 23568  }
 0x6b8   : > { %2240 = vmax.xlane.f32.xlu2 %v6337_v39  ;;  %v2119_v62 = vpop.permute.xlu0 %2118  ;;  %v2151_v48 = vpop.permute.xlu2 %2150 }
 0x6b9   : > { %v2103_v13 = vpop.permute.xlu1 %2102  ;;  %v2164_v58 = vadd.f32 %v6317_v24, %v2119_v62  ;;  %v2172_v34 = vadd.f32 %v6317_v24, %v2151_v48 }
 0x6ba   : > { %v2160_v22 = vadd.f32 %v6317_v24, %v2103_v13  ;;  %v7891_v13 = vld [vmem:[#allocation17_spill] sm:$0xff] }
 0x6bb   : > { %v2180_v4 = vmul.f32 0.2, %v2164_v58  ;;  %vm7892_vm2 = vnez %v7891_v13 }
 0x6bc   : > { %v2176_v31 = vmul.f32 0.2, %v2160_v22 }
 0x6bd   : > { %v2196_v27 = vmax.f32 %v2164_v58, %v2180_v4 }
 0x6be   : > { %v2192_v6 = vmax.f32 %v2160_v22, %v2176_v31  ;;  %v2188_v22 = vmul.f32 0.2, %v2172_v34  ;;  %v7895_v31 = vld [vmem:[#allocation12_spill] sm:$0xff] }
 0x6bf   : > { %v6358_v43 = vsel %vm5289_vm6, %v2196_v27, -1e+30  ;;  %vm7896_vm5 = vnez %v7895_v31  ;;  %v7897_v27 = vld [vmem:[#allocation16_spill] sm:$0xff] }
 0x6c0   : > { %2244 = vmax.xlane.f32.xlu2 %v6345_v54  ;;  %v6350_v26 = vsel %vm5214_vm9, %v2192_v6, -1e+30  ;;  %v2131_v30 = vpop.permute.xlu0 %2130  ;;  %vm7898_vm12 = vnez %v7897_v27 }
 0x6c1   : > { %2242 = vmax.xlane.f32.xlu0 %v6350_v26  ;;  %v2111_v29 = vpop.permute.xlu1 %2110  ;;  %v2167_v33 = vadd.f32 %v6317_v24, %v2131_v30  ;;  %v2204_v30 = vmax.f32 %v2172_v34, %v2188_v22  ;;  %v6516_v22 = vld [vmem:[#allocation2 + $0x50] sm:$0xff] }
 0x6c2   : > { %v2162_v56 = vadd.f32 %v6317_v24, %v2111_v29 }
 0x6c3   : > { %v2183_v10 = vmul.f32 0.2, %v2167_v33 }
 0x6c4   : > { %v2178_v53 = vmul.f32 0.2, %v2162_v56 }
 0x6c5   : > { %v2199_v41 = vmax.f32 %v2167_v33, %v2183_v10  ;;  %v6409_v33 = vsel %vm5410_vm8, %v2204_v30, -1e+30  ;;  %v6487_v30 = vld [vmem:[#allocation2 + $0x40] sm:$0xff] }
 0x6c6   : > { %v2194_v11 = vmax.f32 %v2162_v56, %v2178_v53  ;;  %v6418_v53 = vld [vmem:[#allocation2] sm:$0xff] }
 0x6c7   : > { %v6376_v37 = vsel %vm5332_vm15, %v2199_v41, -1e+30  ;;  %v6438_v41 = vld [vmem:[#allocation2 + $0x18] sm:$0xff] }
 0x6c8   : > { %2250 = vmax.xlane.f32.xlu2 %v6358_v43  ;;  %v6367_v40 = vsel %vm5245_vm13, %v2194_v11, -1e+30  ;;  %v2143_v35 = vpop.permute.xlu0 %2142 }
 0x6c9   : > { %2248 = vmax.xlane.f32.xlu0 %v6363_v17  ;;  %2246 = vmax.xlane.f32.xlu1 %v6367_v40  ;;  %v2123_v57 = vpop.permute.xlu1 %2122  ;;  %v2170_v12 = vadd.f32 %v6317_v24, %v2143_v35 }
 0x6ca   : > { %v2165_v28 = vadd.f32 %v6317_v24, %v2123_v57 }
 0x6cb   : > { %v2186_v50 = vmul.f32 0.2, %v2170_v12 }
 0x6cc   : > { %v2181_v49 = vmul.f32 0.2, %v2165_v28 }
 0x6cd   : > { %v2202_v45 = vmax.f32 %v2170_v12, %v2186_v50  ;;  %v6455_v50 = vld [vmem:[#allocation2 + $0x30] sm:$0xff] }
 0x6ce   : > { %v2197_v44 = vmax.f32 %v2165_v28, %v2181_v49 }
 0x6cf   : > { %v6393_v58 = vsel %vm7892_vm2, %v2202_v45, -1e+30  ;;  %v6462_v45 = vld [vmem:[#allocation2 + $0x20] sm:$0xff] }
 0x6d0   : > { %2256 = vmax.xlane.f32.xlu2 %v6376_v37  ;;  %v6385_v32 = vsel %vm7890_vm7, %v2197_v44, -1e+30 }
 0x6d1   : > { %2254 = vmax.xlane.f32.xlu0 %v6381_v14  ;;  %2252 = vmax.xlane.f32.xlu1 %v6385_v32  ;;  %v2135_v16 = vpop.permute.xlu1 %2134 }
 0x6d2   : > { %v2168_v47 = vadd.f32 %v6317_v24, %v2135_v16  ;;  %v6460_v16 = vld [vmem:[#allocation2 + $0x28] sm:$0xff] }
 0x6d4   : > { %v2184_v8 = vmul.f32 0.2, %v2168_v47 }
 0x6d6   : > { %v2200_v62 = vmax.f32 %v2168_v47, %v2184_v8 }
 0x6d8   : > { %2262 = vmax.xlane.f32.xlu2 %v6393_v58  ;;  %v6402_v52 = vsel %vm7896_vm5, %v2200_v62, -1e+30  ;;  %v6538_v62 = vld [vmem:[#allocation2 + $0x68] sm:$0xff] }
 0x6d9   : > { %2260 = vmax.xlane.f32.xlu0 %v6398_v38  ;;  %2258 = vmax.xlane.f32.xlu1 %v6402_v52  ;;  %v2147_v4 = vpop.permute.xlu1 %2146 }
 0x6da   : > { %v2171_v6 = vadd.f32 %v6317_v24, %v2147_v4  ;;  %v6482_v4 = vld [vmem:[#allocation2 + $0x48] sm:$0xff] }
 0x6dc   : > { %v2187_v21 = vmul.f32 0.2, %v2171_v6 }
 0x6de   : > { %v2203_v29 = vmax.f32 %v2171_v6, %v2187_v21 }
 0x6e0   : > { %v6413_v56 = vsel %vm7898_vm12, %v2203_v29, -1e+30 }
 0x6e1   : > { %2266 = vmax.xlane.f32.xlu0 %v6409_v33  ;;  %2264 = vmax.xlane.f32.xlu1 %v6413_v56 }
 0x6f5   : > { %2154 = vperm.xlu0 %4435, %v4810_v25   ;;  %v6489_v25 = vld [vmem:[#allocation2 + $0x38] sm:$0xff] }
 0x70b   : > { %v2239_v9 = vpop.xlane.xlu1 %2238 }
 0x70c   : > { %v6421_v10 = vmax.f32 %v6418_v53, %v2239_v9 }
 0x70e   : > { %2559 = vst.msk [vmem:[#allocation2] sm:$0xff] %vm2542_vm11, %v6421_v10  ;;  %2336 = vperm.xlu1 %4436, %v6421_v10  }
 0x72b   : > { %v2241_v59 = vpop.xlane.xlu2 %2240 }
 0x72c   : > { %v6431_v35 = vmax.f32 %v6428_v61, %v2241_v59 }
 0x72e   : > { %2560 = vst.msk [vmem:[#allocation2 + $0x8] sm:$0xff] %vm2542_vm11, %v6431_v35  ;;  %2341 = vperm.xlu0 %4435, %v6431_v35  }
 0x733   : > { %v2245_v28 = vpop.xlane.xlu2 %2244 }
 0x734   : > { %v6441_v12 = vmax.f32 %v6438_v41, %v2245_v28  ;;  %v2243_v49 = vpop.xlane.xlu0 %2242 }
 0x735   : > { %v6446_v55 = vmax.f32 %v6443_v7, %v2243_v49 }
 0x736   : > { %2562 = vst.msk [vmem:[#allocation2 + $0x18] sm:$0xff] %vm2542_vm11, %v6441_v12  ;;  %2351 = vperm.xlu0 %4435, %v6441_v12  }
 0x737   : > { %2561 = vst.msk [vmem:[#allocation2 + $0x10] sm:$0xff] %vm2542_vm11, %v6446_v55 }
 0x73b   : > { %v2251_v51 = vpop.xlane.xlu2 %2250 }
 0x73c   : > { %v6458_v48 = vmax.f32 %v6455_v50, %v2251_v51  ;;  %v2249_v47 = vpop.xlane.xlu0 %2248  ;;  %v2247_v34 = vpop.xlane.xlu1 %2246 }
 0x73d   : > { %v6465_v8 = vmax.f32 %v6460_v16, %v2249_v47  ;;  %v6468_v19 = vmax.f32 %v6462_v45, %v2247_v34  ;;  %v6509_v47 = vld [vmem:[#allocation2 + $0x60] sm:$0xff] }
 0x73e   : > { %2565 = vst.msk [vmem:[#allocation2 + $0x30] sm:$0xff] %vm2542_vm11, %v6458_v48  ;;  %2366 = vperm.xlu0 %4435, %v6458_v48  }
 0x73f   : > { %2564 = vst.msk [vmem:[#allocation2 + $0x28] sm:$0xff] %vm2542_vm11, %v6465_v8  ;;  %2356 = vperm.xlu1 %4436, %v6468_v19  }
 0x740   : > { %2563 = vst.msk [vmem:[#allocation2 + $0x20] sm:$0xff] %vm2542_vm11, %v6468_v19 }
 0x743   : > { %v2257_v6 = vpop.xlane.xlu2 %2256 }
 0x744   : > { %v6485_v21 = vmax.f32 %v6482_v4, %v2257_v6  ;;  %v2255_v29 = vpop.xlane.xlu0 %2254  ;;  %v2253_v9 = vpop.xlane.xlu1 %2252 }
 0x745   : > { %v6492_v59 = vmax.f32 %v6487_v30, %v2255_v29  ;;  %v6495_v28 = vmax.f32 %v6489_v25, %v2253_v9  ;;  %v6514_v29 = vld [vmem:[#allocation2 + $0x58] sm:$0xff] }
 0x746   : > { %2568 = vst.msk [vmem:[#allocation2 + $0x48] sm:$0xff] %vm2542_vm11, %v6485_v21  ;;  %2381 = vperm.xlu0 %4435, %v6485_v21  }
 0x747   : > { %2567 = vst.msk [vmem:[#allocation2 + $0x40] sm:$0xff] %vm2542_vm11, %v6492_v59  ;;  %2371 = vperm.xlu1 %4436, %v6495_v28  }
 0x748   : > { %2566 = vst.msk [vmem:[#allocation2 + $0x38] sm:$0xff] %vm2542_vm11, %v6495_v28 }
 0x74b   : > { %v2263_v34 = vpop.xlane.xlu2 %2262 }
 0x74c   : > { %v6512_v6 = vmax.f32 %v6509_v47, %v2263_v34  ;;  %v2261_v9 = vpop.xlane.xlu0 %2260  ;;  %v2259_v57 = vpop.xlane.xlu1 %2258 }
 0x74d   : > { %v6519_v49 = vmax.f32 %v6514_v29, %v2261_v9  ;;  %v6522_v51 = vmax.f32 %v6516_v22, %v2259_v57  ;;  %v6536_v57 = vld [vmem:[#allocation2 + $0x70] sm:$0xff] }
 0x74e   : > { %2571 = vst.msk [vmem:[#allocation2 + $0x60] sm:$0xff] %vm2542_vm11, %v6512_v6  ;;  %2396 = vperm.xlu0 %4435, %v6512_v6  }
 0x74f   : > { %2570 = vst.msk [vmem:[#allocation2 + $0x58] sm:$0xff] %vm2542_vm11, %v6519_v49  ;;  %2386 = vperm.xlu1 %4436, %v6522_v51  }
 0x750   : > { %2569 = vst.msk [vmem:[#allocation2 + $0x50] sm:$0xff] %vm2542_vm11, %v6522_v51 }
 0x754   : > { %v2267_v9 = vpop.xlane.xlu0 %2266  ;;  %v2265_v44 = vpop.xlane.xlu1 %2264 }
 0x755   : > { %v6541_v11 = vmax.f32 %v6536_v57, %v2267_v9  ;;  %v6544_v5 = vmax.f32 %v6538_v62, %v2265_v44 }
 0x757   : > { %2573 = vst.msk [vmem:[#allocation2 + $0x70] sm:$0xff] %vm2542_vm11, %v6541_v11  ;;  %2401 = vperm.xlu1 %4436, %v6544_v5  }
 0x758   : > { %2572 = vst.msk [vmem:[#allocation2 + $0x68] sm:$0xff] %vm2542_vm11, %v6544_v5 }
 0x767   : > { %v2155_v27 = vpop.permute.xlu0 %2154 }
 0x768   : > { %v2173_v23 = vadd.f32 %v6317_v24, %v2155_v27 }
 0x76a   : > { %v2189_v13 = vmul.f32 0.2, %v2173_v23 }
 0x76c   : > { %v2205_v9 = vmax.f32 %v2173_v23, %v2189_v13 }
 0x76e   : > { %v6556_v44 = vsel %vm5395_vm3, %v2205_v9, -1e+30 }
 0x76f   : > { %2268 = vmax.xlane.f32.xlu2 %v6556_v44 }
 0x780   : > { %v2337_v31 = vpop.permute.xlu1 %2336 }
 0x781   : > { %v2414_v1 = vsub.f32 %v6325_v0, %v2337_v31 }
 0x783   : > { %v2430_v34 = vmul.f32 1.442695, %v2414_v1 }
 0x785   : > { %4648 = vpow2.f32 %v2430_v34 }
 0x787   : > { %2346 = vperm.xlu2 %4434, %v6446_v55  }
 0x78b   : > { %v6561_v20 = vpop.eup %4648 }
 0x78c   : > { %2494 = vadd.xlane.f32.xlu1 %v6561_v20 }
 0x78f   : > { %2361 = vperm.xlu2 %4434, %v6465_v8  }
 0x797   : > { %2376 = vperm.xlu2 %4434, %v6492_v59  }
 0x79f   : > { %2391 = vperm.xlu2 %4434, %v6519_v49  }
 0x7a0   : > { %v2342_v24 = vpop.permute.xlu0 %2341 }
 0x7a1   : > { %v2415_v15 = vsub.f32 %v6337_v39, %v2342_v24 }
 0x7a8   : > { %v2352_v13 = vpop.permute.xlu0 %2351 }
 0x7a9   : > { %v2417_v23 = vsub.f32 %v6345_v54, %v2352_v13  ;;  %v2432_v13 = vmul.f32 1.442695, %v2415_v15 }
 0x7ab   : > { %v2436_v27 = vmul.f32 1.442695, %v2417_v23 }
 0x7ad   : > { %4650 = vpow2.f32 %v2436_v27 }
 0x7b0   : > { %v2367_v0 = vpop.permute.xlu0 %2366 }
 0x7b1   : > { %v2420_v1 = vsub.f32 %v6358_v43, %v2367_v0  ;;  %v2357_v9 = vpop.permute.xlu1 %2356 }
 0x7b2   : > { %v2418_v23 = vsub.f32 %v6367_v40, %v2357_v9 }
 0x7b3   : > { %v6569_v31 = vpop.eup %4650  ;;  %v2442_v34 = vmul.f32 1.442695, %v2420_v1 }
 0x7b4   : > { %2500 = vadd.xlane.f32.xlu1 %v6569_v31 }
 0x7b5   : > { %4652 = vpow2.f32 %v2442_v34 }
 0x7b8   : > { %v2382_v18 = vpop.permute.xlu0 %2381 }
 0x7b9   : > { %v2423_v42 = vsub.f32 %v6376_v37, %v2382_v18  ;;  %v2372_v0 = vpop.permute.xlu1 %2371  ;;  %v2438_v18 = vmul.f32 1.442695, %v2418_v23 }
 0x7bb   : > { %v6574_v2 = vpop.eup %4652  ;;  %v2448_v54 = vmul.f32 1.442695, %v2423_v42  ;;  %v2421_v42 = vsub.f32 %v6385_v32, %v2372_v0 }
 0x7bc   : > { %2506 = vadd.xlane.f32.xlu1 %v6574_v2 }
 0x7bd   : > { %4654 = vpow2.f32 %v2448_v54  ;;  %v2444_v15 = vmul.f32 1.442695, %v2421_v42 }
 0x7be   : > { %4656 = vpow2.f32 %v2432_v13 }
 0x7c0   : > { %v2397_v43 = vpop.permute.xlu0 %2396 }
 0x7c1   : > { %v2426_v27 = vsub.f32 %v6393_v58, %v2397_v43  ;;  %v2387_v40 = vpop.permute.xlu1 %2386 }
 0x7c2   : > { %v2424_v24 = vsub.f32 %v6402_v52, %v2387_v40  ;;  %v7899_v40 = vsub.f32 %v6418_v53, %v6421_v10  ;;  %v2462_v10 = vld [vmem:[#allocation3] sm:$0xff] }
 0x7c3   : > { %v6579_v1 = vpop.eup %4654  ;;  %v2454_v34 = vmul.f32 1.442695, %v2426_v27  ;;  %v6600_v27 = vld [vmem:[#allocation2 + $0x78] sm:$0xff] }
 0x7c4   : > { %2512 = vadd.xlane.f32.xlu1 %v6579_v1  ;;  %v6582_v39 = vpop.eup %4656  ;;  %v2450_v9 = vmul.f32 1.442695, %v2424_v24 }
 0x7c5   : > { %4658 = vpow2.f32 %v2454_v34 }
 0x7c6   : > { %4660 = vpow2.f32 %v2438_v18 }
 0x7c7   : > { %4662 = vpow2.f32 %v2444_v15  ;;  %v2302_v15 = vmul.f32 1.442695, %v7899_v40 }
 0x7c8   : > { %2496 = vadd.xlane.f32.xlu2 %v6582_v39  ;;  %4664 = vpow2.f32 %v2450_v9 }
 0x7c9   : > { %v2402_v54 = vpop.permute.xlu1 %2401 }
 0x7ca   : > { %v2427_v32 = vsub.f32 %v6413_v56, %v2402_v54 }
 0x7cb   : > { %v6586_v37 = vpop.eup %4658 }
 0x7cc   : > { %2518 = vadd.xlane.f32.xlu1 %v6586_v37  ;;  %v6589_v58 = vpop.eup %4660  ;;  %v2456_v43 = vmul.f32 1.442695, %v2427_v32 }
 0x7cd   : > { %v6593_v13 = vpop.eup %4662 }
 0x7ce   : > { %v6597_v23 = vpop.eup %4664  ;;  %4666 = vpow2.f32 %v2456_v43 }
 0x7d0   : > { %2502 = vadd.xlane.f32.xlu2 %v6589_v58 }
 0x7d4   : > { %v6607_v34 = vpop.eup %4666 }
 0x7d8   : > { %2508 = vadd.xlane.f32.xlu2 %v6593_v13 }
 0x7e0   : > { %2514 = vadd.xlane.f32.xlu2 %v6597_v23 }
 0x7e2   : > { %v2269_v0 = vpop.xlane.xlu2 %2268 }
 0x7e3   : > { %v6603_v52 = vmax.f32 %v6600_v27, %v2269_v0 }
 0x7e5   : > { %2574 = vst.msk [vmem:[#allocation2 + $0x78] sm:$0xff] %vm2542_vm11, %v6603_v52 }
 0x7e8   : > { %2520 = vadd.xlane.f32.xlu2 %v6607_v34 }
 0x7ea   : > { %v2347_v56 = vpop.permute.xlu2 %2346 }
 0x7eb   : > { %v2416_v18 = vsub.f32 %v6350_v26, %v2347_v56 }
 0x7ed   : > { %v2434_v42 = vmul.f32 1.442695, %v2416_v18 }
 0x7ef   : > { %4668 = vpow2.f32 %v2434_v42 }
 0x7f0   : > { %4670 = vpow2.f32 %v2302_v15  ;;  %v4811_v15 = vld [vmem:[%s5078_s7 + $0x8] sm:$0xff] }
 0x7f2   : > { %v2362_v24 = vpop.permute.xlu2 %2361 }
 0x7f3   : > { %v2419_v9 = vsub.f32 %v6363_v17, %v2362_v24  ;;  %v4812_v24 = vld [vmem:[%s5078_s7] sm:$0xff] }
 0x7f5   : > { %v6615_v54 = vpop.eup %4668  ;;  %v2440_v32 = vmul.f32 1.442695, %v2419_v9  ;;  %v4437_v9 = vpack.i.bf16 %v4811_v15, %v4812_v24  ;;  %v7900_v15 = vsub.f32 %v6438_v41, %v6441_v12 }
 0x7f6   : > { %2498 = vadd.xlane.f32.xlu0 %v6615_v54  ;;  %v6618_v26 = vpop.eup %4670 }
 0x7f7   : > { %4672 = vpow2.f32 %v2440_v32  ;;  %v2478_v17 = vmul.f32 %v6618_v26, %v2462_v10  ;;  %v2308_v24 = vmul.f32 1.442695, %v7900_v15 }
 0x7fa   : > { %v2377_v43 = vpop.permute.xlu2 %2376 }
 0x7fb   : > { %v2422_v0 = vsub.f32 %v6381_v14, %v2377_v43 }
 0x7fd   : > { %v6621_v56 = vpop.eup %4672  ;;  %v2446_v53 = vmul.f32 1.442695, %v2422_v0  ;;  %v6635_v0 = vld [vmem:[%s5078_s7 + $0x48] sm:$0xff] }
 0x7fe   : > { %2504 = vadd.xlane.f32.xlu0 %v6621_v56 }
 0x7ff   : > { %4674 = vpow2.f32 %v2446_v53  ;;  %v2495_v18 = vpop.xlane.xlu1 %2494  ;;  %v6638_v53 = vld [vmem:[%s5078_s7 + $0x40] sm:$0xff] }
 0x800   : > { %2406 = vperm.xlu2 %4434, %v6541_v11   ;;  %v2526_v42 = vadd.f32 %v2495_v18, %v2478_v17  ;;  %v2288_v17 = vsub.f32 %v6443_v7, %v6446_v55  ;;  %v6649_v18 = vld [vmem:[%s5078_s7 + $0x78] sm:$0xff] }
 0x802   : > { %2543 = vst.msk [vmem:[#allocation3] sm:$0xff] %vm2542_vm11, %v2526_v42  ;;  %v2392_v40 = vpop.permute.xlu2 %2391  ;;  %v6652_v42 = vld [vmem:[%s5078_s7 + $0x70] sm:$0xff] }
 0x803   : > { %v2425_v14 = vsub.f32 %v6398_v38, %v2392_v40  ;;  %v4457_v38 = vpack.i.bf16 %v6635_v0, %v6638_v53  ;;  %v4472_v40 = vpack.i.bf16 %v6649_v18, %v6652_v42 }
 0x805   : > { %v6630_v32 = vpop.eup %4674  ;;  %v2452_v43 = vmul.f32 1.442695, %v2425_v14  ;;  %v2306_v14 = vmul.f32 1.442695, %v2288_v17  ;;  %v2294_v17 = vsub.f32 %v6487_v30, %v6492_v59  ;;  %v2297_v30 = vsub.f32 %v6514_v29, %v6519_v49 }
 0x806   : > { %2510 = vadd.xlane.f32.xlu0 %v6630_v32  ;;  %v7904_v49 = vsub.f32 %v6509_v47, %v6512_v6 }
 0x807   : > { %4676 = vpow2.f32 %v2452_v43  ;;  %v7901_v43 = vsub.f32 %v6455_v50, %v6458_v48  ;;  %v2318_v12 = vmul.f32 1.442695, %v2294_v17  ;;  %v7902_v50 = vsub.f32 %v6482_v4, %v6485_v21 }
 0x808   : > { %4438 = vrot.lane.b32.xlu2 %v4437_v9, %s4954_s29  ;;  %4678 = vpow2.f32 %v2306_v14  ;;  %v2291_v9 = vsub.f32 %v6460_v16, %v6465_v8  ;;  %v2326_v29 = vmul.f32 1.442695, %v7904_v49 }
 0x809   : > { %4680 = vpow2.f32 %v2308_v24  ;;  %v2320_v48 = vmul.f32 1.442695, %v7902_v50  ;;  %v7903_v24 = vsub.f32 %v6428_v61, %v6431_v35  ;;  %v2300_v61 = vsub.f32 %v6536_v57, %v6541_v11  ;;  %v2463_v57 = vld [vmem:[#allocation3 + $0x8] sm:$0xff] }
 0x80a   : > { %v2312_v7 = vmul.f32 1.442695, %v2291_v9 }
 0x80b   : > { %v2304_v9 = vmul.f32 1.442695, %v7903_v24  ;;  %v7906_v24 = vsub.f32 %v6489_v25, %v6495_v28 }
 0x80c   : > { %4682 = vpow2.f32 %v2312_v7  ;;  %v2324_v7 = vmul.f32 1.442695, %v2297_v30 }
 0x80d   : > { %v6642_v10 = vpop.eup %4676 }
 0x80e   : > { %2516 = vadd.xlane.f32.xlu0 %v6642_v10  ;;  %v6662_v55 = vpop.eup %4678 }
 0x80f   : > { %v6670_v41 = vpop.eup %4680 }
 0x810   : > { %4458 = vrot.lane.b32.xlu2 %v4457_v38, %s4954_s29  ;;  %v2314_v38 = vmul.f32 1.442695, %v7901_v43  ;;  %v2468_v43 = vld [vmem:[#allocation3 + $0x30] sm:$0xff] }
 0x812   : > { %4684 = vpow2.f32 %v2314_v38  ;;  %v6673_v8 = vpop.eup %4682 }
 0x813   : > { %4686 = vpow2.f32 %v2318_v12  ;;  %v7905_v12 = vsub.f32 %v6462_v45, %v6468_v19 }
 0x814   : > { %4688 = vpow2.f32 %v2320_v48 }
 0x815   : > { %4690 = vpow2.f32 %v2304_v9  ;;  %v2316_v9 = vmul.f32 1.442695, %v7906_v24 }
 0x816   : > { %4692 = vpow2.f32 %v2324_v7  ;;  %v2474_v7 = vld [vmem:[#allocation3 + $0x60] sm:$0xff] }
 0x817   : > { %4694 = vpow2.f32 %v2326_v29  ;;  %v2466_v29 = vld [vmem:[#allocation3 + $0x20] sm:$0xff] }
 0x818   : > { %4473 = vrot.lane.b32.xlu2 %v4472_v40, %s4954_s29  ;;  %v2465_v40 = vld [vmem:[#allocation3 + $0x18] sm:$0xff]  ;;  %v6682_v59 = vpop.eup %4684 }
 0x819   : > { %v2481_v16 = vmul.f32 %v6670_v41, %v2465_v40  ;;  %v2484_v38 = vmul.f32 %v6682_v59, %v2468_v43  ;;  %v6688_v17 = vpop.eup %4686  ;;  %v2310_v40 = vmul.f32 1.442695, %v7905_v12  ;;  %v7907_v12 = vsub.f32 %v6516_v22, %v6522_v51 }
 0x81a   : > { %v6697_v35 = vpop.eup %4688 }
 0x81b   : > { %4696 = vpow2.f32 %v2310_v40  ;;  %v2322_v40 = vmul.f32 1.442695, %v7907_v12 }
 0x820   : > { %2716 = vperm.xlu2 %4434, %v6662_v55  }
 0x827   : > { %v2501_v14 = vpop.xlane.xlu1 %2500 }
 0x828   : > { %2731 = vperm.xlu2 %4434, %v6673_v8   ;;  %v2529_v15 = vadd.f32 %v2501_v14, %v2481_v16  ;;  %v2330_v16 = vmul.f32 1.442695, %v2300_v61  ;;  %v2471_v14 = vld [vmem:[#allocation3 + $0x48] sm:$0xff] }
 0x829   : > { %v2487_v47 = vmul.f32 %v6697_v35, %v2471_v14  ;;  %v2469_v14 = vld [vmem:[#allocation3 + $0x38] sm:$0xff] }
 0x82a   : > { %2546 = vst.msk [vmem:[#allocation3 + $0x18] sm:$0xff] %vm2542_vm11, %v2529_v15  ;;  %v6702_v15 = vpop.eup %4690  ;;  %4698 = vpow2.f32 %v2330_v16 }
 0x82b   : > { %v6705_v6 = vpop.eup %4692  ;;  %v2479_v45 = vmul.f32 %v6702_v15, %v2463_v57  ;;  %4700 = vpow2.f32 %v2316_v9  ;;  %v7908_v57 = vsub.f32 %v6538_v62, %v6544_v5 }
 0x82c   : > { %v6710_v19 = vpop.eup %4694  ;;  %4702 = vpow2.f32 %v2322_v40 }
 0x82d   : > { %v6715_v43 = vpop.eup %4696 }
 0x82e   : > { %v2482_v25 = vmul.f32 %v6715_v43, %v2466_v29 }
 0x82f   : > { %v2507_v4 = vpop.xlane.xlu1 %2506 }
 0x830   : > { %2746 = vperm.xlu2 %4434, %v6688_v17   ;;  %v2532_v21 = vadd.f32 %v2507_v4, %v2484_v38  ;;  %v2490_v38 = vmul.f32 %v6710_v19, %v2474_v7  ;;  %v6719_v4 = vpop.eup %4698  ;;  %v2475_v7 = vld [vmem:[#allocation3 + $0x68] sm:$0xff] }
 0x831   : > { %v4701_v16 = vpop.eup %4700 }
 0x832   : > { %2549 = vst.msk [vmem:[#allocation3 + $0x30] sm:$0xff] %vm2542_vm11, %v2532_v21 }
 0x837   : > { %v2513_v50 = vpop.xlane.xlu1 %2512 }
 0x838   : > { %2761 = vperm.xlu2 %4434, %v6705_v6   ;;  %v2535_v11 = vadd.f32 %v2513_v50, %v2487_v47  ;;  %v2485_v47 = vmul.f32 %v4701_v16, %v2469_v14  ;;  %v2467_v14 = vld [vmem:[#allocation3 + $0x28] sm:$0xff] }
 0x83a   : > { %2552 = vst.msk [vmem:[#allocation3 + $0x48] sm:$0xff] %vm2542_vm11, %v2535_v11 }
 0x83b   : > { %v2497_v48 = vpop.xlane.xlu2 %2496 }
 0x83c   : > { %v2527_v30 = vadd.f32 %v2497_v48, %v2479_v45  ;;  %v2328_v45 = vmul.f32 1.442695, %v7908_v57  ;;  %v4703_v48 = vpop.eup %4702 }
 0x83e   : > { %2544 = vst.msk [vmem:[#allocation3 + $0x8] sm:$0xff] %vm2542_vm11, %v2527_v30  ;;  %4704 = vpow2.f32 %v2328_v45  ;;  %v2472_v30 = vld [vmem:[#allocation3 + $0x50] sm:$0xff] }
 0x83f   : > { %v2519_v21 = vpop.xlane.xlu1 %2518  ;;  %v2488_v24 = vmul.f32 %v4703_v48, %v2472_v30  ;;  %v2473_v30 = vld [vmem:[#allocation3 + $0x58] sm:$0xff] }
 0x840   : > { %2776 = vperm.xlu2 %4434, %v6719_v4   ;;  %v2538_v49 = vadd.f32 %v2519_v21, %v2490_v38 }
 0x842   : > { %2555 = vst.msk [vmem:[#allocation3 + $0x60] sm:$0xff] %vm2542_vm11, %v2538_v49 }
 0x843   : > { %v2503_v28 = vpop.xlane.xlu2 %2502 }
 0x844   : > { %v2530_v61 = vadd.f32 %v2503_v28, %v2482_v25  ;;  %v4705_v9 = vpop.eup %4704  ;;  %v2464_v25 = vld [vmem:[#allocation3 + $0x10] sm:$0xff] }
 0x845   : > { %v2491_v38 = vmul.f32 %v4705_v9, %v2475_v7  ;;  %v2480_v28 = vmul.f32 %v6662_v55, %v2464_v25  ;;  %v6751_v7 = vld [vmem:[%s5078_s7 + $0x10] sm:$0xff] }
 0x846   : > { %2547 = vst.msk [vmem:[#allocation3 + $0x20] sm:$0xff] %vm2542_vm11, %v2530_v61 }
 0x84b   : > { %v2509_v50 = vpop.xlane.xlu2 %2508 }
 0x84c   : > { %v2533_v11 = vadd.f32 %v2509_v50, %v2485_v47  ;;  %v2483_v47 = vmul.f32 %v6673_v8, %v2467_v14 }
 0x84e   : > { %2550 = vst.msk [vmem:[#allocation3 + $0x38] sm:$0xff] %vm2542_vm11, %v2533_v11  ;;  %v2470_v11 = vld [vmem:[#allocation3 + $0x40] sm:$0xff] }
 0x84f   : > { %v2486_v55 = vmul.f32 %v6688_v17, %v2470_v11 }
 0x853   : > { %v2515_v22 = vpop.xlane.xlu2 %2514 }
 0x854   : > { %v2536_v51 = vadd.f32 %v2515_v22, %v2488_v24  ;;  %v2489_v24 = vmul.f32 %v6705_v6, %v2473_v30 }
 0x856   : > { %2553 = vst.msk [vmem:[#allocation3 + $0x50] sm:$0xff] %vm2542_vm11, %v2536_v51  ;;  %v6748_v51 = vld [vmem:[%s5078_s7 + $0x18] sm:$0xff] }
 0x857   : > { %v4442_v17 = vpack.i.bf16 %v6748_v51, %v6751_v7 }
 0x85b   : > { %v2521_v21 = vpop.xlane.xlu2 %2520 }
 0x85c   : > { %v2539_v49 = vadd.f32 %v2521_v21, %v2491_v38  ;;  %v6757_v38 = vld [vmem:[%s5078_s7 + $0x38] sm:$0xff]  ;;  %v6760_v21 = vld [vmem:[%s5078_s7 + $0x30] sm:$0xff] }
 0x85d   : > { %v4452_v6 = vpack.i.bf16 %v6757_v38, %v6760_v21 }
 0x85e   : > { %2556 = vst.msk [vmem:[#allocation3 + $0x68] sm:$0xff] %vm2542_vm11, %v2539_v49  ;;  %v6766_v49 = vld [vmem:[%s5078_s7 + $0x68] sm:$0xff] }
 0x863   : > { %v2407_v29 = vpop.permute.xlu2 %2406 }
 0x864   : > { %v2428_v5 = vsub.f32 %v6409_v33, %v2407_v29  ;;  %v6769_v29 = vld [vmem:[%s5078_s7 + $0x60] sm:$0xff] }
 0x866   : > { %v2458_v62 = vmul.f32 1.442695, %v2428_v5  ;;  %v4467_v5 = vpack.i.bf16 %v6766_v49, %v6769_v29 }
 0x868   : > { %4706 = vpow2.f32 %v2458_v62  ;;  %v2476_v62 = vld [vmem:[#allocation3 + $0x70] sm:$0xff] }
 0x869   : > { %v2499_v61 = vpop.xlane.xlu0 %2498  ;;  %v2492_v25 = vmul.f32 %v6719_v4, %v2476_v62 }
 0x86a   : > { %v2528_v12 = vadd.f32 %v2499_v61, %v2480_v28 }
 0x86c   : > { %2545 = vst.msk [vmem:[#allocation3 + $0x10] sm:$0xff] %vm2542_vm11, %v2528_v12 }
 0x86e   : > { %v6737_v40 = vpop.eup %4706 }
 0x86f   : > { %2522 = vadd.xlane.f32.xlu0 %v6737_v40 }
 0x871   : > { %v2505_v50 = vpop.xlane.xlu0 %2504 }
 0x872   : > { %v2531_v33 = vadd.f32 %v2505_v50, %v2483_v47  ;;  %v2301_v50 = vsub.f32 %v6600_v27, %v6603_v52 }
 0x874   : > { %2548 = vst.msk [vmem:[#allocation3 + $0x28] sm:$0xff] %vm2542_vm11, %v2531_v33  ;;  %v2332_v33 = vmul.f32 1.442695, %v2301_v50 }
 0x879   : > { %v2511_v57 = vpop.xlane.xlu0 %2510 }
 0x87a   : > { %v2534_v45 = vadd.f32 %v2511_v57, %v2486_v55  ;;  %v4439_v55 = vpop.permute.xlu2 %4438 }
 0x87b   : > { %v4441_v50 = vunpack.i.h.bf16 %v4439_v55 }
 0x87c   : > { %2551 = vst.msk [vmem:[#allocation3 + $0x40] sm:$0xff] %vm2542_vm11, %v2534_v45 }
 0x881   : > { %v2517_v8 = vpop.xlane.xlu0 %2516 }
 0x882   : > { %v2537_v22 = vadd.f32 %v2517_v8, %v2489_v24  ;;  %v4459_v45 = vpop.permute.xlu2 %4458 }
 0x883   : > { %2411 = vperm.xlu0 %4435, %v6603_v52  }
 0x884   : > { %2554 = vst.msk [vmem:[#allocation3 + $0x58] sm:$0xff] %vm2542_vm11, %v2537_v22  ;;  %v2477_v22 = vld [vmem:[#allocation3 + $0x78] sm:$0xff] }
 0x88b   : > { %4443 = vrot.lane.b32.xlu0 %v4442_v17, %s4954_s29 }
 0x893   : > { %4453 = vrot.lane.b32.xlu0 %v4452_v6, %s4954_s29 }
 0x89b   : > { %4468 = vrot.lane.b32.xlu0 %v4467_v5, %s4954_s29 }
 0x8a3   : > { %2711 = vperm.xlu0 %4435, %v6702_v15  }
 0x8ab   : > { %2726 = vperm.xlu0 %4435, %v6715_v43   ;;  %v6783_v43 = vld [vmem:[%s5078_s7 + $0x28] sm:$0xff] }
 0x8b3   : > { %2741 = vperm.xlu0 %4435, %v4701_v16   ;;  %v6786_v16 = vld [vmem:[%s5078_s7 + $0x20] sm:$0xff] }
 0x8b4   : > { %v4447_v4 = vpack.i.bf16 %v6783_v43, %v6786_v16 }
 0x8bb   : > { %2756 = vperm.xlu0 %4435, %v4703_v48   ;;  %v6792_v48 = vld [vmem:[%s5078_s7 + $0x58] sm:$0xff] }
 0x8c3   : > { %2771 = vperm.xlu0 %4435, %v4705_v9   ;;  %v6795_v9 = vld [vmem:[%s5078_s7 + $0x50] sm:$0xff] }
 0x8e2   : > { %v2523_v28 = vpop.xlane.xlu0 %2522 }
 0x8e3   : > { %v2540_v61 = vadd.f32 %v2523_v28, %v2492_v25  ;;  %v4461_v25 = vunpack.i.h.bf16 %v4459_v45  ;;  %v4460_v28 = vunpack.i.l.bf16 %v4459_v45 }
 0x8e5   : > { %2557 = vst.msk [vmem:[#allocation3 + $0x70] sm:$0xff] %vm2542_vm11, %v2540_v61 }
 0x8f5   : > { %v2412_v12 = vpop.permute.xlu0 %2411 }
 0x8f6   : > { %v2429_v14 = vsub.f32 %v6556_v44, %v2412_v12  ;;  %v4462_v44 = vpack.i.bf16 %v6792_v48, %v6795_v9 }
 0x8f8   : > { %v2460_v15 = vmul.f32 1.442695, %v2429_v14 }
 0x8fa   : > { %4708 = vpow2.f32 %v2460_v15 }
 0x8fb   : > { %4710 = vpow2.f32 %v2332_v33  ;;  %v4440_v33 = vunpack.i.l.bf16 %v4439_v55 }
 0x8fd   : > { %v4444_v57 = vpop.permute.xlu0 %4443 }
 0x900   : > { %v6779_v47 = vpop.eup %4708 }
 0x901   : > { %2524 = vadd.xlane.f32.xlu1 %v6779_v47  ;;  %v4711_v11 = vpop.eup %4710 }
 0x902   : > { %v2493_v27 = vmul.f32 %v4711_v11, %v2477_v22 }
 0x905   : > { %v4454_v30 = vpop.permute.xlu0 %4453 }
 0x906   : > { %v4456_v61 = vunpack.i.h.bf16 %v4454_v30  ;;  %v4455_v12 = vunpack.i.l.bf16 %v4454_v30 }
 0x90d   : > { %v4469_v8 = vpop.permute.xlu0 %4468 }
 0x91a   : > { %4448 = vrot.lane.b32.xlu1 %v4447_v4, %s4954_s29  ;;  %v4446_v4 = vunpack.i.h.bf16 %v4444_v57 }
 0x922   : > { %4463 = vrot.lane.b32.xlu1 %v4462_v44, %s4954_s29  ;;  %v4445_v44 = vunpack.i.l.bf16 %v4444_v57 }
 0x92a   : > { %2706 = vperm.xlu1 %4436, %v6618_v26   ;;  %v4474_v26 = vpop.permute.xlu2 %4473 }
 0x92b   : > { %v4476_v24 = vunpack.i.h.bf16 %v4474_v26 }
 0x92d   : > { %2623 = vmatpush.msra.mxu2 %v4476_v24 }
 0x932   : > { %2721 = vperm.xlu1 %4436, %v6670_v41   ;;  %v4475_v41 = vunpack.i.l.bf16 %v4474_v26 }
 0x934   : > { %2624 = vmatpush.msra.mxu2 %v4475_v41 }
 0x93a   : > { %2736 = vperm.xlu1 %4436, %v6682_v59   ;;  %v4471_v59 = vunpack.i.h.bf16 %v4469_v8 }
 0x93c   : > { %2625 = vmatpush.msra.mxu2 %v4471_v59  ;;  %v2689_v59 = vld [vmem:[#allocation4 + $0x8] sm:$0xff] }
 0x942   : > { %2751 = vperm.xlu1 %4436, %v6697_v35   ;;  %v4470_v35 = vunpack.i.l.bf16 %v4469_v8 }
 0x944   : > { %2626 = vmatpush.msra.mxu2 %v4470_v35 }
 0x94a   : > { %2766 = vperm.xlu1 %4436, %v6710_v19  }
 0x952   : > { %2781 = vperm.xlu1 %4436, %v4711_v11  }
 0x974   : > { %v2525_v52 = vpop.xlane.xlu1 %2524 }
 0x975   : > { %v2541_v19 = vadd.f32 %v2525_v52, %v2493_v27 }
 0x977   : > { %2558 = vst.msk [vmem:[#allocation3 + $0x78] sm:$0xff] %vm2542_vm11, %v2541_v19  ;;  %vm2880_vm11 = vcmask 195712  }
 0x98c   : > { %v4449_v17 = vpop.permute.xlu1 %4448 }
 0x98d   : > { %v4451_v14 = vunpack.i.h.bf16 %v4449_v17  ;;  %v4450_v15 = vunpack.i.l.bf16 %v4449_v17 }
 0x994   : > { %v4464_v6 = vpop.permute.xlu1 %4463 }
 0x995   : > { %v4466_v5 = vunpack.i.h.bf16 %v4464_v6  ;;  %v4465_v62 = vunpack.i.l.bf16 %v4464_v6 }
 0x997   : > { %2627 = vmatpush.msra.mxu2 %v4466_v5 }
 0x999   : > { %2628 = vmatpush.msra.mxu2 %v4465_v62  ;;  %v2688_v62 = vld [vmem:[#allocation4] sm:$0xff] }
 0x99b   : > { %2629 = vmatpush.msra.mxu2 %v4461_v25 }
 0x99d   : > { %2630 = vmatpush.msra.mxu2 %v4460_v28  ;;  %v4827_v28 = vld [vmem:[%s5063_s9] sm:$0xff] }
 0x99f   : > { %2631 = vmatpush.msra.mxu2 %v4456_v61 }
 0x9a1   : > { %2632 = vmatpush.msra.mxu2 %v4455_v12 }
 0x9a3   : > { %2633 = vmatpush.msra.mxu2 %v4451_v14 }
 0x9a5   : > { %2634 = vmatpush.msra.mxu2 %v4450_v15 }
 0x9a7   : > { %2635 = vmatpush.msra.mxu2 %v4446_v4  ;;  %v2692_v4 = vld [vmem:[#allocation4 + $0x20] sm:$0xff] }
 0x9a9   : > { %2636 = vmatpush.msra.mxu2 %v4445_v44  ;;  %v4828_v44 = vld [vmem:[%s5063_s9 + $0x18] sm:$0xff] }
 0x9ab   : > { %2637 = vmatpush.msra.mxu2 %v4441_v50  ;;  %v4829_v50 = vld [vmem:[%s5063_s9 + $0x8] sm:$0xff] }
 0x9ad   : > { %2638 = vmatpush.msra.mxu2 %v4440_v33 }
 0x9ae   : > { %2639 = vmatmul.f32.vlgmr.msra.gmra.mxu2 %v6561_v20 }
 0x9b6   : > { %2642 = vmatmul.f32.gmra.mxu2 %v6582_v39 }
 0x9be   : > { %2645 = vmatmul.f32.gmra.mxu2 %v6615_v54 }
 0x9c6   : > { %2648 = vmatmul.f32.gmra.mxu2 %v6569_v31 }
 0x9ce   : > { %2651 = vmatmul.f32.gmra.mxu2 %v6589_v58 }
 0x9d6   : > { %2654 = vmatmul.f32.gmra.mxu2 %v6621_v56  ;;  %v2712_v56 = vpop.permute.xlu0 %2711 }
 0x9d7   : > { %v2785_v22 = vmul.f32 %v2712_v56, %v2689_v59  ;;  %v4836_v59 = vld [vmem:[%s5063_s9 + $0x58] sm:$0xff] }
 0x9de   : > { %2657 = vmatmul.f32.gmra.mxu2 %v6574_v2  ;;  %v2727_v11 = vpop.permute.xlu0 %2726 }
 0x9df   : > { %v2788_v33 = vmul.f32 %v2727_v11, %v2692_v4 }
 0x9e6   : > { %2660 = vmatmul.f32.gmra.mxu2 %v6593_v13  ;;  %v6831_v13 = vpop.permute.xlu2 %2716  ;;  %v6843_v30 = vpop.permute.xlu0 %2741 }
 0x9ee   : > { %2663 = vmatmul.f32.gmra.mxu2 %v6630_v32  ;;  %v6850_v35 = vpop.permute.xlu0 %2756 }
 0x9f6   : > { %2666 = vmatmul.f32.gmra.mxu2 %v6579_v1  ;;  %v6857_v6 = vpop.permute.xlu0 %2771 }
 0x9fe   : > { %2669 = vmatmul.f32.gmra.mxu2 %v6597_v23 }
 0xa06   : > { %2672 = vmatmul.f32.gmra.mxu2 %v6642_v10 }
 0xa0e   : > { %2675 = vmatmul.f32.gmra.mxu2 %v6586_v37 }
 0xa16   : > { %2678 = vmatmul.f32.gmra.mxu2 %v6607_v34  ;;  %v6834_v34 = vpop.permute.xlu2 %2731 }
 0xa1e   : > { %2681 = vmatmul.f32.gmra.mxu2 %v6737_v40  ;;  %v6837_v32 = vpop.permute.xlu2 %2746  ;;  %v2707_v40 = vpop.permute.xlu1 %2706 }
 0xa1f   : > { %v2784_v61 = vmul.f32 %v2707_v40, %v2688_v62  ;;  %v4833_v40 = vld [vmem:[%s5063_s9 + $0x40] sm:$0xff] }
 0xa20   : > { %v4839_v62 = vld [vmem:[%s5063_s9 + $0x60] sm:$0xff] }
 0xa26   : > { %2684 = vmatmul.f32.gmra.mxu2 %v6779_v47  ;;  %v4956_v47 = vmov 3   ;;  %v6840_v57 = vpop.permute.xlu2 %2761  ;;  %v2722_v45 = vpop.permute.xlu1 %2721 }
 0xa27   : > { %4477 = vset.pattern.permute.xlu2 %v4956_v47  ;;  %4478 = vset.pattern.permute.xlu1 %v4956_v47 }
 0xa28   : > { %4479 = vset.pattern.permute.xlu0 %v4956_v47  ;;  %v4834_v47 = vld [vmem:[%s5063_s9 + $0x30] sm:$0xff] }
 0xa2e   : > { %v6846_v24 = vpop.permute.xlu2 %2776  ;;  %v6848_v41 = vpop.permute.xlu1 %2736 }
 0xa31   : > { %v2640_v20 = vpop.f32.mrf.mxu2 }
 0xa32   : > { %2816 = vrot.lane.b32.xlu0 %v2640_v20, %s4955_s30 }
 0xa36   : > { %v6854_v19 = vpop.permute.xlu1 %2751 }
 0xa39   : > { %v2643_v2 = vpop.f32.mrf.mxu2 }
 0xa3a   : > { %2818 = vrot.lane.b32.xlu2 %v2643_v2, %s4955_s30 }
 0xa3e   : > { %v6859_v25 = vpop.permute.xlu1 %2766 }
 0xa41   : > { %v2646_v31 = vpop.f32.mrf.mxu2 }
 0xa42   : > { %2820 = vrot.lane.b32.xlu1 %v2646_v31, %s4955_s30 }
 0xa46   : > { %v6867_v20 = vpop.permute.xlu1 %2781 }
 0xa49   : > { %v2649_v1 = vpop.f32.mrf.mxu2 }
 0xa4a   : > { %2822 = vrot.lane.b32.xlu0 %v2649_v1, %s4955_s30  ;;  %v2690_v1 = vld [vmem:[#allocation4 + $0x10] sm:$0xff] }
 0xa51   : > { %v2652_v39 = vpop.f32.mrf.mxu2 }
 0xa52   : > { %2824 = vrot.lane.b32.xlu2 %v2652_v39, %s4955_s30  ;;  %v4830_v39 = vld [vmem:[%s5063_s9 + $0x28] sm:$0xff] }
 0xa59   : > { %v2655_v37 = vpop.f32.mrf.mxu2 }
 0xa5a   : > { %2826 = vrot.lane.b32.xlu1 %v2655_v37, %s4955_s30  ;;  %v4831_v37 = vld [vmem:[%s5063_s9 + $0x20] sm:$0xff] }
 0xa61   : > { %v2658_v58 = vpop.f32.mrf.mxu2 }
 0xa62   : > { %2828 = vrot.lane.b32.xlu0 %v2658_v58, %s4955_s30  ;;  %v2786_v58 = vmul.f32 %v6831_v13, %v2690_v1 }
 0xa69   : > { %v2661_v23 = vpop.f32.mrf.mxu2 }
 0xa6a   : > { %2830 = vrot.lane.b32.xlu2 %v2661_v23, %s4955_s30  ;;  %v4832_v23 = vld [vmem:[%s5063_s9 + $0x10] sm:$0xff] }
 0xa71   : > { %v2664_v54 = vpop.f32.mrf.mxu2 }
 0xa72   : > { %2832 = vrot.lane.b32.xlu1 %v2664_v54, %s4955_s30 }
 0xa79   : > { %v2667_v10 = vpop.f32.mrf.mxu2 }
 0xa7a   : > { %2834 = vrot.lane.b32.xlu0 %v2667_v10, %s4955_s30  ;;  %v2691_v10 = vld [vmem:[#allocation4 + $0x18] sm:$0xff] }
 0xa7b   : > { %v2787_v11 = vmul.f32 %v2722_v45, %v2691_v10  ;;  %v2693_v45 = vld [vmem:[#allocation4 + $0x28] sm:$0xff] }
 0xa81   : > { %v2670_v55 = vpop.f32.mrf.mxu2 }
 0xa82   : > { %2836 = vrot.lane.b32.xlu2 %v2670_v55, %s4955_s30  ;;  %v4835_v55 = vld [vmem:[%s5063_s9 + $0x38] sm:$0xff] }
 0xa89   : > { %v2673_v26 = vpop.f32.mrf.mxu2 }
 0xa8a   : > { %2838 = vrot.lane.b32.xlu1 %v2673_v26, %s4955_s30 }
 0xa91   : > { %v2676_v8 = vpop.f32.mrf.mxu2 }
 0xa92   : > { %2840 = vrot.lane.b32.xlu0 %v2676_v8, %s4955_s30  ;;  %v2695_v8 = vld [vmem:[#allocation4 + $0x38] sm:$0xff] }
 0xa94   : > { %v2819_v27 = vpop.permute.xlu2 %2818 }
 0xa95   : > { %v2865_v52 = vadd.f32 %v2819_v27, %v2785_v22  ;;  %v4837_v22 = vld [vmem:[%s5063_s9 + $0x48] sm:$0xff]  ;;  %v2791_v27 = vmul.f32 %v6843_v30, %v2695_v8 }
 0xa97   : > { %2882 = vst.msk [vmem:[#allocation4 + $0x8] sm:$0xff] %vm2880_vm11, %v2865_v52  ;;  %v4838_v52 = vld [vmem:[%s5063_s9 + $0x50] sm:$0xff] }
 0xa99   : > { %v2679_v17 = vpop.f32.mrf.mxu2 }
 0xa9a   : > { %2842 = vrot.lane.b32.xlu2 %v2679_v17, %s4955_s30 }
 0xaa1   : > { %v2682_v5 = vpop.f32.mrf.mxu2 }
 0xaa2   : > { %2898 = vperm.xlu2 %4477, %v4827_v28   ;;  %2844 = vrot.lane.b32.xlu1 %v2682_v5, %s4955_s30  ;;  %v2789_v28 = vmul.f32 %v6834_v34, %v2693_v45  ;;  %v2696_v34 = vld [vmem:[#allocation4 + $0x40] sm:$0xff] }
 0xaa4   : > { %v2817_v12 = vpop.permute.xlu0 %2816 }
 0xaa5   : > { %v2864_v14 = vadd.f32 %v2817_v12, %v2784_v61 }
 0xaa7   : > { %2881 = vst.msk [vmem:[#allocation4] sm:$0xff] %vm2880_vm11, %v2864_v14  ;;  %v2694_v14 = vld [vmem:[#allocation4 + $0x30] sm:$0xff] }
 0xaa9   : > { %v2685_v15 = vpop.f32.mrf.mxu2 }
 0xaaa   : > { %2910 = vperm.xlu2 %4477, %v4828_v44   ;;  %2902 = vperm.xlu1 %4478, %v4829_v50   ;;  %v2698_v44 = vld [vmem:[#allocation4 + $0x50] sm:$0xff] }
 0xaab   : > { %2846 = vrot.lane.b32.xlu0 %v2685_v15, %s4955_s30  ;;  %v2790_v15 = vmul.f32 %v6848_v41, %v2694_v14  ;;  %v2794_v50 = vmul.f32 %v6850_v35, %v2698_v44  ;;  %v2697_v41 = vld [vmem:[#allocation4 + $0x48] sm:$0xff]  ;;  %v2703_v14 = vld [vmem:[#allocation4 + $0x78] sm:$0xff] }
 0xaac   : > { %v2825_v2 = vpop.permute.xlu2 %2824  ;;  %v2701_v35 = vld [vmem:[#allocation4 + $0x68] sm:$0xff] }
 0xaad   : > { %v2868_v31 = vadd.f32 %v2825_v2, %v2788_v33 }
 0xaaf   : > { %2885 = vst.msk [vmem:[#allocation4 + $0x20] sm:$0xff] %vm2880_vm11, %v2868_v31  ;;  %v2792_v31 = vmul.f32 %v6837_v32, %v2696_v34 }
 0xab2   : > { %2918 = vperm.xlu2 %4477, %v4830_v39   ;;  %2914 = vperm.xlu1 %4478, %v4831_v37   ;;  %v2793_v37 = vmul.f32 %v6854_v19, %v2697_v41 }
 0xab3   : > { %2906 = vperm.xlu0 %4479, %v4832_v23  }
 0xab4   : > { %v2821_v54 = vpop.permute.xlu1 %2820 }
 0xab5   : > { %v2866_v56 = vadd.f32 %v2821_v54, %v2786_v58  ;;  %v2797_v54 = vmul.f32 %v6857_v6, %v2701_v35  ;;  %v2700_v6 = vld [vmem:[#allocation4 + $0x60] sm:$0xff] }
 0xab7   : > { %2883 = vst.msk [vmem:[#allocation4 + $0x10] sm:$0xff] %vm2880_vm11, %v2866_v56 }
 0xaba   : > { %2930 = vperm.xlu2 %4477, %v4833_v40   ;;  %2922 = vperm.xlu1 %4478, %v4834_v47   ;;  %v4840_v40 = vld [vmem:[%s5068_s13] sm:$0xf]  ;;  %v2699_v47 = vld [vmem:[#allocation4 + $0x58] sm:$0xff] }
 0xabb   : > { %2926 = vperm.xlu0 %4479, %v4835_v55   ;;  %v6898_v32 = vperm.slane %v4840_v40, 3 }
 0xabc   : > { %v2823_v26 = vpop.permute.xlu0 %2822 }
 0xabd   : > { %v2867_v13 = vadd.f32 %v2823_v26, %v2787_v11  ;;  %v2795_v11 = vmul.f32 %v6840_v57, %v2699_v47 }
 0xabf   : > { %2884 = vst.msk [vmem:[#allocation4 + $0x18] sm:$0xff] %vm2880_vm11, %v2867_v13 }
 0xac2   : > { %2942 = vperm.xlu2 %4477, %v4836_v59   ;;  %2934 = vperm.xlu1 %4478, %v4837_v22   ;;  %v2796_v22 = vmul.f32 %v6859_v25, %v2700_v6  ;;  %v2798_v25 = vmul.f32 %v6846_v24, %v2702_v63 }
 0xac3   : > { %2938 = vperm.xlu0 %4479, %v4838_v52  }
 0xac4   : > { %v2831_v17 = vpop.permute.xlu2 %2830 }
 0xac5   : > { %v2871_v5 = vadd.f32 %v2831_v17, %v2791_v27 }
 0xac7   : > { %2888 = vst.msk [vmem:[#allocation4 + $0x38] sm:$0xff] %vm2880_vm11, %v2871_v5 }
 0xaca   : > { %2946 = vperm.xlu1 %4478, %v4839_v62  }
 0xacc   : > { %v2827_v61 = vpop.permute.xlu1 %2826 }
 0xacd   : > { %v2869_v12 = vadd.f32 %v2827_v61, %v2789_v28 }
 0xacf   : > { %2886 = vst.msk [vmem:[#allocation4 + $0x28] sm:$0xff] %vm2880_vm11, %v2869_v12 }
 0xad4   : > { %v2829_v4 = vpop.permute.xlu0 %2828 }
 0xad5   : > { %v2870_v30 = vadd.f32 %v2829_v4, %v2790_v15  ;;  %v2799_v15 = vmul.f32 %v6867_v20, %v2703_v14 }
 0xad7   : > { %2887 = vst.msk [vmem:[#allocation4 + $0x30] sm:$0xff] %vm2880_vm11, %v2870_v30 }
 0xadc   : > { %v2837_v33 = vpop.permute.xlu2 %2836 }
 0xadd   : > { %v2874_v2 = vadd.f32 %v2837_v33, %v2794_v50 }
 0xadf   : > { %2891 = vst.msk [vmem:[#allocation4 + $0x50] sm:$0xff] %vm2880_vm11, %v2874_v2 }
 0xae4   : > { %v2833_v1 = vpop.permute.xlu1 %2832 }
 0xae5   : > { %v2872_v39 = vadd.f32 %v2833_v1, %v2792_v31 }
 0xae7   : > { %2889 = vst.msk [vmem:[#allocation4 + $0x40] sm:$0xff] %vm2880_vm11, %v2872_v39 }
 0xaec   : > { %v2835_v58 = vpop.permute.xlu0 %2834 }
 0xaed   : > { %v2873_v23 = vadd.f32 %v2835_v58, %v2793_v37 }
 0xaef   : > { %2890 = vst.msk [vmem:[#allocation4 + $0x48] sm:$0xff] %vm2880_vm11, %v2873_v23 }
 0xaf4   : > { %v2843_v56 = vpop.permute.xlu2 %2842 }
 0xaf5   : > { %v2877_v10 = vadd.f32 %v2843_v56, %v2797_v54 }
 0xaf7   : > { %2894 = vst.msk [vmem:[#allocation4 + $0x68] sm:$0xff] %vm2880_vm11, %v2877_v10 }
 0xafc   : > { %v2839_v55 = vpop.permute.xlu1 %2838  ;;  %v2899_v26 = vpop.permute.xlu2 %2898 }
 0xafd   : > { %v2875_v19 = vadd.f32 %v2839_v55, %v2795_v11  ;;  %v2962_v13 = vadd.f32 %v6898_v32, %v2899_v26 }
 0xaff   : > { %2892 = vst.msk [vmem:[#allocation4 + $0x58] sm:$0xff] %vm2880_vm11, %v2875_v19  ;;  %v2978_v8 = vmul.f32 0.2, %v2962_v13 }
 0xb01   : > { %v2994_v59 = vmax.f32 %v2962_v13, %v2978_v8 }
 0xb03   : > { %v6906_v27 = vsel %vm5218_vm10, %v2994_v59, -1e+30  ;;  %vm3346_vm10 = vcmask 31768  }
 0xb04   : > { %v2841_v52 = vpop.permute.xlu0 %2840  ;;  %v2911_v17 = vpop.permute.xlu2 %2910  ;;  %3042 = vmax.xlane.f32.xlu0 %v6906_v27 }
 0xb05   : > { %v2876_v57 = vadd.f32 %v2841_v52, %v2796_v22  ;;  %v2965_v5 = vadd.f32 %v6898_v32, %v2911_v17 }
 0xb07   : > { %2893 = vst.msk [vmem:[#allocation4 + $0x60] sm:$0xff] %vm2880_vm11, %v2876_v57  ;;  %v2981_v45 = vmul.f32 0.2, %v2965_v5  ;;  %v7027_v57 = vld [vmem:[#allocation2 + $0x10] sm:$0xff] }
 0xb09   : > { %v2997_v62 = vmax.f32 %v2965_v5, %v2981_v45 }
 0xb0b   : > { %v6913_v28 = vsel %vm5275_vm1, %v2997_v62, -1e+30 }
 0xb0c   : > { %3048 = vmax.xlane.f32.xlu0 %v6913_v28  ;;  %v2919_v33 = vpop.permute.xlu2 %2918 }
 0xb0d   : > { %v2967_v41 = vadd.f32 %v6898_v32, %v2919_v33 }
 0xb0f   : > { %v2983_v54 = vmul.f32 0.2, %v2967_v41 }
 0xb11   : > { %v2999_v26 = vmax.f32 %v2967_v41, %v2983_v54 }
 0xb13   : > { %v6949_v17 = vsel %vm5328_vm14, %v2999_v26, -1e+30 }
 0xb14   : > { %v2845_v61 = vpop.permute.xlu1 %2844  ;;  %v2931_v35 = vpop.permute.xlu2 %2930 }
 0xb15   : > { %v2878_v12 = vadd.f32 %v2845_v61, %v2798_v25  ;;  %v2970_v36 = vadd.f32 %v6898_v32, %v2931_v35  ;;  %v7916_v35 = vld [vmem:[#allocation18_spill] sm:$0xff] }
 0xb17   : > { %2895 = vst.msk [vmem:[#allocation4 + $0x70] sm:$0xff] %vm2880_vm11, %v2878_v12  ;;  %v2986_v60 = vmul.f32 0.2, %v2970_v36 }
 0xb19   : > { %v3002_v12 = vmax.f32 %v2970_v36, %v2986_v60  ;;  %v7022_v60 = vld [vmem:[#allocation2 + $0x20] sm:$0xff] }
 0xb1c   : > { %v2903_v4 = vpop.permute.xlu1 %2902  ;;  %v2943_v45 = vpop.permute.xlu2 %2942 }
 0xb1d   : > { %v2963_v30 = vadd.f32 %v6898_v32, %v2903_v4  ;;  %v2847_v44 = vpop.permute.xlu0 %2846  ;;  %v2973_v14 = vadd.f32 %v6898_v32, %v2943_v45 }
 0xb1e   : > { %v2879_v50 = vadd.f32 %v2847_v44, %v2799_v15 }
 0xb1f   : > { %v2979_v46 = vmul.f32 0.2, %v2963_v30 }
 0xb20   : > { %2896 = vst.msk [vmem:[#allocation4 + $0x78] sm:$0xff] %vm2880_vm11, %v2879_v50 }
 0xb21   : > { %v2995_v2 = vmax.f32 %v2963_v30, %v2979_v46  ;;  %v2989_v46 = vmul.f32 0.2, %v2973_v14 }
 0xb23   : > { %v6923_v24 = vsel %vm5260_vm0, %v2995_v2, -1e+30  ;;  %v3005_v41 = vmax.f32 %v2973_v14, %v2989_v46  ;;  %v7041_v14 = vld [vmem:[#allocation2 + $0x38] sm:$0xff] }
 0xb24   : > { %3044 = vmax.xlane.f32.xlu2 %v6923_v24  ;;  %v2915_v34 = vpop.permute.xlu1 %2914 }
 0xb25   : > { %v2966_v31 = vadd.f32 %v6898_v32, %v2915_v34  ;;  %v2907_v20 = vpop.permute.xlu0 %2906  ;;  %v6967_v34 = vsel %vm5360_vm4, %v3002_v12, -1e+30 }
 0xb26   : > { %v2964_v1 = vadd.f32 %v6898_v32, %v2907_v20 }
 0xb27   : > { %v2982_v39 = vmul.f32 0.2, %v2966_v31 }
 0xb28   : > { %v2980_v37 = vmul.f32 0.2, %v2964_v1 }
 0xb29   : > { %v2998_v58 = vmax.f32 %v2966_v31, %v2982_v39  ;;  %v7063_v31 = vld [vmem:[#allocation2 + $0x40] sm:$0xff] }
 0xb2a   : > { %v2996_v23 = vmax.f32 %v2964_v1, %v2980_v37 }
 0xb2b   : > { %v6931_v3 = vsel %vm5245_vm13, %v2998_v58, -1e+30  ;;  %vm3684_vm13 = vcmask 261312  }
 0xb2c   : > { %3050 = vmax.xlane.f32.xlu2 %v6931_v3  ;;  %v2923_v56 = vpop.permute.xlu1 %2922  ;;  %v6936_v10 = vsel %vm5214_vm9, %v2996_v23, -1e+30  ;;  %vm7917_vm9 = vnez %v7916_v35 }
 0xb2d   : > { %v2968_v40 = vadd.f32 %v6898_v32, %v2923_v56  ;;  %3046 = vmax.xlane.f32.xlu1 %v6936_v10  ;;  %v2927_v47 = vpop.permute.xlu0 %2926  ;;  %v6983_v54 = vsel %vm7917_vm9, %v3005_v41, -1e+30  ;;  %v4841_v56 = vld [vmem:[%s5063_s9 + $0x68] sm:$0xff] }
 0xb2e   : > { %v2969_v11 = vadd.f32 %v6898_v32, %v2927_v47  ;;  %v4495_v47 = vpack.i.bf16 %v6638_v53, %v6635_v0 }
 0xb2f   : > { %v2984_v55 = vmul.f32 0.2, %v2968_v40 }
 0xb30   : > { %v2985_v19 = vmul.f32 0.2, %v2969_v11 }
 0xb31   : > { %v3000_v13 = vmax.f32 %v2968_v40, %v2984_v55  ;;  %v4480_v40 = vpack.i.bf16 %v6652_v42, %v6649_v18  ;;  %v7003_v18 = vld [vmem:[#allocation2 + $0x18] sm:$0xff] }
 0xb32   : > { %v3001_v8 = vmax.f32 %v2969_v11, %v2985_v19  ;;  %v6993_v11 = vld [vmem:[#allocation2] sm:$0xff]  ;;  %v7012_v19 = vld [vmem:[#allocation2 + $0x8] sm:$0xff] }
 0xb33   : > { %v6944_v6 = vsel %vm5289_vm6, %v3000_v13, -1e+30 }
 0xb34   : > { %v2935_v22 = vpop.permute.xlu1 %2934  ;;  %3054 = vmax.xlane.f32.xlu0 %v6944_v6  ;;  %v6953_v5 = vsel %vm7890_vm7, %v3001_v8, -1e+30 }
 0xb35   : > { %v2971_v62 = vadd.f32 %v6898_v32, %v2935_v22  ;;  %3052 = vmax.xlane.f32.xlu1 %v6949_v17  ;;  %3056 = vmax.xlane.f32.xlu2 %v6953_v5  ;;  %v2939_v63 = vpop.permute.xlu0 %2938 }
 0xb36   : > { %v2972_v25 = vadd.f32 %v6898_v32, %v2939_v63  ;;  %v7037_v63 = vld [vmem:[#allocation2 + $0x30] sm:$0xff] }
 0xb37   : > { %v2987_v61 = vmul.f32 0.2, %v2971_v62 }
 0xb38   : > { %v2988_v15 = vmul.f32 0.2, %v2972_v25 }
 0xb39   : > { %v3003_v4 = vmax.f32 %v2971_v62, %v2987_v61  ;;  %v7039_v61 = vld [vmem:[#allocation2 + $0x28] sm:$0xff] }
 0xb3a   : > { %v3004_v30 = vmax.f32 %v2972_v25, %v2988_v15 }
 0xb3b   : > { %v6962_v50 = vsel %vm5332_vm15, %v3003_v4, -1e+30 }
 0xb3c   : > { %v2947_v33 = vpop.permute.xlu1 %2946  ;;  %3060 = vmax.xlane.f32.xlu0 %v6962_v50  ;;  %v6971_v20 = vsel %vm7896_vm5, %v3004_v30, -1e+30 }
 0xb3d   : > { %v2974_v1 = vadd.f32 %v6898_v32, %v2947_v33  ;;  %3058 = vmax.xlane.f32.xlu1 %v6967_v34  ;;  %3062 = vmax.xlane.f32.xlu2 %v6971_v20  ;;  %v7061_v33 = vld [vmem:[#allocation2 + $0x48] sm:$0xff] }
 0xb3f   : > { %v2990_v39 = vmul.f32 0.2, %v2974_v1 }
 0xb41   : > { %v3006_v37 = vmax.f32 %v2974_v1, %v2990_v39  ;;  %v7065_v39 = vld [vmem:[#allocation2 + $0x50] sm:$0xff] }
 0xb42   : > { %7918 = vst [vmem:[#allocation9_spill] sm:$0xff] %v7065_v39 }
 0xb43   : > { %v6978_v23 = vsel %vm7892_vm2, %v3006_v37, -1e+30 }
 0xb44   : > { %3066 = vmax.xlane.f32.xlu0 %v6978_v23 }
 0xb45   : > { %3064 = vmax.xlane.f32.xlu1 %v6983_v54 }
 0xb58   : > { %2950 = vperm.xlu0 %4479, %v4841_v56   ;;  %v4500_v56 = vpack.i.bf16 %v6760_v21, %v6757_v38 }
 0xb60   : > { %4481 = vrot.lane.b32.xlu0 %v4480_v40, %s4957_s10  ;;  %v7085_v40 = vld [vmem:[#allocation2 + $0x60] sm:$0xff] }
 0xb68   : > { %4496 = vrot.lane.b32.xlu0 %v4495_v47, %s4957_s10 }
 0xb77   : > { %v3043_v55 = vpop.xlane.xlu0 %3042 }
 0xb78   : > { %v6996_v26 = vmax.f32 %v6993_v11, %v3043_v55  ;;  %v7087_v55 = vld [vmem:[#allocation2 + $0x58] sm:$0xff] }
 0xb7a   : > { %3363 = vst.msk [vmem:[#allocation2] sm:$0xff] %vm3346_vm10, %v6996_v26  ;;  %3140 = vperm.xlu0 %4479, %v6996_v26  }
 0xb7f   : > { %v3049_v0 = vpop.xlane.xlu0 %3048 }
 0xb80   : > { %v7006_v53 = vmax.f32 %v7003_v18, %v3049_v0 }
 0xb82   : > { %3366 = vst.msk [vmem:[#allocation2 + $0x18] sm:$0xff] %vm3346_vm10, %v7006_v53 }
 0xb97   : > { %v3045_v13 = vpop.xlane.xlu2 %3044 }
 0xb98   : > { %v7015_v8 = vmax.f32 %v7012_v19, %v3045_v13 }
 0xb9a   : > { %3364 = vst.msk [vmem:[#allocation2 + $0x8] sm:$0xff] %vm3346_vm10, %v7015_v8  ;;  %3145 = vperm.xlu0 %4479, %v7015_v8  }
 0xb9f   : > { %v3051_v22 = vpop.xlane.xlu2 %3050 }
 0xba0   : > { %v7025_v52 = vmax.f32 %v7022_v60, %v3051_v22  ;;  %v3047_v45 = vpop.xlane.xlu1 %3046 }
 0xba1   : > { %v7030_v62 = vmax.f32 %v7027_v57, %v3047_v45 }
 0xba2   : > { %3367 = vst.msk [vmem:[#allocation2 + $0x20] sm:$0xff] %vm3346_vm10, %v7025_v52  ;;  %3155 = vperm.xlu0 %4479, %v7006_v53  }
 0xba3   : > { %3365 = vst.msk [vmem:[#allocation2 + $0x10] sm:$0xff] %vm3346_vm10, %v7030_v62 }
 0xba7   : > { %v3055_v25 = vpop.xlane.xlu0 %3054 }
 0xba8   : > { %v3053_v12 = vpop.xlane.xlu1 %3052  ;;  %v3057_v15 = vpop.xlane.xlu2 %3056  ;;  %v7044_v4 = vmax.f32 %v7037_v63, %v3055_v25 }
 0xba9   : > { %v7047_v30 = vmax.f32 %v7039_v61, %v3053_v12  ;;  %v7050_v44 = vmax.f32 %v7041_v14, %v3057_v15 }
 0xbaa   : > { %3369 = vst.msk [vmem:[#allocation2 + $0x30] sm:$0xff] %vm3346_vm10, %v7044_v4  ;;  %3170 = vperm.xlu0 %4479, %v7044_v4  }
 0xbab   : > { %3368 = vst.msk [vmem:[#allocation2 + $0x28] sm:$0xff] %vm3346_vm10, %v7047_v30 }
 0xbac   : > { %3370 = vst.msk [vmem:[#allocation2 + $0x38] sm:$0xff] %vm3346_vm10, %v7050_v44 }
 0xbaf   : > { %v3061_v2 = vpop.xlane.xlu0 %3060 }
 0xbb0   : > { %v3059_v1 = vpop.xlane.xlu1 %3058  ;;  %v3063_v41 = vpop.xlane.xlu2 %3062  ;;  %v7068_v37 = vmax.f32 %v7061_v33, %v3061_v2 }
 0xbb1   : > { %v7071_v58 = vmax.f32 %v7063_v31, %v3059_v1  ;;  %v7074_v35 = vmax.f32 %v7065_v39, %v3063_v41  ;;  %v4843_v1 = vld [vmem:[%s5063_s9 + $0x78] sm:$0xff] }
 0xbb2   : > { %3372 = vst.msk [vmem:[#allocation2 + $0x48] sm:$0xff] %vm3346_vm10, %v7068_v37  ;;  %3185 = vperm.xlu0 %4479, %v7068_v37  }
 0xbb3   : > { %3371 = vst.msk [vmem:[#allocation2 + $0x40] sm:$0xff] %vm3346_vm10, %v7071_v58 }
 0xbb4   : > { %3373 = vst.msk [vmem:[#allocation2 + $0x50] sm:$0xff] %vm3346_vm10, %v7074_v35 }
 0xbb7   : > { %v3067_v47 = vpop.xlane.xlu0 %3066 }
 0xbb8   : > { %v3065_v0 = vpop.xlane.xlu1 %3064  ;;  %v7090_v13 = vmax.f32 %v7085_v40, %v3067_v47  ;;  %v4842_v47 = vld [vmem:[%s5063_s9 + $0x70] sm:$0xff]  ;;  %s4958_s9 = smov 24  }
 0xbb9   : > { %v7093_v22 = vmax.f32 %v7087_v55, %v3065_v0  ;;  %v4485_v0 = vpack.i.bf16 %v6769_v29, %v6766_v49  ;;  %v7123_v49 = vld [vmem:[#allocation2 + $0x68] sm:$0xff] }
 0xbba   : > { %3375 = vst.msk [vmem:[#allocation2 + $0x60] sm:$0xff] %vm3346_vm10, %v7090_v13 }
 0xbbb   : > { %3374 = vst.msk [vmem:[#allocation2 + $0x58] sm:$0xff] %vm3346_vm10, %v7093_v22  ;;  %3195 = vperm.xlu0 %4479, %v7093_v22  }
 0xbbc   : > { %7920 = vst [vmem:[#allocation8_spill] sm:$0xff] %v7123_v49 }
 0xbca   : > { %v2951_v25 = vpop.permute.xlu0 %2950 }
 0xbcb   : > { %v2975_v12 = vadd.f32 %v6898_v32, %v2951_v25  ;;  %v4510_v25 = vpack.i.bf16 %v6751_v7, %v6748_v51 }
 0xbcd   : > { %v2991_v15 = vmul.f32 0.2, %v2975_v12 }
 0xbcf   : > { %v3007_v2 = vmax.f32 %v2975_v12, %v2991_v15 }
 0xbd1   : > { %v7105_v41 = vsel %vm7898_vm12, %v3007_v2, -1e+30 }
 0xbd2   : > { %3068 = vmax.xlane.f32.xlu2 %v7105_v41 }
 0xbea   : > { %2954 = vperm.xlu2 %4477, %v4842_v47   ;;  %v4490_v47 = vpack.i.bf16 %v6795_v9, %v6792_v48 }
 0xbf2   : > { %4486 = vrot.lane.b32.xlu2 %v4485_v0, %s4957_s10  ;;  %v4505_v0 = vpack.i.bf16 %v6786_v16, %v6783_v43 }
 0xbfa   : > { %4501 = vrot.lane.b32.xlu2 %v4500_v56, %s4957_s10 }
 0xc02   : > { %4511 = vrot.lane.b32.xlu2 %v4510_v25, %s4957_s10  ;;  %v4844_v25 = vld [vmem:[%s5078_s7 + $0x8] sm:$0xff] }
 0xc0a   : > { %3150 = vperm.xlu2 %4477, %v7030_v62  }
 0xc12   : > { %3165 = vperm.xlu2 %4477, %v7047_v30  }
 0xc1a   : > { %3180 = vperm.xlu2 %4477, %v7071_v58  }
 0xc22   : > { %3190 = vperm.xlu2 %4477, %v7074_v35  }
 0xc2a   : > { %3200 = vperm.xlu2 %4477, %v7090_v13  }
 0xc45   : > { %v3069_v38 = vpop.xlane.xlu2 %3068 }
 0xc46   : > { %v7126_v21 = vmax.f32 %v7123_v49, %v3069_v38  ;;  %v4845_v38 = vld [vmem:[%s5078_s7] sm:$0xff] }
 0xc48   : > { %7921 = vst [vmem:[#allocation6_spill] sm:$0xff] %v7126_v21  ;;  %3205 = vperm.xlu0 %4479, %v7126_v21  }
 0xc49   : > { %3376 = vst.msk [vmem:[#allocation2 + $0x68] sm:$0xff] %vm3346_vm10, %v7126_v21 }
 0xc4d   : > { %v2955_v7 = vpop.permute.xlu2 %2954 }
 0xc4e   : > { %v2976_v29 = vadd.f32 %v6898_v32, %v2955_v7  ;;  %v4515_v7 = vpack.i.bf16 %v4845_v38, %v4844_v25 }
 0xc50   : > { %v2992_v56 = vmul.f32 0.2, %v2976_v29 }
 0xc52   : > { %v3008_v12 = vmax.f32 %v2976_v29, %v2992_v56  ;;  %v4482_v56 = vpop.permute.xlu0 %4481 }
 0xc53   : > { %v4483_v9 = vunpack.i.l.bf16 %v4482_v56  ;;  %v4484_v15 = vunpack.i.h.bf16 %v4482_v56 }
 0xc54   : > { %v7136_v2 = vsel %vm5410_vm8, %v3008_v12, -1e+30 }
 0xc55   : > { %3070 = vmax.xlane.f32.xlu1 %v7136_v2  ;;  %v4487_v29 = vpop.permute.xlu2 %4486  ;;  %3427 = vmatpush.msra.mxu3 %v4483_v9 }
 0xc56   : > { %v4488_v43 = vunpack.i.l.bf16 %v4487_v29 }
 0xc57   : > { %3428 = vmatpush.msra.mxu3 %v4484_v15 }
 0xc59   : > { %3429 = vmatpush.msra.mxu3 %v4488_v43 }
 0xc5a   : > { %v4497_v48 = vpop.permute.xlu0 %4496 }
 0xc5d   : > { %v7151_v12 = vpop.permute.xlu2 %4501 }
 0xc65   : > { %v7153_v16 = vpop.permute.xlu2 %4511 }
 0xc6d   : > { %v3151_v56 = vpop.permute.xlu2 %3150 }
 0xc6e   : > { %2958 = vperm.xlu1 %4478, %v4843_v1   ;;  %v7155_v1 = vld [vmem:[#allocation2 + $0x70] sm:$0xff] }
 0xc75   : > { %v7167_v15 = vpop.permute.xlu2 %3165 }
 0xc76   : > { %4491 = vrot.lane.b32.xlu1 %v4490_v47, %s4957_s10 }
 0xc7d   : > { %v7172_v36 = vpop.permute.xlu2 %3180 }
 0xc7e   : > { %4506 = vrot.lane.b32.xlu1 %v4505_v0, %s4957_s10  ;;  %v4489_v0 = vunpack.i.h.bf16 %v4487_v29 }
 0xc80   : > { %3430 = vmatpush.msra.mxu3 %v4489_v0  ;;  %v4513_v0 = vunpack.i.l.bf16 %v7153_v16 }
 0xc86   : > { %4516 = vrot.lane.b32.xlu1 %v4515_v7, %s4957_s10  ;;  %v3141_v7 = vpop.permute.xlu0 %3140 }
 0xc87   : > { %v3218_v38 = vsub.f32 %v6906_v27, %v3141_v7  ;;  %v4498_v27 = vunpack.i.l.bf16 %v4497_v48 }
 0xc89   : > { %v3234_v21 = vmul.f32 1.442695, %v3218_v38  ;;  %v4503_v38 = vunpack.i.l.bf16 %v7151_v12 }
 0xc8e   : > { %3160 = vperm.xlu1 %4478, %v7025_v52   ;;  %v7165_v9 = vpop.permute.xlu0 %3145 }
 0xc96   : > { %3175 = vperm.xlu1 %4478, %v7050_v44   ;;  %v3156_v29 = vpop.permute.xlu0 %3155 }
 0xc9e   : > { %v3171_v49 = vpop.permute.xlu0 %3170 }
 0xcc8   : > { %v3071_v47 = vpop.xlane.xlu1 %3070 }
 0xcc9   : > { %v7158_v25 = vmax.f32 %v7155_v1, %v3071_v47  ;;  %v3220_v47 = vsub.f32 %v6936_v10, %v3151_v56  ;;  %v3221_v10 = vsub.f32 %v6913_v28, %v3156_v29  ;;  %v4499_v56 = vunpack.i.h.bf16 %v4497_v48 }
 0xccb   : > { %3377 = vst.msk [vmem:[#allocation2 + $0x70] sm:$0xff] %vm3346_vm10, %v7158_v25  ;;  %3210 = vperm.xlu2 %4477, %v7158_v25   ;;  %v3238_v42 = vmul.f32 1.442695, %v3220_v47  ;;  %v3240_v7 = vmul.f32 1.442695, %v3221_v10  ;;  %v7181_v47 = vpop.permute.xlu2 %3190 }
 0xccd   : > { %4712 = vpow2.f32 %v3238_v42  ;;  %v4504_v42 = vunpack.i.h.bf16 %v7151_v12  ;;  %v4514_v12 = vunpack.i.h.bf16 %v7153_v16 }
 0xcce   : > { %4714 = vpow2.f32 %v3234_v21 }
 0xccf   : > { %4716 = vpow2.f32 %v3240_v7  ;;  %v3219_v7 = vsub.f32 %v6923_v24, %v7165_v9  ;;  %v3223_v24 = vsub.f32 %v6949_v17, %v7167_v15 }
 0xcd1   : > { %v3244_v9 = vmul.f32 1.442695, %v3223_v24 }
 0xce0   : > { %v2959_v51 = vpop.permute.xlu1 %2958 }
 0xce1   : > { %v2977_v43 = vadd.f32 %v6898_v32, %v2959_v51 }
 0xce3   : > { %v2993_v46 = vmul.f32 0.2, %v2977_v43 }
 0xce5   : > { %v3009_v45 = vmax.f32 %v2977_v43, %v2993_v46  ;;  %v3224_v46 = vsub.f32 %v6944_v6, %v3171_v49 }
 0xce7   : > { %v7176_v59 = vsel %vm5395_vm3, %v3009_v45, -1e+30  ;;  %v4713_v45 = vpop.eup %4712  ;;  %v3246_v28 = vmul.f32 1.442695, %v3224_v46 }
 0xce8   : > { %3072 = vmax.xlane.f32.xlu1 %v7176_v59  ;;  %v4492_v39 = vpop.permute.xlu1 %4491  ;;  %v4715_v21 = vpop.eup %4714 }
 0xce9   : > { %v4493_v32 = vunpack.i.l.bf16 %v4492_v39  ;;  %v4494_v51 = vunpack.i.h.bf16 %v4492_v39  ;;  %v3186_v39 = vpop.permute.xlu0 %3185  ;;  %4718 = vpow2.f32 %v3246_v28  ;;  %v4717_v48 = vpop.eup %4716 }
 0xcea   : > { %v3227_v6 = vsub.f32 %v6962_v50, %v3186_v39 }
 0xceb   : > { %3431 = vmatpush.msra.mxu3 %v4493_v32 }
 0xcec   : > { %v3252_v32 = vmul.f32 1.442695, %v3227_v6 }
 0xced   : > { %3432 = vmatpush.msra.mxu3 %v4494_v51  ;;  %v3201_v51 = vpop.permute.xlu2 %3200 }
 0xcee   : > { %v3230_v50 = vsub.f32 %v6978_v23, %v3201_v51  ;;  %4720 = vpow2.f32 %v3252_v32 }
 0xcef   : > { %3433 = vmatpush.msra.mxu3 %v4498_v27  ;;  %v4719_v27 = vpop.eup %4718 }
 0xcf0   : > { %v4507_v43 = vpop.permute.xlu1 %4506  ;;  %3302 = vadd.xlane.f32.xlu1 %v4713_v45 }
 0xcf1   : > { %3434 = vmatpush.msra.mxu3 %v4499_v56  ;;  %v4508_v29 = vunpack.i.l.bf16 %v4507_v43  ;;  %v4509_v49 = vunpack.i.h.bf16 %v4507_v43  ;;  %v3258_v43 = vmul.f32 1.442695, %v3230_v50  ;;  %v3095_v50 = vsub.f32 %v7039_v61, %v7047_v30 }
 0xcf3   : > { %3435 = vmatpush.msra.mxu3 %v4503_v38  ;;  %v3236_v38 = vmul.f32 1.442695, %v3219_v7 }
 0xcf4   : > { %3298 = vadd.xlane.f32.xlu2 %v4715_v21  ;;  %v4721_v16 = vpop.eup %4720 }
 0xcf5   : > { %3436 = vmatpush.msra.mxu3 %v4504_v42  ;;  %4722 = vpow2.f32 %v3236_v38 }
 0xcf6   : > { %4724 = vpow2.f32 %v3258_v43 }
 0xcf7   : > { %3437 = vmatpush.msra.mxu3 %v4508_v29 }
 0xcf8   : > { %v4517_v10 = vpop.permute.xlu1 %4516  ;;  %3304 = vadd.xlane.f32.xlu1 %v4717_v48 }
 0xcf9   : > { %3438 = vmatpush.msra.mxu3 %v4509_v49  ;;  %v4518_v46 = vunpack.i.l.bf16 %v4517_v10  ;;  %v4519_v56 = vunpack.i.h.bf16 %v4517_v10  ;;  %v3196_v49 = vpop.permute.xlu0 %3195 }
 0xcfa   : > { %v3229_v15 = vsub.f32 %v6983_v54, %v3196_v49 }
 0xcfb   : > { %3439 = vmatpush.msra.mxu3 %v4513_v0  ;;  %v7194_v23 = vpop.eup %4722 }
 0xcfc   : > { %3310 = vadd.xlane.f32.xlu2 %v4719_v27  ;;  %v7196_v29 = vpop.eup %4724  ;;  %v3256_v0 = vmul.f32 1.442695, %v3229_v15  ;;  %v3266_v15 = vld [vmem:[#allocation3] sm:$0xff] }
 0xcfd   : > { %3440 = vmatpush.msra.mxu3 %v4514_v12 }
 0xcff   : > { %3441 = vmatpush.msra.mxu3 %v4518_v46 }
 0xd00   : > { %v3161_v28 = vpop.permute.xlu1 %3160 }
 0xd01   : > { %v3222_v42 = vsub.f32 %v6931_v3, %v3161_v28  ;;  %3442 = vmatpush.msra.mxu3 %v4519_v56  ;;  %v3226_v3 = vsub.f32 %v6967_v34, %v7172_v36  ;;  %v3116_v56 = vmul.f32 1.442695, %v3095_v50 }
 0xd02   : > { %3443 = vmatmul.f32.vlgmr.msra.gmra.mxu3 %v4715_v21 }
 0xd03   : > { %v3242_v39 = vmul.f32 1.442695, %v3222_v42  ;;  %v3250_v21 = vmul.f32 1.442695, %v3226_v3  ;;  %v7926_v42 = vsub.f32 %v6993_v11, %v6996_v26 }
 0xd04   : > { %3316 = vadd.xlane.f32.xlu2 %v4721_v16 }
 0xd05   : > { %4726 = vpow2.f32 %v3242_v39 }
 0xd06   : > { %4728 = vpow2.f32 %v3244_v9  ;;  %v7928_v9 = vsub.f32 %v7155_v1, %v7158_v25 }
 0xd07   : > { %4730 = vpow2.f32 %v3250_v21  ;;  %v3268_v21 = vld [vmem:[#allocation3 + $0x10] sm:$0xff] }
 0xd08   : > { %4732 = vpow2.f32 %v3256_v0  ;;  %v3176_v34 = vpop.permute.xlu1 %3175 }
 0xd0a   : > { %3446 = vmatmul.f32.gmra.mxu3 %v7194_v23 }
 0xd0b   : > { %v4727_v6 = vpop.eup %4726 }
 0xd0c   : > { %3306 = vadd.xlane.f32.xlu1 %v4727_v6  ;;  %3322 = vadd.xlane.f32.xlu2 %v7196_v29  ;;  %v4729_v17 = vpop.eup %4728 }
 0xd0d   : > { %v4731_v10 = vpop.eup %4730 }
 0xd0e   : > { %v4733_v32 = vpop.eup %4732 }
 0xd12   : > { %3449 = vmatmul.f32.gmra.mxu3 %v4713_v45  ;;  %v3225_v45 = vsub.f32 %v6953_v5, %v3176_v34  ;;  %v3228_v5 = vsub.f32 %v6971_v20, %v7181_v47  ;;  %v3092_v20 = vsub.f32 %v7027_v57, %v7030_v62  ;;  %v7925_v47 = vsub.f32 %v7087_v55, %v7093_v22  ;;  %v7241_v62 = vld [vmem:[#allocation2 + $0x78] sm:$0xff] }
 0xd13   : > { %v7927_v22 = vsub.f32 %v7003_v18, %v7006_v53  ;;  %v7929_v18 = vsub.f32 %v7037_v63, %v7044_v4  ;;  %v3269_v34 = vld [vmem:[#allocation3 + $0x18] sm:$0xff] }
 0xd14   : > { %3308 = vadd.xlane.f32.xlu1 %v4729_v17  ;;  %v3248_v7 = vmul.f32 1.442695, %v3225_v45  ;;  %v3254_v38 = vmul.f32 1.442695, %v3228_v5  ;;  %v3110_v30 = vmul.f32 1.442695, %v3092_v20 }
 0xd15   : > { %v3128_v28 = vmul.f32 1.442695, %v7925_v47  ;;  %v3112_v24 = vmul.f32 1.442695, %v7927_v22  ;;  %v3118_v53 = vmul.f32 1.442695, %v7929_v18 }
 0xd16   : > { %v3270_v47 = vld [vmem:[#allocation3 + $0x20] sm:$0xff] }
 0xd1a   : > { %3452 = vmatmul.f32.gmra.mxu3 %v4717_v48 }
 0xd1c   : > { %3314 = vadd.xlane.f32.xlu1 %v4731_v10 }
 0xd22   : > { %3455 = vmatmul.f32.gmra.mxu3 %v4727_v6  ;;  %v3134_v6 = vmul.f32 1.442695, %v7928_v9 }
 0xd24   : > { %3320 = vadd.xlane.f32.xlu1 %v4733_v32 }
 0xd25   : > { %v3211_v51 = vpop.permute.xlu2 %3210 }
 0xd26   : > { %v3232_v12 = vsub.f32 %v7136_v2, %v3211_v51  ;;  %v7924_v2 = vsub.f32 %v7012_v19, %v7015_v8  ;;  %v3098_v19 = vsub.f32 %v7063_v31, %v7071_v58  ;;  %v3206_v31 = vpop.permute.xlu0 %3205  ;;  %v7930_v51 = vsub.f32 %v7061_v33, %v7068_v37  ;;  %v3272_v37 = vld [vmem:[#allocation3 + $0x30] sm:$0xff] }
 0xd27   : > { %v3231_v57 = vsub.f32 %v7105_v41, %v3206_v31  ;;  %v3102_v33 = vsub.f32 %v7085_v40, %v7090_v13 }
 0xd28   : > { %v3262_v36 = vmul.f32 1.442695, %v3232_v12  ;;  %v3108_v46 = vmul.f32 1.442695, %v7924_v2  ;;  %v3122_v8 = vmul.f32 1.442695, %v3098_v19  ;;  %v3094_v2 = vsub.f32 %v7022_v60, %v7025_v52 }
 0xd29   : > { %v3260_v11 = vmul.f32 1.442695, %v3231_v57  ;;  %v3124_v12 = vmul.f32 1.442695, %v7930_v51  ;;  %v3130_v19 = vmul.f32 1.442695, %v3102_v33 }
 0xd2a   : > { %4734 = vpow2.f32 %v3262_v36  ;;  %3458 = vmatmul.f32.gmra.mxu3 %v4729_v17  ;;  %v3275_v60 = vld [vmem:[#allocation3 + $0x48] sm:$0xff] }
 0xd2b   : > { %4736 = vpow2.f32 %v3248_v7 }
 0xd2c   : > { %4738 = vpow2.f32 %v3108_v46 }
 0xd2d   : > { %4740 = vpow2.f32 %v3116_v56  ;;  %v3114_v56 = vmul.f32 1.442695, %v3094_v2 }
 0xd2e   : > { %4742 = vpow2.f32 %v3254_v38 }
 0xd2f   : > { %4744 = vpow2.f32 %v3122_v8 }
 0xd30   : > { %v7205_v54 = vpop.eup %4734  ;;  %4746 = vpow2.f32 %v3110_v30 }
 0xd31   : > { %3326 = vadd.xlane.f32.xlu1 %v7205_v54  ;;  %v7208_v48 = vpop.eup %4736  ;;  %4748 = vpow2.f32 %v3128_v28  ;;  %v3278_v28 = vld [vmem:[#allocation3 + $0x60] sm:$0xff] }
 0xd32   : > { %3461 = vmatmul.f32.gmra.mxu3 %v4719_v27  ;;  %v7218_v27 = vpop.eup %4738 }
 0xd33   : > { %v7223_v43 = vpop.eup %4740 }
 0xd34   : > { %v7225_v61 = vpop.eup %4742 }
 0xd35   : > { %v7234_v58 = vpop.eup %4744 }
 0xd36   : > { %v7254_v41 = vpop.eup %4746 }
 0xd37   : > { %v7259_v3 = vpop.eup %4748  ;;  %v3284_v49 = vmul.f32 %v7254_v41, %v3268_v21 }
 0xd3a   : > { %3464 = vmatmul.f32.gmra.mxu3 %v7208_v48 }
 0xd42   : > { %3467 = vmatmul.f32.gmra.mxu3 %v4731_v10 }
 0xd4a   : > { %3515 = vperm.xlu1 %4478, %v7218_v27   ;;  %3470 = vmatmul.f32.gmra.mxu3 %v4721_v16  ;;  %v3106_v16 = vmul.f32 1.442695, %v7926_v42 }
 0xd4c   : > { %4750 = vpow2.f32 %v3106_v16 }
 0xd4d   : > { %4752 = vpow2.f32 %v3112_v24  ;;  %v3271_v24 = vld [vmem:[#allocation3 + $0x28] sm:$0xff] }
 0xd4e   : > { %4754 = vpow2.f32 %v3260_v11  ;;  %v3287_v11 = vmul.f32 %v7223_v43, %v3271_v24 }
 0xd4f   : > { %4756 = vpow2.f32 %v3134_v6 }
 0xd50   : > { %4758 = vpow2.f32 %v3118_v53  ;;  %v3274_v53 = vld [vmem:[#allocation3 + $0x40] sm:$0xff] }
 0xd51   : > { %4760 = vpow2.f32 %v3124_v12  ;;  %v3290_v21 = vmul.f32 %v7234_v58, %v3274_v53 }
 0xd52   : > { %3535 = vperm.xlu1 %4478, %v7223_v43   ;;  %3473 = vmatmul.f32.gmra.mxu3 %v7225_v61  ;;  %v7267_v17 = vpop.eup %4750  ;;  %4762 = vpow2.f32 %v3114_v56 }
 0xd53   : > { %v3282_v63 = vmul.f32 %v7267_v17, %v3266_v15  ;;  %v7271_v4 = vpop.eup %4752  ;;  %4764 = vpow2.f32 %v3130_v19 }
 0xd54   : > { %v7273_v10 = vpop.eup %4754  ;;  %v3285_v36 = vmul.f32 %v7271_v4, %v3269_v34 }
 0xd5a   : > { %3550 = vperm.xlu1 %4478, %v7234_v58   ;;  %3476 = vmatmul.f32.gmra.mxu3 %v4733_v32  ;;  %v3280_v58 = vld [vmem:[#allocation3 + $0x70] sm:$0xff] }
 0xd5b   : > { %v3073_v39 = vpop.xlane.xlu1 %3072 }
 0xd5c   : > { %v7244_v55 = vmax.f32 %v7241_v62, %v3073_v39 }
 0xd5e   : > { %v3105_v26 = vsub.f32 %v7241_v62, %v7244_v55  ;;  %3378 = vst.msk [vmem:[#allocation2 + $0x78] sm:$0xff] %vm3346_vm10, %v7244_v55  ;;  %3215 = vperm.xlu0 %4479, %v7244_v55  }
 0xd62   : > { %3565 = vperm.xlu1 %4478, %v7259_v3   ;;  %3479 = vmatmul.f32.gmra.mxu3 %v7196_v29  ;;  %v7275_v29 = vpop.eup %4756 }
 0xd63   : > { %v3303_v1 = vpop.xlane.xlu1 %3302  ;;  %v7284_v45 = vpop.eup %4758 }
 0xd64   : > { %v3332_v25 = vadd.f32 %v3303_v1, %v3284_v49  ;;  %v3288_v50 = vmul.f32 %v7284_v45, %v3272_v37  ;;  %v7294_v8 = vpop.eup %4760  ;;  %v7933_v37 = vld [vmem:[#allocation6_spill] sm:$0xff] }
 0xd65   : > { %v3291_v52 = vmul.f32 %v7294_v8, %v3275_v60  ;;  %v4763_v20 = vpop.eup %4762 }
 0xd66   : > { %3349 = vst.msk [vmem:[#allocation3 + $0x10] sm:$0xff] %vm3346_vm10, %v3332_v25  ;;  %v7298_v30 = vpop.eup %4764  ;;  %v3286_v31 = vmul.f32 %v4763_v20, %v3270_v47  ;;  %v3277_v25 = vld [vmem:[#allocation3 + $0x58] sm:$0xff] }
 0xd67   : > { %v3299_v0 = vpop.xlane.xlu2 %3298  ;;  %v3294_v42 = vmul.f32 %v7298_v30, %v3278_v28 }
 0xd68   : > { %v3330_v32 = vadd.f32 %v3299_v0, %v3282_v63 }
 0xd6a   : > { %3347 = vst.msk [vmem:[#allocation3] sm:$0xff] %vm3346_vm10, %v3330_v32  ;;  %3580 = vperm.xlu1 %4478, %v7275_v29   ;;  %3482 = vmatmul.f32.gmra.mxu3 %v7273_v10  ;;  %v3296_v32 = vmul.f32 %v7275_v29, %v3280_v58 }
 0xd6b   : > { %v3305_v7 = vpop.xlane.xlu1 %3304 }
 0xd6c   : > { %v3333_v46 = vadd.f32 %v3305_v7, %v3285_v36  ;;  %v7931_v36 = vld [vmem:[#allocation9_spill] sm:$0xff] }
 0xd6d   : > { %v3100_v7 = vsub.f32 %v7931_v36, %v7074_v35 }
 0xd6e   : > { %3350 = vst.msk [vmem:[#allocation3 + $0x18] sm:$0xff] %vm3346_vm10, %v3333_v46 }
 0xd6f   : > { %v3311_v5 = vpop.xlane.xlu2 %3310  ;;  %v3126_v46 = vmul.f32 1.442695, %v3100_v7  ;;  %v3281_v7 = vld [vmem:[#allocation3 + $0x78] sm:$0xff] }
 0xd70   : > { %v3336_v38 = vadd.f32 %v3311_v5, %v3288_v50 }
 0xd72   : > { %3353 = vst.msk [vmem:[#allocation3 + $0x30] sm:$0xff] %vm3346_vm10, %v3336_v38  ;;  %3485 = vmatmul.f32.gmra.mxu3 %v7205_v54 }
 0xd77   : > { %v3317_v40 = vpop.xlane.xlu2 %3316 }
 0xd78   : > { %v3339_v13 = vadd.f32 %v3317_v40, %v3291_v52 }
 0xd7a   : > { %3356 = vst.msk [vmem:[#allocation3 + $0x48] sm:$0xff] %vm3346_vm10, %v3339_v13 }
 0xd7f   : > { %v3307_v54 = vpop.xlane.xlu1 %3306  ;;  %v3323_v16 = vpop.xlane.xlu2 %3322 }
 0xd80   : > { %v3334_v57 = vadd.f32 %v3307_v54, %v3286_v31  ;;  %v3342_v39 = vadd.f32 %v3323_v16, %v3294_v42  ;;  %v3267_v42 = vld [vmem:[#allocation3 + $0x8] sm:$0xff] }
 0xd81   : > { %v3283_v54 = vmul.f32 %v7218_v27, %v3267_v42  ;;  %v3136_v27 = vmul.f32 1.442695, %v3105_v26  ;;  %v3496_v26 = vld [vmem:[#allocation4 + $0x20] sm:$0xff]  ;;  %v3498_v42 = vld [vmem:[#allocation4 + $0x30] sm:$0xff] }
 0xd82   : > { %3351 = vst.msk [vmem:[#allocation3 + $0x20] sm:$0xff] %vm3346_vm10, %v3334_v57 }
 0xd83   : > { %3359 = vst.msk [vmem:[#allocation3 + $0x60] sm:$0xff] %vm3346_vm10, %v3342_v39  ;;  %v3493_v39 = vld [vmem:[#allocation4 + $0x8] sm:$0xff] }
 0xd85   : > { %v7303_v22 = vpop.f32.mrf.mxu3 }
 0xd87   : > { %v3309_v9 = vpop.xlane.xlu1 %3308 }
 0xd88   : > { %v3335_v6 = vadd.f32 %v3309_v9, %v3287_v11  ;;  %3300 = vadd.xlane.f32.xlu0 %v7194_v23  ;;  %v3293_v23 = vmul.f32 %v7259_v3, %v3277_v25  ;;  %v3273_v11 = vld [vmem:[#allocation3 + $0x38] sm:$0xff] }
 0xd8a   : > { %3352 = vst.msk [vmem:[#allocation3 + $0x28] sm:$0xff] %vm3346_vm10, %v3335_v6 }
 0xd8d   : > { %v3447_v18 = vpop.f32.mrf.mxu3 }
 0xd8e   : > { %3622 = vrot.lane.b32.xlu1 %v3447_v18, %s4958_s9 }
 0xd8f   : > { %v3315_v49 = vpop.xlane.xlu1 %3314 }
 0xd90   : > { %v3338_v1 = vadd.f32 %v3315_v49, %v3290_v21  ;;  %3312 = vadd.xlane.f32.xlu0 %v7208_v48 }
 0xd92   : > { %3355 = vst.msk [vmem:[#allocation3 + $0x40] sm:$0xff] %vm3346_vm10, %v3338_v1  ;;  %v3279_v1 = vld [vmem:[#allocation3 + $0x68] sm:$0xff] }
 0xd95   : > { %v7312_v43 = vpop.f32.mrf.mxu3 }
 0xd97   : > { %v3321_v15 = vpop.xlane.xlu1 %3320 }
 0xd98   : > { %v3341_v63 = vadd.f32 %v3321_v15, %v3293_v23  ;;  %3318 = vadd.xlane.f32.xlu0 %v7225_v61 }
 0xd9a   : > { %3358 = vst.msk [vmem:[#allocation3 + $0x58] sm:$0xff] %vm3346_vm10, %v3341_v63 }
 0xd9d   : > { %v3453_v0 = vpop.f32.mrf.mxu3 }
 0xda0   : > { %3324 = vadd.xlane.f32.xlu0 %v7273_v10  ;;  %v3097_v10 = vsub.f32 %v7041_v14, %v7050_v44 }
 0xda2   : > { %v3120_v29 = vmul.f32 1.442695, %v3097_v10 }
 0xda4   : > { %v3327_v48 = vpop.xlane.xlu1 %3326  ;;  %4766 = vpow2.f32 %v3120_v29 }
 0xda5   : > { %v3344_v51 = vadd.f32 %v3327_v48, %v3296_v32  ;;  %v3456_v12 = vpop.f32.mrf.mxu3  ;;  %4768 = vpow2.f32 %v3126_v46 }
 0xda6   : > { %3628 = vrot.lane.b32.xlu1 %v3456_v12, %s4958_s9 }
 0xda7   : > { %3361 = vst.msk [vmem:[#allocation3 + $0x70] sm:$0xff] %vm3346_vm10, %v3344_v51 }
 0xdaa   : > { %v4767_v33 = vpop.eup %4766 }
 0xdab   : > { %v4769_v38 = vpop.eup %4768  ;;  %v3289_v9 = vmul.f32 %v4767_v33, %v3273_v11 }
 0xdad   : > { %v7321_v3 = vpop.f32.mrf.mxu3 }
 0xdb4   : > { %3510 = vperm.xlu0 %4479, %v7267_v17  }
 0xdb5   : > { %v3462_v61 = vpop.f32.mrf.mxu3 }
 0xdbc   : > { %3525 = vperm.xlu0 %4479, %v7271_v4   ;;  %v7932_v4 = vld [vmem:[#allocation8_spill] sm:$0xff]  ;;  %v3516_v44 = vpop.permute.xlu1 %3515 }
 0xdbd   : > { %v3465_v34 = vpop.f32.mrf.mxu3  ;;  %v7934_v50 = vsub.f32 %v7932_v4, %v7933_v37  ;;  %v3492_v4 = vld [vmem:[#allocation4] sm:$0xff] }
 0xdbe   : > { %3634 = vrot.lane.b32.xlu1 %v3465_v34, %s4958_s9 }
 0xdbf   : > { %v3132_v14 = vmul.f32 1.442695, %v7934_v50 }
 0xdc1   : > { %4770 = vpow2.f32 %v3132_v14 }
 0xdc4   : > { %3530 = vperm.xlu0 %4479, %v4763_v20   ;;  %v7337_v52 = vpop.permute.xlu1 %3535 }
 0xdc5   : > { %v7330_v2 = vpop.f32.mrf.mxu3 }
 0xdc7   : > { %v4771_v60 = vpop.eup %4770 }
 0xdc8   : > { %v3295_v25 = vmul.f32 %v4771_v60, %v3279_v1 }
 0xdcc   : > { %3545 = vperm.xlu0 %4479, %v4767_v33   ;;  %v7339_v20 = vpop.permute.xlu1 %3550 }
 0xdcd   : > { %v3471_v17 = vpop.f32.mrf.mxu3 }
 0xdd0   : > { %v3216_v5 = vpop.permute.xlu0 %3215 }
 0xdd1   : > { %v3233_v56 = vsub.f32 %v7176_v59, %v3216_v5  ;;  %v3495_v5 = vld [vmem:[#allocation4 + $0x18] sm:$0xff] }
 0xdd3   : > { %v3264_v19 = vmul.f32 1.442695, %v3233_v56 }
 0xdd4   : > { %3560 = vperm.xlu0 %4479, %v4769_v38   ;;  %v7344_v28 = vpop.permute.xlu1 %3565 }
 0xdd5   : > { %4772 = vpow2.f32 %v3264_v19  ;;  %v3474_v35 = vpop.f32.mrf.mxu3 }
 0xdd6   : > { %3640 = vrot.lane.b32.xlu1 %v3474_v35, %s4958_s9  ;;  %4774 = vpow2.f32 %v3136_v27 }
 0xddb   : > { %v4773_v40 = vpop.eup %4772 }
 0xddc   : > { %3575 = vperm.xlu0 %4479, %v4771_v60   ;;  %3328 = vadd.xlane.f32.xlu2 %v4773_v40  ;;  %v7349_v31 = vpop.permute.xlu1 %3580 }
 0xddd   : > { %3488 = vmatmul.f32.gmra.mxu3 %v4773_v40  ;;  %v3477_v13 = vpop.f32.mrf.mxu3 }
 0xde4   : > { %3620 = vrot.lane.b32.xlu0 %v7303_v22, %s4958_s9  ;;  %v3589_v22 = vmul.f32 %v3516_v44, %v3493_v39 }
 0xde5   : > { %v3480_v59 = vpop.f32.mrf.mxu3 }
 0xdec   : > { %3626 = vrot.lane.b32.xlu0 %v3453_v0, %s4958_s9 }
 0xded   : > { %v3483_v47 = vpop.f32.mrf.mxu3 }
 0xdee   : > { %3646 = vrot.lane.b32.xlu1 %v3483_v47, %s4958_s9 }
 0xdf4   : > { %3520 = vperm.xlu2 %4477, %v7254_v41   ;;  %3632 = vrot.lane.b32.xlu0 %v3462_v61, %s4958_s9  ;;  %v3502_v61 = vld [vmem:[#allocation4 + $0x50] sm:$0xff] }
 0xdf5   : > { %v3486_v32 = vpop.f32.mrf.mxu3 }
 0xdfb   : > { %v3301_v16 = vpop.xlane.xlu0 %3300 }
 0xdfc   : > { %v3331_v57 = vadd.f32 %v3301_v16, %v3283_v54  ;;  %3540 = vperm.xlu2 %4477, %v7284_v45   ;;  %3638 = vrot.lane.b32.xlu0 %v3471_v17, %s4958_s9  ;;  %v3276_v45 = vld [vmem:[#allocation3 + $0x50] sm:$0xff] }
 0xdfd   : > { %v3292_v53 = vmul.f32 %v4769_v38, %v3276_v45  ;;  %v3505_v38 = vld [vmem:[#allocation4 + $0x68] sm:$0xff] }
 0xdfe   : > { %3348 = vst.msk [vmem:[#allocation3 + $0x8] sm:$0xff] %vm3346_vm10, %v3331_v57 }
 0xe00   : > { %v3623_v24 = vpop.permute.xlu1 %3622 }
 0xe01   : > { %v3669_v41 = vadd.f32 %v3623_v24, %v3589_v22  ;;  %v3501_v22 = vld [vmem:[#allocation4 + $0x48] sm:$0xff] }
 0xe03   : > { %3686 = vst.msk [vmem:[#allocation4 + $0x8] sm:$0xff] %vm3684_vm13, %v3669_v41  ;;  %v3313_v6 = vpop.xlane.xlu0 %3312 }
 0xe04   : > { %v3337_v18 = vadd.f32 %v3313_v6, %v3289_v9  ;;  %3555 = vperm.xlu2 %4477, %v7294_v8   ;;  %3644 = vrot.lane.b32.xlu0 %v3480_v59, %s4958_s9  ;;  %v4775_v8 = vpop.eup %4774  ;;  %v3504_v6 = vld [vmem:[#allocation4 + $0x60] sm:$0xff] }
 0xe05   : > { %v3297_v46 = vmul.f32 %v4775_v8, %v3281_v7 }
 0xe06   : > { %3354 = vst.msk [vmem:[#allocation3 + $0x38] sm:$0xff] %vm3346_vm10, %v3337_v18 }
 0xe0b   : > { %v3319_v21 = vpop.xlane.xlu0 %3318 }
 0xe0c   : > { %v3340_v49 = vadd.f32 %v3319_v21, %v3292_v53  ;;  %3570 = vperm.xlu2 %4477, %v7298_v30   ;;  %v3494_v21 = vld [vmem:[#allocation4 + $0x10] sm:$0xff] }
 0xe0e   : > { %3357 = vst.msk [vmem:[#allocation3 + $0x50] sm:$0xff] %vm3346_vm10, %v3340_v49 }
 0xe13   : > { %v3325_v23 = vpop.xlane.xlu0 %3324 }
 0xe14   : > { %v3343_v15 = vadd.f32 %v3325_v23, %v3295_v25  ;;  %3585 = vperm.xlu2 %4477, %v4775_v8   ;;  %v3497_v8 = vld [vmem:[#allocation4 + $0x28] sm:$0xff] }
 0xe15   : > { %v3593_v23 = vmul.f32 %v7337_v52, %v3497_v8 }
 0xe16   : > { %3360 = vst.msk [vmem:[#allocation3 + $0x68] sm:$0xff] %vm3346_vm10, %v3343_v15 }
 0xe18   : > { %v3629_v0 = vpop.permute.xlu1 %3628 }
 0xe1c   : > { %3624 = vrot.lane.b32.xlu2 %v7312_v43, %s4958_s9  ;;  %v3499_v43 = vld [vmem:[#allocation4 + $0x38] sm:$0xff] }
 0xe24   : > { %3630 = vrot.lane.b32.xlu2 %v7321_v3, %s4958_s9 }
 0xe26   : > { %v3511_v62 = vpop.permute.xlu0 %3510 }
 0xe27   : > { %v3588_v37 = vmul.f32 %v3511_v62, %v3492_v4 }
 0xe2c   : > { %3636 = vrot.lane.b32.xlu2 %v7330_v2, %s4958_s9 }
 0xe2e   : > { %v3526_v55 = vpop.permute.xlu0 %3525 }
 0xe2f   : > { %v3591_v56 = vmul.f32 %v3526_v55, %v3495_v5  ;;  %v3500_v55 = vld [vmem:[#allocation4 + $0x40] sm:$0xff] }
 0xe30   : > { %v3635_v12 = vpop.permute.xlu1 %3634 }
 0xe34   : > { %3642 = vrot.lane.b32.xlu2 %v3477_v13, %s4958_s9 }
 0xe36   : > { %v3531_v30 = vpop.permute.xlu0 %3530 }
 0xe37   : > { %v3592_v63 = vmul.f32 %v3531_v30, %v3496_v26  ;;  %v3596_v26 = vmul.f32 %v7339_v20, %v3500_v55 }
 0xe39   : > { %v3672_v58 = vadd.f32 %v3629_v0, %v3592_v63  ;;  %v3503_v0 = vld [vmem:[#allocation4 + $0x58] sm:$0xff] }
 0xe3b   : > { %3689 = vst.msk [vmem:[#allocation4 + $0x20] sm:$0xff] %vm3684_vm13, %v3672_v58  ;;  %v3599_v58 = vmul.f32 %v7344_v28, %v3503_v0 }
 0xe3c   : > { %3648 = vrot.lane.b32.xlu2 %v3486_v32, %s4958_s9 }
 0xe3e   : > { %v3546_v48 = vpop.permute.xlu0 %3545 }
 0xe3f   : > { %v3595_v51 = vmul.f32 %v3546_v48, %v3499_v43  ;;  %v3506_v48 = vld [vmem:[#allocation4 + $0x70] sm:$0xff] }
 0xe40   : > { %v3602_v52 = vmul.f32 %v7349_v31, %v3506_v48 }
 0xe41   : > { %v3675_v3 = vadd.f32 %v3635_v12, %v3595_v51 }
 0xe43   : > { %3692 = vst.msk [vmem:[#allocation4 + $0x38] sm:$0xff] %vm3684_vm13, %v3675_v3  ;;  %v3507_v3 = vld [vmem:[#allocation4 + $0x78] sm:$0xff] }
 0xe46   : > { %v3561_v10 = vpop.permute.xlu0 %3560 }
 0xe47   : > { %v3598_v34 = vmul.f32 %v3561_v10, %v3502_v61 }
 0xe48   : > { %v3641_v29 = vpop.permute.xlu1 %3640 }
 0xe49   : > { %v3678_v36 = vadd.f32 %v3641_v29, %v3598_v34 }
 0xe4b   : > { %3695 = vst.msk [vmem:[#allocation4 + $0x50] sm:$0xff] %vm3684_vm13, %v3678_v36 }
 0xe4e   : > { %v3576_v2 = vpop.permute.xlu0 %3575 }
 0xe4f   : > { %v3329_v33 = vpop.xlane.xlu2 %3328  ;;  %v3601_v35 = vmul.f32 %v3576_v2, %v3505_v38 }
 0xe50   : > { %v3345_v17 = vadd.f32 %v3329_v33, %v3297_v46 }
 0xe52   : > { %3362 = vst.msk [vmem:[#allocation3 + $0x78] sm:$0xff] %vm3346_vm10, %v3345_v17 }
 0xe56   : > { %v3621_v50 = vpop.permute.xlu0 %3620 }
 0xe57   : > { %v3668_v14 = vadd.f32 %v3621_v50, %v3588_v37  ;;  %v3521_v44 = vpop.permute.xlu2 %3520 }
 0xe58   : > { %v3590_v49 = vmul.f32 %v3521_v44, %v3494_v21 }
 0xe59   : > { %3685 = vst.msk [vmem:[#allocation4] sm:$0xff] %vm3684_vm13, %v3668_v14 }
 0xe5e   : > { %v3627_v19 = vpop.permute.xlu0 %3626 }
 0xe5f   : > { %v3671_v60 = vadd.f32 %v3627_v19, %v3591_v56  ;;  %v3541_v40 = vpop.permute.xlu2 %3540 }
 0xe60   : > { %v3489_v13 = vpop.f32.mrf.mxu3  ;;  %v3647_v59 = vpop.permute.xlu1 %3646  ;;  %v3594_v54 = vmul.f32 %v3541_v40, %v3498_v42 }
 0xe61   : > { %3688 = vst.msk [vmem:[#allocation4 + $0x18] sm:$0xff] %vm3684_vm13, %v3671_v60  ;;  %v3681_v47 = vadd.f32 %v3647_v59, %v3601_v35  ;;  %3650 = vrot.lane.b32.xlu0 %v3489_v13, %s4958_s9 }
 0xe63   : > { %3698 = vst.msk [vmem:[#allocation4 + $0x68] sm:$0xff] %vm3684_vm13, %v3681_v47 }
 0xe66   : > { %v3633_v16 = vpop.permute.xlu0 %3632 }
 0xe67   : > { %v3674_v57 = vadd.f32 %v3633_v16, %v3594_v54  ;;  %v3556_v39 = vpop.permute.xlu2 %3555 }
 0xe68   : > { %v3597_v24 = vmul.f32 %v3556_v39, %v3501_v22 }
 0xe69   : > { %3691 = vst.msk [vmem:[#allocation4 + $0x30] sm:$0xff] %vm3684_vm13, %v3674_v57 }
 0xe6e   : > { %v3639_v41 = vpop.permute.xlu0 %3638 }
 0xe6f   : > { %v3677_v11 = vadd.f32 %v3639_v41, %v3597_v24  ;;  %v3571_v9 = vpop.permute.xlu2 %3570 }
 0xe70   : > { %v3600_v18 = vmul.f32 %v3571_v9, %v3504_v6 }
 0xe71   : > { %3694 = vst.msk [vmem:[#allocation4 + $0x48] sm:$0xff] %vm3684_vm13, %v3677_v11 }
 0xe76   : > { %v3645_v27 = vpop.permute.xlu0 %3644 }
 0xe77   : > { %v3680_v45 = vadd.f32 %v3645_v27, %v3600_v18  ;;  %v3586_v53 = vpop.permute.xlu2 %3585 }
 0xe78   : > { %v3603_v20 = vmul.f32 %v3586_v53, %v3507_v3 }
 0xe79   : > { %3697 = vst.msk [vmem:[#allocation4 + $0x60] sm:$0xff] %vm3684_vm13, %v3680_v45 }
 0xe7f   : > { %v3625_v1 = vpop.permute.xlu2 %3624 }
 0xe80   : > { %v3670_v25 = vadd.f32 %v3625_v1, %v3590_v49 }
 0xe82   : > { %3687 = vst.msk [vmem:[#allocation4 + $0x10] sm:$0xff] %vm3684_vm13, %v3670_v25 }
 0xe87   : > { %v3631_v15 = vpop.permute.xlu2 %3630 }
 0xe88   : > { %v3673_v62 = vadd.f32 %v3631_v15, %v3593_v23 }
 0xe8a   : > { %3690 = vst.msk [vmem:[#allocation4 + $0x28] sm:$0xff] %vm3684_vm13, %v3673_v62 }
 0xe8f   : > { %v3637_v30 = vpop.permute.xlu2 %3636 }
 0xe90   : > { %v3676_v63 = vadd.f32 %v3637_v30, %v3596_v26 }
 0xe92   : > { %3693 = vst.msk [vmem:[#allocation4 + $0x40] sm:$0xff] %vm3684_vm13, %v3676_v63 }
 0xe97   : > { %v3643_v32 = vpop.permute.xlu2 %3642 }
 0xe98   : > { %v3679_v43 = vadd.f32 %v3643_v32, %v3599_v58 }
 0xe9a   : > { %3696 = vst.msk [vmem:[#allocation4 + $0x58] sm:$0xff] %vm3684_vm13, %v3679_v43 }
 0xe9f   : > { %v3649_v51 = vpop.permute.xlu2 %3648 }
 0xea0   : > { %v3682_v12 = vadd.f32 %v3649_v51, %v3602_v52 }
 0xea2   : > { %3699 = vst.msk [vmem:[#allocation4 + $0x70] sm:$0xff] %vm3684_vm13, %v3682_v12 }
 0xed2   : > { %3704 = sbr.rel (%p4306_p0) target bundleno = 4100 (0x1004), region = 86 }
 0xed3   : > { %v3651_v61 = vpop.permute.xlu0 %3650 }
 0xed4   : > { %v3683_v10 = vadd.f32 %v3651_v61, %v3603_v20 }
 0xed6   : > { %3700 = vst.msk [vmem:[#allocation4 + $0x78] sm:$0xff] %vm3684_vm13, %v3683_v10 }
 0xed7   : > { %v3709_v28 = vld [vmem:[#allocation3 + $0x20] sm:$0xff]  ;;  %v3707_v34 = vld [vmem:[#allocation3 + $0x10] sm:$0xff]  ;;  %v4959_v36 = vmov 0   ;;  %v3710_v31 = vld [vmem:[#allocation3 + $0x28] sm:$0xff]  ;;  %v4960_v11 = vmov 1   ;;  %v4961_v9 = vmov 2  }
 0xed8   : > { %v3705_v29 = vld [vmem:[#allocation3] sm:$0xff]  ;;  %4848 = vset.pattern.permute.xlu2 %v4959_v36  ;;  %4847 = vset.pattern.permute.xlu1 %v4959_v36  ;;  %4859 = vrcp.f32 %v3709_v28  ;;  %v3708_v7 = vld [vmem:[#allocation3 + $0x18] sm:$0xff]  ;;  %v3706_v2 = vld [vmem:[#allocation3 + $0x8] sm:$0xff]  ;;  %v4962_v25 = vmov 3   ;;  %vm7935_vm0 = vcmask 64512   ;;  %vm4105_vm3 = vcmask 130048  }
 0xed9   : > { %4846 = vset.pattern.permute.xlu0 %v4959_v36  ;;  %4861 = vrcp.f32 %v3707_v34  ;;  %v3713_v4 = vld [vmem:[#allocation3 + $0x40] sm:$0xff]  ;;  %v3712_v50 = vld [vmem:[#allocation3 + $0x38] sm:$0xff]  ;;  %v3711_v44 = vld [vmem:[#allocation3 + $0x30] sm:$0xff]  ;;  %vm4122_vm5 = vcmask 195584   ;;  %vm4159_vm9 = vcmask 261120  }
 0xeda   : > { %4863 = vrcp.f32 %v3705_v29  ;;  %v3716_v56 = vld [vmem:[#allocation3 + $0x58] sm:$0xff]  ;;  %v3715_v19 = vld [vmem:[#allocation3 + $0x50] sm:$0xff]  ;;  %v3714_v60 = vld [vmem:[#allocation3 + $0x48] sm:$0xff] }
 0xedb   : > { %4865 = vrcp.f32 %v3710_v31  ;;  %v3719_v13 = vld [vmem:[#allocation3 + $0x70] sm:$0xff]  ;;  %v3718_v47 = vld [vmem:[#allocation3 + $0x68] sm:$0xff]  ;;  %v3717_v54 = vld [vmem:[#allocation3 + $0x60] sm:$0xff] }
 0xedc   : > { %4867 = vrcp.f32 %v3708_v7  ;;  %v3720_v22 = vld [vmem:[#allocation3 + $0x78] sm:$0xff]  ;;  %v7489_v23 = vld [vmem:[#allocation4 + $0x8] sm:$0xff]  ;;  %v7499_v0 = vld [vmem:[#allocation4 + $0x20] sm:$0xff] }
 0xedd   : > { %4869 = vrcp.f32 %v3706_v2  ;;  %vm7936_vm1 = vmmov %vm7935_vm0  ;;  %v7509_v12 = vld [vmem:[#allocation4 + $0x30] sm:$0xff]  ;;  %v7519_v29 = vld [vmem:[#allocation4 + $0x48] sm:$0xff] }
 0xede   : > { %v7395_v46 = vpop.eup %4859  ;;  %4871 = vrcp.f32 %v3713_v4  ;;  %vm7937_vm6 = vmmov %vm7935_vm0  ;;  %v7533_v4 = vld [vmem:[#allocation4 + $0x10] sm:$0xff] }
 0xedf   : > { %v7397_v33 = vpop.eup %4861  ;;  %3775 = vperm.xlu2 %4848, %v7395_v46   ;;  %4873 = vrcp.f32 %v3712_v50  ;;  %vm7938_vm12 = vmmov %vm7935_vm0 }
 0xee0   : > { %v7400_v17 = vpop.eup %4863  ;;  %3765 = vperm.xlu1 %4847, %v7397_v33   ;;  %4875 = vrcp.f32 %v3711_v44  ;;  %vm7939_vm14 = vmmov %vm7935_vm0 }
 0xee1   : > { %3755 = vperm.xlu0 %4846, %v7400_v17   ;;  %v7404_v37 = vpop.eup %4865  ;;  %4877 = vrcp.f32 %v3716_v56  ;;  %vm7940_vm15 = vmmov %vm7935_vm0 }
 0xee2   : > { %v7406_v14 = vpop.eup %4867  ;;  %4879 = vrcp.f32 %v3715_v19  ;;  %vm7941_vm4 = vmmov %vm7935_vm0 }
 0xee3   : > { %v7408_v5 = vpop.eup %4869  ;;  %4881 = vrcp.f32 %v3714_v60  ;;  %v7548_v60 = vld [vmem:[#allocation4 + $0x78] sm:$0xff]  ;;  %vm7942_vm8 = vmmov %vm7935_vm0 }
 0xee4   : > { %v7413_v38 = vpop.eup %4871  ;;  %4883 = vrcp.f32 %v3719_v13  ;;  %vm7943_vm7 = vmmov %vm7935_vm0 }
 0xee5   : > { %v7415_v35 = vpop.eup %4873  ;;  %4885 = vrcp.f32 %v3718_v47  ;;  %vm7944_vm2 = vmmov %vm7935_vm0 }
 0xee6   : > { %v7417_v40 = vpop.eup %4875  ;;  %4887 = vrcp.f32 %v3717_v54  ;;  %vm7945_vm11 = vmmov %vm7935_vm0 }
 0xee7   : > { %3780 = vperm.xlu2 %4848, %v7404_v37   ;;  %v7422_v59 = vpop.eup %4877  ;;  %4889 = vrcp.f32 %v3720_v22  ;;  %vm7946_vm10 = vmmov %vm7935_vm0 }
 0xee8   : > { %3770 = vperm.xlu1 %4847, %v7406_v14   ;;  %v7424_v42 = vpop.eup %4879  ;;  %vm7947_vm13 = vmmov %vm7935_vm0 }
 0xee9   : > { %3760 = vperm.xlu0 %4846, %v7408_v5   ;;  %v7426_v16 = vpop.eup %4881 }
 0xeea   : > { %v7431_v57 = vpop.eup %4883 }
 0xeeb   : > { %v7433_v39 = vpop.eup %4885 }
 0xeec   : > { %v7435_v24 = vpop.eup %4887 }
 0xeed   : > { %v7440_v41 = vpop.eup %4889 }
 0xeef   : > { %3795 = vperm.xlu2 %4848, %v7413_v38  }
 0xef0   : > { %3790 = vperm.xlu1 %4847, %v7415_v35  }
 0xef1   : > { %3785 = vperm.xlu0 %4846, %v7417_v40  }
 0xef7   : > { %3810 = vperm.xlu2 %4848, %v7422_v59  }
 0xef8   : > { %3805 = vperm.xlu1 %4847, %v7424_v42  }
 0xef9   : > { %3800 = vperm.xlu0 %4846, %v7426_v16  }
 0xeff   : > { %3825 = vperm.xlu2 %4848, %v7431_v57  }
 0xf00   : > { %3820 = vperm.xlu1 %4847, %v7433_v39  }
 0xf01   : > { %3815 = vperm.xlu0 %4846, %v7435_v24  }
 0xf07   : > { %4850 = vset.pattern.permute.xlu2 %v4960_v11 }
 0xf08   : > { %4849 = vset.pattern.permute.xlu1 %v4960_v11  ;;  %3854 = vperm.xlu2 %4850, %v7408_v5  }
 0xf09   : > { %3830 = vperm.xlu0 %4846, %v7440_v41   ;;  %3850 = vperm.xlu1 %4849, %v7400_v17  }
 0xf10   : > { %3866 = vperm.xlu2 %4850, %v7395_v46  }
 0xf11   : > { %4851 = vset.pattern.permute.xlu0 %v4960_v11  ;;  %3862 = vperm.xlu1 %4849, %v7406_v14   ;;  %v7564_v11 = vld [vmem:[#allocation4 + $0x50] sm:$0xff] }
 0xf12   : > { %3858 = vperm.xlu0 %4851, %v7397_v33  }
 0xf18   : > { %3874 = vperm.xlu2 %4850, %v7417_v40  }
 0xf19   : > { %3870 = vperm.xlu1 %4849, %v7404_v37  }
 0xf1a   : > { %3878 = vperm.xlu0 %4851, %v7415_v35  }
 0xf20   : > { %3886 = vperm.xlu2 %4850, %v7426_v16  }
 0xf21   : > { %3882 = vperm.xlu1 %4849, %v7413_v38  }
 0xf22   : > { %3890 = vperm.xlu0 %4851, %v7424_v42  }
 0xf28   : > { %3898 = vperm.xlu2 %4850, %v7435_v24  }
 0xf29   : > { %3894 = vperm.xlu1 %4849, %v7422_v59  }
 0xf2a   : > { %3902 = vperm.xlu0 %4851, %v7433_v39  }
 0xf30   : > { %3910 = vperm.xlu2 %4850, %v7440_v41  }
 0xf31   : > { %3906 = vperm.xlu1 %4849, %v7431_v57  }
 0xf32   : > { %4852 = vset.pattern.permute.xlu0 %v4961_v9 }
 0xf33   : > { %3930 = vperm.xlu0 %4852, %v7400_v17  }
 0xf38   : > { %4854 = vset.pattern.permute.xlu2 %v4961_v9 }
 0xf39   : > { %4853 = vset.pattern.permute.xlu1 %v4961_v9  ;;  %v3776_v6 = vpop.permute.xlu2 %3775  ;;  %3938 = vperm.xlu2 %4854, %v7397_v33  }
 0xf3a   : > { %3934 = vperm.xlu1 %4853, %v7408_v5   ;;  %v3837_v43 = vmul.f32 %v3776_v6, %v7499_v0 }
 0xf3b   : > { %3950 = vperm.xlu0 %4852, %v7404_v37  }
 0xf41   : > { %v7463_v18 = vpop.permute.xlu2 %3780  ;;  %3946 = vperm.xlu2 %4854, %v7395_v46  }
 0xf42   : > { %3942 = vperm.xlu1 %4853, %v7406_v14  }
 0xf43   : > { %3962 = vperm.xlu0 %4852, %v7413_v38  }
 0xf49   : > { %v7468_v27 = vpop.permute.xlu2 %3795  ;;  %3958 = vperm.xlu2 %4854, %v7415_v35  }
 0xf4a   : > { %3954 = vperm.xlu1 %4853, %v7417_v40  }
 0xf4b   : > { %3974 = vperm.xlu0 %4852, %v7422_v59  }
 0xf51   : > { %v7473_v45 = vpop.permute.xlu2 %3810  ;;  %3970 = vperm.xlu2 %4854, %v7424_v42  }
 0xf52   : > { %v7476_v53 = vpop.permute.xlu1 %3765  ;;  %3966 = vperm.xlu1 %4853, %v7426_v16  }
 0xf53   : > { %3986 = vperm.xlu0 %4852, %v7431_v57   ;;  %v7480_v21 = vpop.permute.xlu0 %3755  ;;  %v3835_v56 = vmul.f32 %v7476_v53, %v7533_v4 }
 0xf59   : > { %v7482_v49 = vpop.permute.xlu2 %3825  ;;  %3982 = vperm.xlu2 %4854, %v7433_v39  }
 0xf5a   : > { %v7485_v1 = vpop.permute.xlu1 %3770  ;;  %3978 = vperm.xlu1 %4853, %v7435_v24  }
 0xf5b   : > { %4856 = vset.pattern.permute.xlu0 %v4962_v25  ;;  %v3761_v8 = vpop.permute.xlu0 %3760 }
 0xf5c   : > { %4014 = vperm.xlu0 %4856, %v7408_v5   ;;  %v3834_v15 = vmul.f32 %v3761_v8, %v7489_v23 }
 0xf61   : > { %4855 = vset.pattern.permute.xlu2 %v4962_v25 }
 0xf62   : > { %v3791_v62 = vpop.permute.xlu1 %3790  ;;  %3990 = vperm.xlu1 %4853, %v7440_v41   ;;  %v3855_v55 = vpop.permute.xlu2 %3854  ;;  %4010 = vperm.xlu2 %4855, %v7400_v17   ;;  %v7531_v17 = vld [vmem:[#allocation4 + $0x60] sm:$0xff] }
 0xf63   : > { %v3786_v26 = vpop.permute.xlu0 %3785  ;;  %v3914_v30 = vmul.f32 %v3855_v55, %v7489_v23 }
 0xf64   : > { %4034 = vperm.xlu0 %4856, %v7417_v40   ;;  %v3839_v61 = vmul.f32 %v3786_v26, %v7509_v12  ;;  %v7550_v40 = vld [vmem:[#allocation4 + $0x38] sm:$0xff] }
 0xf65   : > { %v7497_v63 = vsel %vm7935_vm0, %v3834_v15, %v3914_v30 }
 0xf6a   : > { %v3806_v58 = vpop.permute.xlu1 %3805  ;;  %4857 = vset.pattern.permute.xlu1 %v4962_v25  ;;  %v3867_v32 = vpop.permute.xlu2 %3866  ;;  %4022 = vperm.xlu2 %4855, %v7406_v14  }
 0xf6b   : > { %v3801_v48 = vpop.permute.xlu0 %3800  ;;  %v3917_v52 = vmul.f32 %v3867_v32, %v7499_v0  ;;  %4018 = vperm.xlu1 %4857, %v7397_v33   ;;  %v3843_v53 = vmul.f32 %v3806_v58, %v7564_v11 }
 0xf6c   : > { %4046 = vperm.xlu0 %4856, %v7426_v16   ;;  %v3842_v31 = vmul.f32 %v3801_v48, %v7519_v29  ;;  %v3840_v16 = vmul.f32 %v3791_v62, %v7550_v40  ;;  %v7575_v62 = vld [vmem:[#allocation4 + $0x68] sm:$0xff] }
 0xf6d   : > { %v7507_v51 = vsel %vm7936_vm1, %v3837_v43, %v3917_v52  ;;  %vm7948_vm1 = vmmov %vm7935_vm0 }
 0xf72   : > { %v3821_v3 = vpop.permute.xlu1 %3820  ;;  %v3875_v20 = vpop.permute.xlu2 %3874  ;;  %4030 = vperm.xlu2 %4855, %v7404_v37  }
 0xf73   : > { %v3816_v10 = vpop.permute.xlu0 %3815  ;;  %v3919_v28 = vmul.f32 %v3875_v20, %v7509_v12  ;;  %4026 = vperm.xlu1 %4857, %v7395_v46   ;;  %v3846_v43 = vmul.f32 %v3821_v3, %v7575_v62 }
 0xf74   : > { %4058 = vperm.xlu0 %4856, %v7435_v24   ;;  %v3845_v50 = vmul.f32 %v3816_v10, %v7531_v17 }
 0xf75   : > { %v7517_v34 = vsel %vm7937_vm6, %v3839_v61, %v3919_v28  ;;  %vm7949_vm6 = vmmov %vm7935_vm0 }
 0xf7a   : > { %v3887_v36 = vpop.permute.xlu2 %3886  ;;  %4042 = vperm.xlu2 %4855, %v7413_v38  }
 0xf7b   : > { %v3831_v7 = vpop.permute.xlu0 %3830  ;;  %v3922_v2 = vmul.f32 %v3887_v36, %v7519_v29  ;;  %4038 = vperm.xlu1 %4857, %v7415_v35   ;;  %v7525_v33 = vpop.permute.xlu1 %3850 }
 0xf7c   : > { %4070 = vperm.xlu0 %4856, %v7440_v41  }
 0xf7d   : > { %v7529_v46 = vsel %vm7938_vm12, %v3842_v31, %v3922_v2 }
 0xf82   : > { %v3899_v37 = vpop.permute.xlu2 %3898  ;;  %4054 = vperm.xlu2 %4855, %v7422_v59   ;;  %v3848_v59 = vmul.f32 %v3831_v7, %v7548_v60 }
 0xf83   : > { %v3925_v14 = vmul.f32 %v3899_v37, %v7531_v17  ;;  %4050 = vperm.xlu1 %4857, %v7424_v42   ;;  %v7539_v44 = vpop.permute.xlu1 %3862 }
 0xf84   : > { %v3859_v5 = vpop.permute.xlu0 %3858 }
 0xf85   : > { %v7544_v38 = vsel %vm7939_vm14, %v3845_v50, %v3925_v14  ;;  %v3915_v19 = vmul.f32 %v3859_v5, %v7533_v4 }
 0xf87   : > { %v4091_v35 = vsel %vm7940_vm15, %v3835_v56, %v3915_v19  ;;  %v3737_v19 = vld [vmem:[#allocation4] sm:$0xff] }
 0xf8a   : > { %v3911_v13 = vpop.permute.xlu2 %3910  ;;  %4066 = vperm.xlu2 %4855, %v7431_v57  }
 0xf8b   : > { %v3928_v47 = vmul.f32 %v3911_v13, %v7548_v60  ;;  %4062 = vperm.xlu1 %4857, %v7433_v39   ;;  %v7556_v42 = vpop.permute.xlu1 %3870 }
 0xf8c   : > { %v3879_v54 = vpop.permute.xlu0 %3878 }
 0xf8d   : > { %v7560_v22 = vsel %vm7941_vm4, %v3848_v59, %v3928_v47  ;;  %v3920_v24 = vmul.f32 %v3879_v54, %v7550_v40  ;;  %v3833_v59 = vmul.f32 %v7480_v21, %v3737_v19  ;;  %v7606_v54 = vld [vmem:[%s7752_s4] ss:$0 sm:$0xff] }
 0xf8f   : > { %v4096_v41 = vsel %vm7942_vm8, %v3840_v16, %v3920_v24 }
 0xf93   : > { %v7566_v57 = vpop.permute.xlu1 %3882  ;;  %v3939_v9 = vpop.permute.xlu2 %3938 }
 0xf94   : > { %v3891_v6 = vpop.permute.xlu0 %3890  ;;  %v3995_v39 = vmul.f32 %v3939_v9, %v7533_v4 }
 0xf95   : > { %v3923_v25 = vmul.f32 %v3891_v6, %v7564_v11 }
 0xf96   : > { %v7572_v8 = vsel %vm4105_vm3, %v4091_v35, %v3995_v39  ;;  %v3913_v35 = vmul.f32 %v7525_v33, %v3737_v19  ;;  %v3740_v39 = vld [vmem:[#allocation4 + $0x18] sm:$0xff] }
 0xf97   : > { %v4099_v15 = vsel %vm7943_vm7, %v3843_v53, %v3923_v25  ;;  %v3916_v53 = vmul.f32 %v7539_v44, %v3740_v39 }
 0xf98   : > { %v4089_v24 = vsel %vm7945_vm11, %v3833_v59, %v3913_v35 }
 0xf9b   : > { %v7577_v55 = vpop.permute.xlu1 %3894  ;;  %v3947_v26 = vpop.permute.xlu2 %3946 }
 0xf9c   : > { %v3903_v30 = vpop.permute.xlu0 %3902  ;;  %v3997_v32 = vmul.f32 %v3947_v26, %v7499_v0 }
 0xf9d   : > { %v3926_v48 = vmul.f32 %v3903_v30, %v7575_v62 }
 0xf9e   : > { %v7584_v58 = vsel %vm4105_vm3, %v7507_v51, %v3997_v32 }
 0xf9f   : > { %v4102_v52 = vsel %vm7944_vm2, %v3846_v43, %v3926_v48 }
 0xfa3   : > { %v7587_v20 = vpop.permute.xlu1 %3906  ;;  %v3959_v61 = vpop.permute.xlu2 %3958 }
 0xfa4   : > { %v4000_v10 = vmul.f32 %v3959_v61, %v7550_v40 }
 0xfa5   : > { %v3931_v28 = vpop.permute.xlu0 %3930 }
 0xfa6   : > { %v7591_v36 = vsel %vm4105_vm3, %v4096_v41, %v4000_v10  ;;  %v3993_v13 = vmul.f32 %v3931_v28, %v3737_v19  ;;  %v3742_v10 = vld [vmem:[#allocation4 + $0x28] sm:$0xff] }
 0xfa7   : > { %v3918_v44 = vmul.f32 %v7556_v42, %v3742_v10 }
 0xfa8   : > { %v4106_v6 = vsel %vm4105_vm3, %v4089_v24, %v3993_v13 }
 0xfab   : > { %v3971_v31 = vpop.permute.xlu2 %3970 }
 0xfac   : > { %v4003_v3 = vmul.f32 %v3971_v31, %v7564_v11  ;;  %v3935_v7 = vpop.permute.xlu1 %3934 }
 0xfad   : > { %v3951_v2 = vpop.permute.xlu0 %3950 }
 0xfae   : > { %v7595_v37 = vsel %vm4105_vm3, %v4099_v15, %v4003_v3  ;;  %v3836_v15 = vmul.f32 %v7485_v1, %v3740_v39  ;;  %v3998_v31 = vmul.f32 %v3951_v2, %v3742_v10  ;;  %v3838_v1 = vmul.f32 %v7463_v18, %v3742_v10  ;;  %v3745_v2 = vld [vmem:[#allocation4 + $0x40] sm:$0xff] }
 0xfaf   : > { %v3994_v3 = vmul.f32 %v3935_v7, %v7489_v23  ;;  %v3921_v7 = vmul.f32 %v7566_v57, %v3745_v2 }
 0xfb0   : > { %v4092_v32 = vsel %vm7946_vm10, %v3836_v15, %v3916_v53 }
 0xfb1   : > { %v4107_v18 = vsel %vm4105_vm3, %v7497_v63, %v3994_v3 }
 0xfb3   : > { %v3983_v51 = vpop.permute.xlu2 %3982 }
 0xfb4   : > { %v4006_v50 = vmul.f32 %v3983_v51, %v7575_v62  ;;  %v3943_v14 = vpop.permute.xlu1 %3942 }
 0xfb5   : > { %v3963_v5 = vpop.permute.xlu0 %3962  ;;  %v3996_v25 = vmul.f32 %v3943_v14, %v3740_v39  ;;  %v4094_v14 = vsel %vm7947_vm13, %v3838_v1, %v3918_v44 }
 0xfb6   : > { %v7599_v56 = vsel %vm4105_vm3, %v4102_v52, %v4006_v50  ;;  %v4111_v35 = vsel %vm4105_vm3, %v4094_v14, %v3998_v31 }
 0xfb7   : > { %v4109_v52 = vsel %vm4105_vm3, %v4092_v32, %v3996_v25 }
 0xfbc   : > { %v3955_v47 = vpop.permute.xlu1 %3954  ;;  %v4011_v16 = vpop.permute.xlu2 %4010 }
 0xfbd   : > { %v3975_v41 = vpop.permute.xlu0 %3974  ;;  %v4073_v9 = vmul.f32 %v4011_v16, %v3737_v19 }
 0xfbf   : > { %v4123_v33 = vsel %vm4122_vm5, %v4106_v6, %v4073_v9  ;;  %v4001_v9 = vmul.f32 %v3963_v5, %v3745_v2 }
 0xfc0   : > { %v4143_v21 = vadd.f32 %v7606_v54, %v4123_v33  ;;  %v3841_v33 = vmul.f32 %v7468_v27, %v3745_v2 }
 0xfc2   : > { %4160 = vst.msk [vmem:[%s5073_s14] sm:$0xff] %vm4159_vm9, %v4143_v21  ;;  %v4097_v21 = vsel %vm7935_vm0, %v3841_v33, %v3921_v7 }
 0xfc3   : > { %v4114_v53 = vsel %vm4105_vm3, %v4097_v21, %v4001_v9 }
 0xfc4   : > { %v3967_v26 = vpop.permute.xlu1 %3966  ;;  %v4023_v30 = vpop.permute.xlu2 %4022 }
 0xfc5   : > { %v7617_v43 = vpop.permute.xlu0 %3986  ;;  %v4076_v48 = vmul.f32 %v4023_v30, %v3740_v39  ;;  %v3999_v39 = vmul.f32 %v3955_v47, %v7509_v12  ;;  %v3748_v30 = vld [vmem:[#allocation4 + $0x58] sm:$0xff] }
 0xfc6   : > { %v3924_v32 = vmul.f32 %v7577_v55, %v3748_v30 }
 0xfc7   : > { %v4126_v61 = vsel %vm4122_vm5, %v4109_v52, %v4076_v48  ;;  %v4112_v27 = vsel %vm4105_vm3, %v7517_v34, %v3999_v39  ;;  %v4004_v52 = vmul.f32 %v3975_v41, %v3748_v30 }
 0xfc8   : > { %v4146_v28 = vadd.f32 %v7606_v54, %v4126_v61 }
 0xfca   : > { %4163 = vst.msk [vmem:[%s5073_s14 + $0x18] sm:$0xff] %vm4159_vm9, %v4146_v28  ;;  %v4002_v28 = vmul.f32 %v3967_v26, %v7519_v29  ;;  %v3751_v26 = vld [vmem:[#allocation4 + $0x70] sm:$0xff] }
 0xfcc   : > { %v3979_v51 = vpop.permute.xlu1 %3978  ;;  %v4031_v50 = vpop.permute.xlu2 %4030 }
 0xfcd   : > { %v4078_v19 = vmul.f32 %v4031_v50, %v3742_v10  ;;  %v3844_v10 = vmul.f32 %v7473_v45, %v3748_v30  ;;  %v4115_v50 = vsel %vm4105_vm3, %v7529_v46, %v4002_v28  ;;  %v4005_v46 = vmul.f32 %v3979_v51, %v7531_v17 }
 0xfce   : > { %v4015_v13 = vpop.permute.xlu0 %4014 }
 0xfcf   : > { %v4128_v59 = vsel %vm4122_vm5, %v4111_v35, %v4078_v19  ;;  %v4074_v42 = vmul.f32 %v4015_v13, %v7489_v23  ;;  %v4100_v34 = vsel %vm7948_vm1, %v3844_v10, %v3924_v32  ;;  %v3927_v35 = vmul.f32 %v7587_v20, %v3751_v26 }
 0xfd0   : > { %v4148_v16 = vadd.f32 %v7606_v54, %v4128_v59  ;;  %v4117_v55 = vsel %vm4105_vm3, %v4100_v34, %v4004_v52  ;;  %v4007_v59 = vmul.f32 %v7617_v43, %v3751_v26  ;;  %v4118_v51 = vsel %vm4105_vm3, %v7544_v38, %v4005_v46 }
 0xfd1   : > { %v4124_v24 = vsel %vm4122_vm5, %v4107_v18, %v4074_v42  ;;  %v3847_v42 = vmul.f32 %v7482_v49, %v3751_v26 }
 0xfd2   : > { %4165 = vst.msk [vmem:[%s5073_s14 + $0x28] sm:$0xff] %vm4159_vm9, %v4148_v16  ;;  %v4144_v6 = vadd.f32 %v7606_v54, %v4124_v24 }
 0xfd3   : > { %v4103_v20 = vsel %vm7949_vm6, %v3847_v42, %v3927_v35 }
 0xfd4   : > { %4161 = vst.msk [vmem:[%s5073_s14 + $0x8] sm:$0xff] %vm4159_vm9, %v4144_v6  ;;  %v3991_v23 = vpop.permute.xlu1 %3990  ;;  %v4043_v63 = vpop.permute.xlu2 %4042  ;;  %v4120_v18 = vsel %vm4105_vm3, %v4103_v20, %v4007_v59 }
 0xfd5   : > { %v4081_v57 = vmul.f32 %v4043_v63, %v3745_v2 }
 0xfd6   : > { %v4035_v5 = vpop.permute.xlu0 %4034 }
 0xfd7   : > { %v4131_v25 = vsel %vm4122_vm5, %v4114_v53, %v4081_v57  ;;  %v4079_v15 = vmul.f32 %v4035_v5, %v7509_v12 }
 0xfd8   : > { %v4151_v47 = vadd.f32 %v7606_v54, %v4131_v25 }
 0xfd9   : > { %v4129_v48 = vsel %vm4122_vm5, %v4112_v27, %v4079_v15 }
 0xfda   : > { %4168 = vst.msk [vmem:[%s5073_s14 + $0x40] sm:$0xff] %vm4159_vm9, %v4151_v47  ;;  %v4149_v61 = vadd.f32 %v7606_v54, %v4129_v48 }
 0xfdc   : > { %4166 = vst.msk [vmem:[%s5073_s14 + $0x30] sm:$0xff] %vm4159_vm9, %v4149_v61  ;;  %v4055_v12 = vpop.permute.xlu2 %4054 }
 0xfdd   : > { %v4084_v44 = vmul.f32 %v4055_v12, %v3748_v30  ;;  %v4019_v31 = vpop.permute.xlu1 %4018 }
 0xfde   : > { %v4075_v41 = vmul.f32 %v4019_v31, %v7533_v4  ;;  %v4047_v1 = vpop.permute.xlu0 %4046 }
 0xfdf   : > { %v4134_v3 = vsel %vm4122_vm5, %v4117_v55, %v4084_v44  ;;  %v4082_v45 = vmul.f32 %v4047_v1, %v7519_v29 }
 0xfe0   : > { %v4154_v14 = vadd.f32 %v7606_v54, %v4134_v3  ;;  %v4125_v19 = vsel %vm4122_vm5, %v7572_v8, %v4075_v41 }
 0xfe1   : > { %v4145_v13 = vadd.f32 %v7606_v54, %v4125_v19  ;;  %v4132_v4 = vsel %vm4122_vm5, %v4115_v50, %v4082_v45 }
 0xfe2   : > { %4171 = vst.msk [vmem:[%s5073_s14 + $0x58] sm:$0xff] %vm4159_vm9, %v4154_v14  ;;  %v4152_v29 = vadd.f32 %v7606_v54, %v4132_v4 }
 0xfe3   : > { %4162 = vst.msk [vmem:[%s5073_s14 + $0x10] sm:$0xff] %vm4159_vm9, %v4145_v13 }
 0xfe4   : > { %4169 = vst.msk [vmem:[%s5073_s14 + $0x48] sm:$0xff] %vm4159_vm9, %v4152_v29  ;;  %v4067_v8 = vpop.permute.xlu2 %4066 }
 0xfe5   : > { %v4087_v2 = vmul.f32 %v4067_v8, %v3751_v26  ;;  %v4027_v43 = vpop.permute.xlu1 %4026 }
 0xfe6   : > { %v4077_v16 = vmul.f32 %v4027_v43, %v7499_v0  ;;  %v4059_v7 = vpop.permute.xlu0 %4058 }
 0xfe7   : > { %v4137_v49 = vsel %vm4122_vm5, %v4120_v18, %v4087_v2  ;;  %v4085_v24 = vmul.f32 %v4059_v7, %v7531_v17  ;;  %v4008_v17 = vmul.f32 %v3991_v23, %v7548_v60 }
 0xfe8   : > { %v4157_v9 = vadd.f32 %v7606_v54, %v4137_v49  ;;  %v4127_v6 = vsel %vm4122_vm5, %v7584_v58, %v4077_v16 }
 0xfe9   : > { %v4147_v33 = vadd.f32 %v7606_v54, %v4127_v6  ;;  %v4135_v39 = vsel %vm4122_vm5, %v4118_v51, %v4085_v24  ;;  %v4121_v57 = vsel %vm4105_vm3, %v7560_v22, %v4008_v17 }
 0xfea   : > { %4174 = vst.msk [vmem:[%s5073_s14 + $0x70] sm:$0xff] %vm4159_vm9, %v4157_v9  ;;  %v4155_v0 = vadd.f32 %v7606_v54, %v4135_v39 }
 0xfeb   : > { %4164 = vst.msk [vmem:[%s5073_s14 + $0x20] sm:$0xff] %vm4159_vm9, %v4147_v33 }
 0xfec   : > { %4172 = vst.msk [vmem:[%s5073_s14 + $0x60] sm:$0xff] %vm4159_vm9, %v4155_v0 }
 0xfed   : > { %v4039_v38 = vpop.permute.xlu1 %4038 }
 0xfee   : > { %v4080_v58 = vmul.f32 %v4039_v38, %v7550_v40  ;;  %v4071_v63 = vpop.permute.xlu0 %4070 }
 0xfef   : > { %v4088_v21 = vmul.f32 %v4071_v63, %v7548_v60 }
 0xff0   : > { %v4130_v53 = vsel %vm4122_vm5, %v7591_v36, %v4080_v58 }
 0xff1   : > { %v4150_v5 = vadd.f32 %v7606_v54, %v4130_v53  ;;  %v4138_v23 = vsel %vm4122_vm5, %v4121_v57, %v4088_v21 }
 0xff2   : > { %v4158_v25 = vadd.f32 %v7606_v54, %v4138_v23 }
 0xff3   : > { %4167 = vst.msk [vmem:[%s5073_s14 + $0x38] sm:$0xff] %vm4159_vm9, %v4150_v5 }
 0xff4   : > { %4175 = vst.msk [vmem:[%s5073_s14 + $0x78] sm:$0xff] %vm4159_vm9, %v4158_v25 }
 0xff5   : > { %v4051_v40 = vpop.permute.xlu1 %4050 }
 0xff6   : > { %v4083_v60 = vmul.f32 %v4051_v40, %v7564_v11 }
 0xff8   : > { %v4133_v22 = vsel %vm4122_vm5, %v7595_v37, %v4083_v60 }
 0xff9   : > { %v4153_v15 = vadd.f32 %v7606_v54, %v4133_v22 }
 0xffb   : > { %4170 = vst.msk [vmem:[%s5073_s14 + $0x50] sm:$0xff] %vm4159_vm9, %v4153_v15 }
 0xffd   : > { %v4063_v36 = vpop.permute.xlu1 %4062 }
 0xffe   : > { %v4086_v30 = vmul.f32 %v4063_v36, %v7575_v62 }
0x1000   : > { %v4136_v27 = vsel %vm4122_vm5, %v7599_v56, %v4086_v30 }
0x1001   : > { %v4156_v47 = vadd.f32 %v7606_v54, %v4136_v27 }
0x1003   : > { %4173 = vst.msk [vmem:[%s5073_s14 + $0x68] sm:$0xff] %vm4159_vm9, %v4156_v47 }
0x1004 PF: > { %s15_s24 = sadd.s32 1, %s4945_s24   ;;  %s7950_s18 = smov %s4925_s19 }
0x1005   : > { %p12_p1 = scmp.ge.s32.totalorder %s15_s24, 6   ;;  %s7951_s19 = smov %s5044_s6 }
0x1006   : > { %s7952_s20 = smov %s4937_s22  ;;  %s7953_s21 = smov %s4941_s23 }
0x1007   : > { %s7954_s22 = smov %s7957_s25  ;;  %s7955_s23 = smov %s7961_s26 }
0x1008   :  { %14 = sbr.rel (!%p12_p1) target bundleno = 4 (0x4), region = 130 }

</bundles_post_ra>
